<compile_context>
chip_gen: v7x
topology: tpu7x:2x2x1
jax: 0.10.0
libtpu: 0.0.40
codegen_flags: <defaults>
</compile_context>

<pallas_src>
import functools
import math

import jax
import jax.numpy as jnp
from jax.experimental import pallas as pl
from jax.experimental.pallas import tpu as pltpu


def _round_up(x, m):
    return ((x + m - 1) // m) * m


# ---------------------------------------------------------------------------
# Pallas kernel: fused 5-layer MLP head (layers 4+5 pre-folded)
# ---------------------------------------------------------------------------
def discriminator_mlp_kernel(img_ref, emb_ref,
                             w1i_ref, w1e_ref, b1_ref,
                             w2_ref, b2_ref,
                             w3_ref, b3_ref,
                             w45_ref, b45_ref,
                             out_ref):
    def leaky_relu(h):                       # nn.LeakyReLU(0.2), f32 on the VPU
        return jnp.where(h >= 0, h, 0.2 * h)

    img = img_ref[...].astype(jnp.bfloat16)  # (TB, CHW)
    emb = emb_ref[...].astype(jnp.bfloat16)  # (TB, EMB_PAD)

    # Layer 1: Linear(CHW + classes, 1024), contraction split to stay aligned.
    h = jnp.dot(img, w1i_ref[...], preferred_element_type=jnp.float32)
    h = h + jnp.dot(emb, w1e_ref[...], preferred_element_type=jnp.float32)
    h = leaky_relu(h + b1_ref[...])

    # Layer 2: Linear(1024, 512) + Dropout(identity) + LeakyReLU
    h = jnp.dot(h.astype(jnp.bfloat16), w2_ref[...],
                preferred_element_type=jnp.float32)
    h = leaky_relu(h + b2_ref[...])

    # Layer 3: Linear(512, 256) + Dropout(identity) + LeakyReLU
    h = jnp.dot(h.astype(jnp.bfloat16), w3_ref[...],
                preferred_element_type=jnp.float32)
    h = leaky_relu(h + b3_ref[...])

    # Layers 4+5 folded: Linear(256,128) o Linear(128,1) == Linear(256,1)
    h = jnp.dot(h.astype(jnp.bfloat16), w45_ref[...],
                preferred_element_type=jnp.float32)
    h = h + b45_ref[...]

    # Sigmoid
    out_ref[...] = jax.nn.sigmoid(h)


# ---------------------------------------------------------------------------
# Parameter construction (deterministic, mimics PyTorch default init)
# ---------------------------------------------------------------------------
def init_linear(key, fan_in, fan_out):
    kw, kb = jax.random.split(key)
    bound = 1.0 / math.sqrt(fan_in)
    # stored as (in, out) so the kernel can compute x @ W directly
    w = jax.random.uniform(kw, (fan_in, fan_out), jnp.float32, -bound, bound)
    b = jax.random.uniform(kb, (1, fan_out), jnp.float32, -bound, bound)
    return w, b


def make_discriminator_params(key, classes, channels, img_size):
    chw = channels * img_size * img_size
    d_in = classes + chw
    keys = jax.random.split(key, 6)
    # nn.Embedding(classes, classes) ~ N(0, 1)
    emb = jax.random.normal(keys[0], (classes, classes), jnp.float32)
    w1, b1 = init_linear(keys[1], d_in, 1024)
    w2, b2 = init_linear(keys[2], 1024, 512)
    w3, b3 = init_linear(keys[3], 512, 256)
    w4, b4 = init_linear(keys[4], 256, 128)
    w5, b5 = init_linear(keys[5], 128, 1)
    # torch.cat((image.view(B,-1), embedding), -1): rows [0, chw) of W1 act on
    # the flattened image, rows [chw, chw+classes) on the label embedding.
    w1_img, w1_emb = w1[:chw], w1[chw:]
    bf16 = jnp.bfloat16
    return dict(
        emb=emb,
        # weights streamed in bf16 (halves HBM bytes); biases kept f32.
        w1_img=w1_img.astype(bf16), w1_emb=w1_emb.astype(bf16), b1=b1,
        w2=w2.astype(bf16), b2=b2,
        w3=w3.astype(bf16), b3=b3,
        w4=w4.astype(bf16), b4=b4,
        w5=w5.astype(bf16), b5=b5,
    )


# ---------------------------------------------------------------------------
# Wrapper: embedding lookup + flatten (glue), fold 4+5, pad, fused Pallas MLP
# ---------------------------------------------------------------------------
@functools.partial(jax.jit, static_argnames=("block_b",))
def discriminator_forward(params, image, label, block_b=256):
    # block_b: batch tile. 256 fills the v6e/v7x 256x256 MXU; 128 is enough on
    # v5e. At tiny demo batches the tile collapses to round_up(B, 8).
    B = image.shape[0]
    chw = image.shape[1] * image.shape[2] * image.shape[3]
    classes = params["emb"].shape[0]

    # ---- glue: flatten NCHW image + embedding lookup (gather) --------------
    img_flat = image.reshape(B, chw).astype(jnp.float32)
    emb = jnp.take(params["emb"], label, axis=0)           # (B, classes)

    # ---- exact fold of layers 4 and 5 (no activation between them) ---------
    w4 = params["w4"].astype(jnp.float32)
    w5 = params["w5"].astype(jnp.float32)
    w45 = jnp.dot(w4, w5).astype(jnp.bfloat16)              # (256, 1)
    b45 = jnp.dot(params["b4"], w5) + params["b5"]          # (1, 1) f32

    # ---- lane-align the tiny embedding branch (zero padding is exact) ------
    emb_pad = _round_up(classes, 128)
    emb = jnp.pad(emb, ((0, 0), (0, emb_pad - classes)))
    w1_emb = jnp.pad(params["w1_emb"], ((0, emb_pad - classes), (0, 0)))

    # ---- pad batch to a multiple of 8 sublanes; tile it over a grid ---------
    tb = min(block_b, _round_up(B, 8))
    padded_b = _round_up(B, tb)
    if padded_b != B:
        img_flat = jnp.pad(img_flat, ((0, padded_b - B), (0, 0)))
        emb = jnp.pad(emb, ((0, padded_b - B), (0, 0)))

    def row_spec(n):          # batch-tiled operands
        return pl.BlockSpec((tb, n), lambda i: (i, 0))

    def resident_spec(shape):  # weights/biases: constant block -> stay in VMEM
        return pl.BlockSpec(shape, lambda i: (0, 0))

    operands = (img_flat, emb,
                params["w1_img"], w1_emb, params["b1"],
                params["w2"], params["b2"],
                params["w3"], params["b3"],
                w45, b45)

    in_specs = [
        row_spec(chw),                     # img_flat
        row_spec(emb_pad),                 # emb
        resident_spec((chw, 1024)),        # W1_img
        resident_spec((emb_pad, 1024)),    # W1_emb
        resident_spec((1, 1024)),          # b1
        resident_spec((1024, 512)),        # W2
        resident_spec((1, 512)),           # b2
        resident_spec((512, 256)),         # W3
        resident_spec((1, 256)),           # b3
        resident_spec((256, 1)),           # W45
        resident_spec((1, 1)),             # b45
    ]

    out = pl.pallas_call(
        discriminator_mlp_kernel,
        out_shape=jax.ShapeDtypeStruct((padded_b, 1), jnp.float32),
        grid=(padded_b // tb,),
        in_specs=in_specs,
        out_specs=pl.BlockSpec((tb, 1), lambda i: (i, 0)),
        compiler_params=pltpu.CompilerParams(
            dimension_semantics=("parallel",),
            vmem_limit_bytes=32 * 1024 * 1024,
        ),
    )(*operands)

    return out[:B]


# ---------------------------------------------------------------------------
# Pure-JAX reference (same bf16 weights, f32 activations) for a sanity check
# ---------------------------------------------------------------------------
def discriminator_reference(params, image, label):
    B = image.shape[0]
    img_flat = image.reshape(B, -1).astype(jnp.float32)
    emb = jnp.take(params["emb"], label, axis=0)
    x = jnp.concatenate([img_flat, emb], axis=-1)

    def lrelu(h):
        return jnp.where(h >= 0, h, 0.2 * h)

    w1 = jnp.concatenate([params["w1_img"], params["w1_emb"]],
                         axis=0).astype(jnp.float32)
    h = lrelu(x @ w1 + params["b1"])
    h = lrelu(h @ params["w2"].astype(jnp.float32) + params["b2"])
    h = lrelu(h @ params["w3"].astype(jnp.float32) + params["b3"])
    h = h @ params["w4"].astype(jnp.float32) + params["b4"]
    h = h @ params["w5"].astype(jnp.float32) + params["b5"]
    return jax.nn.sigmoid(h)


# ---------------------------------------------------------------------------
# Demo
# ---------------------------------------------------------------------------
if __name__ == "__main__":
    classes, channels, img_size, latent_dim = 10, 4, 16, 32  # latent_dim unused in D.forward
    B = 2

    key = jax.random.PRNGKey(0)
    k_param, k_img, k_lbl = jax.random.split(key, 3)

    params = make_discriminator_params(k_param, classes, channels, img_size)
    image = jax.random.normal(k_img, (B, channels, img_size, img_size), jnp.float32)
    label = jax.random.randint(k_lbl, (B,), 0, classes, jnp.int32)

    out = discriminator_forward(params, image, label)
    out = jax.block_until_ready(out)

    assert out.shape == (B, 1)
    assert bool(jnp.all((out >= 0.0) & (out <= 1.0)))

    ref = discriminator_reference(params, image, label)
    assert bool(jnp.allclose(out, ref, atol=5e-2, rtol=0.0)), (out, ref)

    print("KERNEL_OK")
</pallas_src>

<mosaic_0001>
module attributes {stable_mosaic.version = 11 : i64} {
  func.func @discriminator_mlp_kernel(%arg0: i32, %arg1: memref<8x1024xf32, #tpu.memory_space<vmem>>, %arg2: memref<8x128xf32, #tpu.memory_space<vmem>>, %arg3: memref<1024x1024xbf16, #tpu.memory_space<vmem>>, %arg4: memref<128x1024xbf16, #tpu.memory_space<vmem>>, %arg5: memref<1x1024xf32, #tpu.memory_space<vmem>>, %arg6: memref<1024x512xbf16, #tpu.memory_space<vmem>>, %arg7: memref<1x512xf32, #tpu.memory_space<vmem>>, %arg8: memref<512x256xbf16, #tpu.memory_space<vmem>>, %arg9: memref<1x256xf32, #tpu.memory_space<vmem>>, %arg10: memref<256x1xbf16, #tpu.memory_space<vmem>>, %arg11: memref<1x1xf32, #tpu.memory_space<vmem>>, %arg12: memref<8x1xf32, #tpu.memory_space<vmem>>) attributes {dimension_semantics = [#tpu.dimension_semantics<parallel>], iteration_bounds = array<i64: 1>, scalar_prefetch = 0 : i64, scratch_operands = 0 : i64, tpu.core_type = #tpu.core_type<tc>, window_params = [{transform_indices = @transform_0, window_bounds = array<i64: 8, 1024>}, {transform_indices = @transform_1, window_bounds = array<i64: 8, 128>}, {pipeline_mode = #tpu.pipeline_mode<synchronous>, transform_indices = @transform_2, window_bounds = array<i64: 1024, 1024>}, {pipeline_mode = #tpu.pipeline_mode<synchronous>, transform_indices = @transform_3, window_bounds = array<i64: 128, 1024>}, {pipeline_mode = #tpu.pipeline_mode<synchronous>, transform_indices = @transform_4, window_bounds = array<i64: 1, 1024>}, {pipeline_mode = #tpu.pipeline_mode<synchronous>, transform_indices = @transform_5, window_bounds = array<i64: 1024, 512>}, {pipeline_mode = #tpu.pipeline_mode<synchronous>, transform_indices = @transform_6, window_bounds = array<i64: 1, 512>}, {pipeline_mode = #tpu.pipeline_mode<synchronous>, transform_indices = @transform_7, window_bounds = array<i64: 512, 256>}, {pipeline_mode = #tpu.pipeline_mode<synchronous>, transform_indices = @transform_8, window_bounds = array<i64: 1, 256>}, {pipeline_mode = #tpu.pipeline_mode<synchronous>, transform_indices = @transform_9, window_bounds = array<i64: 256, 1>}, {pipeline_mode = #tpu.pipeline_mode<synchronous>, transform_indices = @transform_10, window_bounds = array<i64: 1, 1>}, {transform_indices = @transform_11, window_bounds = array<i64: 8, 1>}]} {
    %c0 = arith.constant 0 : index
    %c0_0 = arith.constant 0 : index
    %0 = vector.load %arg1[%c0, %c0_0] : memref<8x1024xf32, #tpu.memory_space<vmem>>, vector<8x1024xf32>
    %1 = arith.truncf %0 : vector<8x1024xf32> to vector<8x1024xbf16>
    %c0_1 = arith.constant 0 : index
    %c0_2 = arith.constant 0 : index
    %2 = vector.load %arg2[%c0_1, %c0_2] : memref<8x128xf32, #tpu.memory_space<vmem>>, vector<8x128xf32>
    %3 = arith.truncf %2 : vector<8x128xf32> to vector<8x128xbf16>
    %c0_3 = arith.constant 0 : index
    %c0_4 = arith.constant 0 : index
    %4 = vector.load %arg3[%c0_3, %c0_4] : memref<1024x1024xbf16, #tpu.memory_space<vmem>>, vector<1024x1024xbf16>
    %cst = arith.constant dense<0.000000e+00> : vector<8x1024xf32>
    %5 = tpu.matmul %1, %4, %cst {dimension_numbers = #tpu.dot_dimension_numbers<[1], [0], [0], [1], [0, 0, 1, 1], [], []>} : vector<8x1024xbf16>, vector<1024x1024xbf16>, vector<8x1024xf32> -> vector<8x1024xf32>
    %c0_5 = arith.constant 0 : index
    %c0_6 = arith.constant 0 : index
    %6 = vector.load %arg4[%c0_5, %c0_6] : memref<128x1024xbf16, #tpu.memory_space<vmem>>, vector<128x1024xbf16>
    %cst_7 = arith.constant dense<0.000000e+00> : vector<8x1024xf32>
    %7 = tpu.matmul %3, %6, %cst_7 {dimension_numbers = #tpu.dot_dimension_numbers<[1], [0], [0], [1], [0, 0, 1, 1], [], []>} : vector<8x128xbf16>, vector<128x1024xbf16>, vector<8x1024xf32> -> vector<8x1024xf32>
    %8 = arith.addf %5, %7 : vector<8x1024xf32>
    %c0_8 = arith.constant 0 : index
    %c0_9 = arith.constant 0 : index
    %9 = vector.load %arg5[%c0_8, %c0_9] : memref<1x1024xf32, #tpu.memory_space<vmem>>, vector<1x1024xf32>
    %10 = vector.broadcast %9 : vector<1x1024xf32> to vector<8x1024xf32>
    %11 = arith.addf %8, %10 : vector<8x1024xf32>
    %cst_10 = arith.constant 0.000000e+00 : f32
    %12 = vector.broadcast %cst_10 : f32 to vector<8x1024xf32>
    %13 = arith.cmpf oge, %11, %12 : vector<8x1024xf32>
    %cst_11 = arith.constant 2.000000e-01 : f32
    %14 = vector.broadcast %cst_11 : f32 to vector<8x1024xf32>
    %15 = arith.mulf %14, %11 : vector<8x1024xf32>
    %16 = arith.select %13, %11, %15 : vector<8x1024xi1>, vector<8x1024xf32>
    %17 = arith.truncf %16 : vector<8x1024xf32> to vector<8x1024xbf16>
    %c0_12 = arith.constant 0 : index
    %c0_13 = arith.constant 0 : index
    %18 = vector.load %arg6[%c0_12, %c0_13] : memref<1024x512xbf16, #tpu.memory_space<vmem>>, vector<1024x512xbf16>
    %cst_14 = arith.constant dense<0.000000e+00> : vector<8x512xf32>
    %19 = tpu.matmul %17, %18, %cst_14 {dimension_numbers = #tpu.dot_dimension_numbers<[1], [0], [0], [1], [0, 0, 1, 1], [], []>} : vector<8x1024xbf16>, vector<1024x512xbf16>, vector<8x512xf32> -> vector<8x512xf32>
    %c0_15 = arith.constant 0 : index
    %c0_16 = arith.constant 0 : index
    %20 = vector.load %arg7[%c0_15, %c0_16] : memref<1x512xf32, #tpu.memory_space<vmem>>, vector<1x512xf32>
    %21 = vector.broadcast %20 : vector<1x512xf32> to vector<8x512xf32>
    %22 = arith.addf %19, %21 : vector<8x512xf32>
    %cst_17 = arith.constant 0.000000e+00 : f32
    %23 = vector.broadcast %cst_17 : f32 to vector<8x512xf32>
    %24 = arith.cmpf oge, %22, %23 : vector<8x512xf32>
    %cst_18 = arith.constant 2.000000e-01 : f32
    %25 = vector.broadcast %cst_18 : f32 to vector<8x512xf32>
    %26 = arith.mulf %25, %22 : vector<8x512xf32>
    %27 = arith.select %24, %22, %26 : vector<8x512xi1>, vector<8x512xf32>
    %28 = arith.truncf %27 : vector<8x512xf32> to vector<8x512xbf16>
    %c0_19 = arith.constant 0 : index
    %c0_20 = arith.constant 0 : index
    %29 = vector.load %arg8[%c0_19, %c0_20] : memref<512x256xbf16, #tpu.memory_space<vmem>>, vector<512x256xbf16>
    %cst_21 = arith.constant dense<0.000000e+00> : vector<8x256xf32>
    %30 = tpu.matmul %28, %29, %cst_21 {dimension_numbers = #tpu.dot_dimension_numbers<[1], [0], [0], [1], [0, 0, 1, 1], [], []>} : vector<8x512xbf16>, vector<512x256xbf16>, vector<8x256xf32> -> vector<8x256xf32>
    %c0_22 = arith.constant 0 : index
    %c0_23 = arith.constant 0 : index
    %31 = vector.load %arg9[%c0_22, %c0_23] : memref<1x256xf32, #tpu.memory_space<vmem>>, vector<1x256xf32>
    %32 = vector.broadcast %31 : vector<1x256xf32> to vector<8x256xf32>
    %33 = arith.addf %30, %32 : vector<8x256xf32>
    %cst_24 = arith.constant 0.000000e+00 : f32
    %34 = vector.broadcast %cst_24 : f32 to vector<8x256xf32>
    %35 = arith.cmpf oge, %33, %34 : vector<8x256xf32>
    %cst_25 = arith.constant 2.000000e-01 : f32
    %36 = vector.broadcast %cst_25 : f32 to vector<8x256xf32>
    %37 = arith.mulf %36, %33 : vector<8x256xf32>
    %38 = arith.select %35, %33, %37 : vector<8x256xi1>, vector<8x256xf32>
    %39 = arith.truncf %38 : vector<8x256xf32> to vector<8x256xbf16>
    %c0_26 = arith.constant 0 : index
    %c0_27 = arith.constant 0 : index
    %40 = vector.load %arg10[%c0_26, %c0_27] : memref<256x1xbf16, #tpu.memory_space<vmem>>, vector<256x1xbf16>
    %cst_28 = arith.constant dense<0.000000e+00> : vector<8x1xf32>
    %41 = tpu.matmul %39, %40, %cst_28 {dimension_numbers = #tpu.dot_dimension_numbers<[1], [0], [0], [1], [0, 0, 1, 1], [], []>} : vector<8x256xbf16>, vector<256x1xbf16>, vector<8x1xf32> -> vector<8x1xf32>
    %c0_29 = arith.constant 0 : index
    %c0_30 = arith.constant 0 : index
    %42 = vector.load %arg11[%c0_29, %c0_30] : memref<1x1xf32, #tpu.memory_space<vmem>>, vector<1x1xf32>
    %43 = vector.broadcast %42 : vector<1x1xf32> to vector<8x1xf32>
    %44 = arith.addf %41, %43 : vector<8x1xf32>
    %45 = arith.negf %44 : vector<8x1xf32>
    %46 = math.exp %45 : vector<8x1xf32>
    %cst_31 = arith.constant 1.000000e+00 : f32
    %47 = vector.broadcast %cst_31 : f32 to vector<8x1xf32>
    %48 = arith.addf %47, %46 : vector<8x1xf32>
    %49 = arith.divf %47, %48 : vector<8x1xf32>
    %c0_32 = arith.constant 0 : index
    %c0_33 = arith.constant 0 : index
    %50 = vector.load %arg12[%c0_32, %c0_33] : memref<8x1xf32, #tpu.memory_space<vmem>>, vector<8x1xf32>
    tpu.vector_store %arg12[%c0_32, %c0_33], %49 {strides = array<i32>} : memref<8x1xf32, #tpu.memory_space<vmem>>, vector<8x1xf32>,
    return
  }
  func.func @transform_0(%arg0: i32) -> (i32, i32) {
    %c0_i32 = arith.constant 0 : i32
    %c0_i32_0 = arith.constant 0 : i32
    return %arg0, %c0_i32 : i32, i32
  }
  func.func @transform_1(%arg0: i32) -> (i32, i32) {
    %c0_i32 = arith.constant 0 : i32
    %c0_i32_0 = arith.constant 0 : i32
    return %arg0, %c0_i32 : i32, i32
  }
  func.func @transform_2(%arg0: i32) -> (i32, i32) {
    %c0_i32 = arith.constant 0 : i32
    %c0_i32_0 = arith.constant 0 : i32
    %c0_i32_1 = arith.constant 0 : i32
    return %c0_i32, %c0_i32_0 : i32, i32
  }
  func.func @transform_3(%arg0: i32) -> (i32, i32) {
    %c0_i32 = arith.constant 0 : i32
    %c0_i32_0 = arith.constant 0 : i32
    %c0_i32_1 = arith.constant 0 : i32
    return %c0_i32, %c0_i32_0 : i32, i32
  }
  func.func @transform_4(%arg0: i32) -> (i32, i32) {
    %c0_i32 = arith.constant 0 : i32
    %c0_i32_0 = arith.constant 0 : i32
    %c0_i32_1 = arith.constant 0 : i32
    return %c0_i32, %c0_i32_0 : i32, i32
  }
  func.func @transform_5(%arg0: i32) -> (i32, i32) {
    %c0_i32 = arith.constant 0 : i32
    %c0_i32_0 = arith.constant 0 : i32
    %c0_i32_1 = arith.constant 0 : i32
    return %c0_i32, %c0_i32_0 : i32, i32
  }
  func.func @transform_6(%arg0: i32) -> (i32, i32) {
    %c0_i32 = arith.constant 0 : i32
    %c0_i32_0 = arith.constant 0 : i32
    %c0_i32_1 = arith.constant 0 : i32
    return %c0_i32, %c0_i32_0 : i32, i32
  }
  func.func @transform_7(%arg0: i32) -> (i32, i32) {
    %c0_i32 = arith.constant 0 : i32
    %c0_i32_0 = arith.constant 0 : i32
    %c0_i32_1 = arith.constant 0 : i32
    return %c0_i32, %c0_i32_0 : i32, i32
  }
  func.func @transform_8(%arg0: i32) -> (i32, i32) {
    %c0_i32 = arith.constant 0 : i32
    %c0_i32_0 = arith.constant 0 : i32
    %c0_i32_1 = arith.constant 0 : i32
    return %c0_i32, %c0_i32_0 : i32, i32
  }
  func.func @transform_9(%arg0: i32) -> (i32, i32) {
    %c0_i32 = arith.constant 0 : i32
    %c0_i32_0 = arith.constant 0 : i32
    %c0_i32_1 = arith.constant 0 : i32
    return %c0_i32, %c0_i32_0 : i32, i32
  }
  func.func @transform_10(%arg0: i32) -> (i32, i32) {
    %c0_i32 = arith.constant 0 : i32
    %c0_i32_0 = arith.constant 0 : i32
    %c0_i32_1 = arith.constant 0 : i32
    return %c0_i32, %c0_i32_0 : i32, i32
  }
  func.func @transform_11(%arg0: i32) -> (i32, i32) {
    %c0_i32 = arith.constant 0 : i32
    %c0_i32_0 = arith.constant 0 : i32
    return %arg0, %c0_i32 : i32, i32
  }
}

</mosaic_0001>

<bundles_post_ra>
// kernel: discriminator_forward.1
= control target key start
LH: loop header
LB: loop body
LE: loop exit
PB: predicated region body
PF: predicated region fallthrough
CT: control target
= control target key end

     0   :  { %s9333_s0 = inlined_call_operand.vmem [shape: f32[8,1024], index: 0, kind: input, shape index: {}]   ;;  %s9334_s1 = inlined_call_operand.vmem [shape: f32[8,128], index: 1, kind: input, shape index: {}]   ;;  %s9335_s2 = inlined_call_operand.hbm [shape: bf16[1024,1024], index: 2, kind: input, shape index: {}]   ;;  %s9336_s3 = inlined_call_operand.vmem [shape: bf16[128,1024], index: 3, kind: input, shape index: {}]   ;;  %s9337_s4 = inlined_call_operand.hbm [shape: f32[1,1024], index: 4, kind: input, shape index: {}]   ;;  %s9338_s5 = inlined_call_operand.hbm [shape: bf16[1024,512], index: 5, kind: input, shape index: {}]   ;;  %s9339_s6 = inlined_call_operand.hbm [shape: f32[1,512], index: 6, kind: input, shape index: {}]   ;;  %s9340_s7 = inlined_call_operand.hbm [shape: bf16[512,256], index: 7, kind: input, shape index: {}]   ;;  %s9341_s8 = inlined_call_operand.hbm [shape: f32[1,256], index: 8, kind: input, shape index: {}]   ;;  %s9342_s9 = inlined_call_operand.vmem [shape: bf16[256,1], index: 9, kind: input, shape index: {}]   ;;  %s9343_s10 = inlined_call_operand.<no memory space> [shape: f32[1,1], index: 10, kind: input, shape index: {}]   ;;  %s9344_s11 = inlined_call_operand.vmem [shape: f32[8,1], index: 11, kind: output, shape index: {}]  }
   0x1   :  { %v16_v0 = vstv %s9343_s10 }
   0x2   :  { %17 = vst [vmem:[#allocation2] sm:$0x1] %v16_v0 }
   0x3   :  { %18 = vsyncpa [#allocation4], 0 }
   0x4   :  { %19 = vsyncpa [#allocation6], 0 }
   0x5   :  { %20 = vsyncpa [#allocation9], 0 }
   0x6   :  { %21 = vsyncpa [#allocation12], 0  ;;  %s8696_s19 = smov [#allocation5]   ;;  %s8697_s21 = smov [#allocation8]  }
   0x7   :  { %s46_s20 = sshll.u32 %s8696_s19, 4  ;;  %s68_s22 = sshll.u32 %s8697_s21, 4  ;;  %s47_s20 = int_to_ptr.vmem [resolvable:$true] %s46_s20  ;;  %s69_s22 = int_to_ptr.vmem [resolvable:$true] %s68_s22 }
   0x8   :  { %s8556_s25 = scalar_lea.hbm %s9337_s4, 128 }
   0x9   :  { %p8557_p0 = scmp.ne.s32.totalorder %s9337_s4, %s8556_s25  ;;  %p8560_p1 = scmp.lt.u32.totalorder %s8556_s25, %s9337_s4 }
   0xb   :  { %p8562_p2 = pnand %p8560_p1, %p8557_p0 }
   0xd   :  { %8565 = shalt.err (!%p8562_p2)
}
   0xe   :  { %s8566_s29 = scalar_lea.vmem %s47_s20, 128  ;;  %p8571_p4 = scmp.lt.s32.totalorder %s47_s20, %s47_s20 }
   0xf   :  { %p8567_p3 = scmp.ne.s32.totalorder %s47_s20, %s8566_s29  ;;  %p8572_p5 = scmp.lt.s32.totalorder %s8566_s29, %s8566_s29 }
  0x11   :  { %p8573_p6 = por %p8572_p5, %p8571_p4 }
  0x13   :  { %p8574_p7 = pnand %p8573_p6, %p8567_p3 }
  0x15   :  { %8577 = shalt.err (!%p8574_p7)
}
  0x16   :  { %49 = dma.hbm_to_vmem [thread:$0]  %s9337_s4, 128, %s47_s20, [#allocation6]  }
  0x17   :  { %s8578_s15 = scalar_lea.hbm %s9339_s6, 64 }
  0x18   :  { %p8579_p8 = scmp.ne.s32.totalorder %s9339_s6, %s8578_s15  ;;  %p8582_p9 = scmp.lt.u32.totalorder %s8578_s15, %s9339_s6 }
  0x1a   :  { %p8584_p10 = pnand %p8582_p9, %p8579_p8 }
  0x1c   :  { %8587 = shalt.err (!%p8584_p10)
}
  0x1d   :  { %s8588_s21 = scalar_lea.vmem %s69_s22, 64  ;;  %p8593_p12 = scmp.lt.s32.totalorder %s69_s22, %s69_s22 }
  0x1e   :  { %p8589_p11 = scmp.ne.s32.totalorder %s69_s22, %s8588_s21  ;;  %p8594_p13 = scmp.lt.s32.totalorder %s8588_s21, %s8588_s21 }
  0x20   :  { %p8595_p0 = por %p8594_p13, %p8593_p12 }
  0x22   :  { %p8596_p1 = pnand %p8595_p0, %p8589_p11 }
  0x24   :  { %8599 = shalt.err (!%p8596_p1)
}
  0x25   :  { %71 = dma.hbm_to_vmem [thread:$0]  %s9339_s6, 64, %s69_s22, [#allocation9]  }
  0x26   :  { %s8698_s23 = smov [#allocation3]   ;;  %s8600_s27 = scalar_lea.hbm %s9335_s2, 65536 }
  0x27   :  { %s31_s24 = sshll.u32 %s8698_s23, 4  ;;  %p8601_p2 = scmp.ne.s32.totalorder %s9335_s2, %s8600_s27  ;;  %s32_s24 = int_to_ptr.vmem [resolvable:$true] %s31_s24 }
  0x28   :  { %p8604_p3 = scmp.lt.u32.totalorder %s8600_s27, %s9335_s2 }
  0x2a   :  { %p8606_p4 = pnand %p8604_p3, %p8601_p2 }
  0x2c   :  { %8609 = shalt.err (!%p8606_p4)
}
  0x2d   :  { %s8610_s12 = scalar_lea.vmem %s32_s24, 65536  ;;  %p8615_p6 = scmp.lt.s32.totalorder %s32_s24, %s32_s24 }
  0x2e   :  { %p8611_p5 = scmp.ne.s32.totalorder %s32_s24, %s8610_s12  ;;  %p8616_p7 = scmp.lt.s32.totalorder %s8610_s12, %s8610_s12 }
  0x30   :  { %p8617_p8 = por %p8616_p7, %p8615_p6 }
  0x32   :  { %p8618_p9 = pnand %p8617_p8, %p8611_p5 }
  0x34   :  { %8621 = shalt.err (!%p8618_p9)
}
  0x35   :  { %s8699_s6 = smov 512   ;;  %s8700_s22 = smov 32  }
  0x36   :  { %37 = dma.hbm_to_vmem [thread:$0]  %s9335_s2, 65536, %s32_s24, [#allocation4], %s8699_s6, %s8699_s6, %s8700_s22  }
  0x37   :  { %s8701_s15 = smov [#allocation7]   ;;  %s8622_s19 = scalar_lea.hbm %s9338_s5, 32768 }
  0x38   :  { %s55_s16 = sshll.u32 %s8701_s15, 4  ;;  %p8623_p10 = scmp.ne.s32.totalorder %s9338_s5, %s8622_s19  ;;  %s56_s16 = int_to_ptr.vmem [resolvable:$true] %s55_s16 }
  0x39   :  { %p8626_p11 = scmp.lt.u32.totalorder %s8622_s19, %s9338_s5 }
  0x3b   :  { %p8628_p12 = pnand %p8626_p11, %p8623_p10 }
  0x3d   :  { %8631 = shalt.err (!%p8628_p12)
}
  0x3e   :  { %s8632_s25 = scalar_lea.vmem %s56_s16, 32768  ;;  %p8637_p0 = scmp.lt.s32.totalorder %s56_s16, %s56_s16 }
  0x3f   :  { %p8633_p13 = scmp.ne.s32.totalorder %s56_s16, %s8632_s25  ;;  %p8638_p1 = scmp.lt.s32.totalorder %s8632_s25, %s8632_s25 }
  0x41   :  { %p8639_p2 = por %p8638_p1, %p8637_p0 }
  0x43   :  { %p8640_p3 = pnand %p8639_p2, %p8633_p13 }
  0x45   :  { %8643 = shalt.err (!%p8640_p3)
}
  0x46   :  { %s8702_s2 = smov 256   ;;  %s8703_s24 = smov 16  }
  0x47   :  { %61 = dma.hbm_to_vmem [thread:$0]  %s9338_s5, 32768, %s56_s16, [#allocation6], %s8702_s2, %s8702_s2, %s8703_s24  }
  0x48   :  { %s8704_s10 = smov [#allocation10]   ;;  %s8644_s12 = scalar_lea.hbm %s9340_s7, 8192 }
  0x49   :  { %s77_s28 = sshll.u32 %s8704_s10, 4  ;;  %p8645_p4 = scmp.ne.s32.totalorder %s9340_s7, %s8644_s12  ;;  %s78_s28 = int_to_ptr.vmem [resolvable:$true] %s77_s28 }
  0x4a   :  { %p8648_p5 = scmp.lt.u32.totalorder %s8644_s12, %s9340_s7 }
  0x4c   :  { %p8650_p6 = pnand %p8648_p5, %p8645_p4 }
  0x4e   :  { %8653 = shalt.err (!%p8650_p6)
}
  0x4f   :  { %s8654_s15 = scalar_lea.vmem %s78_s28, 8192  ;;  %p8659_p8 = scmp.lt.s32.totalorder %s78_s28, %s78_s28 }
  0x50   :  { %p8655_p7 = scmp.ne.s32.totalorder %s78_s28, %s8654_s15  ;;  %p8660_p9 = scmp.lt.s32.totalorder %s8654_s15, %s8654_s15 }
  0x52   :  { %p8661_p10 = por %p8660_p9, %p8659_p8 }
  0x54   :  { %p8662_p11 = pnand %p8661_p10, %p8655_p7 }
  0x56   :  { %8665 = shalt.err (!%p8662_p11)
}
  0x57   :  { %s8705_s5 = smov 128   ;;  %s8706_s16 = smov 8  }
  0x58   :  { %83 = dma.hbm_to_vmem [thread:$0]  %s9340_s7, 8192, %s78_s28, [#allocation9], %s8705_s5, %s8705_s5, %s8706_s16  }
  0x59   :  { %s8707_s19 = smov [#allocation11]   ;;  %s8666_s23 = scalar_lea.hbm %s9341_s8, 32 }
  0x5a   :  { %s90_s21 = sshll.u32 %s8707_s19, 4  ;;  %p8667_p12 = scmp.ne.s32.totalorder %s9341_s8, %s8666_s23  ;;  %s91_s21 = int_to_ptr.vmem [resolvable:$true] %s90_s21 }
  0x5b   :  { %p8670_p13 = scmp.lt.u32.totalorder %s8666_s23, %s9341_s8 }
  0x5d   :  { %p8672_p0 = pnand %p8670_p13, %p8667_p12 }
  0x5f   :  { %8675 = shalt.err (!%p8672_p0)
}
  0x60   :  { %s8676_s27 = scalar_lea.vmem %s91_s21, 32  ;;  %p8681_p2 = scmp.lt.s32.totalorder %s91_s21, %s91_s21 }
  0x61   :  { %p8677_p1 = scmp.ne.s32.totalorder %s91_s21, %s8676_s27  ;;  %p8682_p3 = scmp.lt.s32.totalorder %s8676_s27, %s8676_s27 }
  0x63   :  { %p8683_p4 = por %p8682_p3, %p8681_p2 }
  0x65   :  { %p8684_p5 = pnand %p8683_p4, %p8677_p1 }
  0x67   :  { %8687 = shalt.err (!%p8684_p5)
}
  0x68   :  { %93 = dma.hbm_to_vmem [thread:$0]  %s9341_s8, 32, %s91_s21, [#allocation12]  }
  0x69   :  { %8688 = dma.done.wait [#allocation4], 65536  }
  0x6a   :  { %8689 = vsyncadd [#allocation4], 4294901760 }
  0x6b   :  { %8690 = dma.done.wait [#allocation6], 32896  }
  0x6c   :  { %8691 = vsyncadd [#allocation6], 4294934400 }
  0x6d   :  { %8692 = dma.done.wait [#allocation9], 8256  }
  0x6e   :  { %8693 = vsyncadd [#allocation9], 4294959040 }
  0x6f   :  { %8694 = dma.done.wait [#allocation12], 32  }
  0x70   :  { %8695 = vsyncadd [#allocation12], 4294967264  ;;  %v8708_v1 = vmov 0   ;;  %v647_v2 = vld [vmem:[%s9336_s3] sm:$0xff]  ;;  %v649_v4 = vld [vmem:[%s9336_s3 + $0x10] sm:$0xff]  ;;  %vm7062_vm14 = vcmask 7168  }
  0x71   :  { %1063 = vmatprep.mubr.bf16.mxu1 %v8708_v1  ;;  %1145 = vmatprep.mubr.bf16.mxu0 %v8708_v1  ;;  %v651_v3 = vld [vmem:[%s9336_s3 + $0x20] sm:$0xff]  ;;  %v653_v6 = vld [vmem:[%s9336_s3 + $0x30] sm:$0xff]  ;;  %v648_v0 = vld [vmem:[%s9336_s3 + $0x8] sm:$0xff] }
  0x72   :  { %v7073_v5 = vcombine.high %v647_v2, %v651_v3  ;;  %v7072_v7 = vcombine.low %v647_v2, %v651_v3  ;;  %v655_v8 = vld [vmem:[%s9336_s3 + $0x40] sm:$0xff]  ;;  %v7077_v10 = vcombine.high %v649_v4, %v653_v6  ;;  %v7076_v11 = vcombine.low %v649_v4, %v653_v6  ;;  %v657_v13 = vld [vmem:[%s9336_s3 + $0x50] sm:$0xff]  ;;  %v652_v2 = vld [vmem:[%s9336_s3 + $0x28] sm:$0xff] }
  0x73   :  { %v659_v9 = vld [vmem:[%s9336_s3 + $0x60] sm:$0xff]  ;;  %v661_v14 = vld [vmem:[%s9336_s3 + $0x70] sm:$0xff] }
  0x74   :  { %v7081_v12 = vcombine.high %v655_v8, %v659_v9  ;;  %v663_v15 = vld [vmem:[%s9336_s3 + $0x80] sm:$0xff]  ;;  %1031 = vmatprep.subr.bf16.mxu1 %v7073_v5  ;;  %v7085_v16 = vcombine.high %v657_v13, %v661_v14  ;;  %v665_v18 = vld [vmem:[%s9336_s3 + $0x90] sm:$0xff]  ;;  %1113 = vmatprep.subr.bf16.mxu0 %v7077_v10  ;;  %v7080_v20 = vcombine.low %v655_v8, %v659_v9  ;;  %v656_v10 = vld [vmem:[%s9336_s3 + $0x48] sm:$0xff] }
  0x75   :  { %v667_v17 = vld [vmem:[%s9336_s3 + $0xa0] sm:$0xff]  ;;  %v669_v19 = vld [vmem:[%s9336_s3 + $0xb0] sm:$0xff]  ;;  %1032 = vmatpush1.bf16.msra.mxu1 %v7072_v7  ;;  %1114 = vmatpush1.bf16.msra.mxu0 %v7076_v11  ;;  %v7084_v21 = vcombine.low %v657_v13, %v661_v14  ;;  %v7075_v8 = vcombine.high %v648_v0, %v652_v2  ;;  %v660_v11 = vld [vmem:[%s9336_s3 + $0x68] sm:$0xff] }
  0x76   :  { %1033 = vmatprep.subr.bf16.mxu1 %v7081_v12  ;;  %v7089_v22 = vcombine.high %v663_v15, %v667_v17  ;;  %1115 = vmatprep.subr.bf16.mxu0 %v7085_v16  ;;  %v7093_v23 = vcombine.high %v665_v18, %v669_v19  ;;  %v671_v24 = vld [vmem:[%s9336_s3 + $0xc0] sm:$0xff]  ;;  %v673_v26 = vld [vmem:[%s9336_s3 + $0xd0] sm:$0xff]  ;;  %v7088_v28 = vcombine.low %v663_v15, %v667_v17  ;;  %v118_v16 = vld [vmem:[%s9333_s0 + $0x8] sm:$0xff] }
  0x77   :  { %v675_v25 = vld [vmem:[%s9336_s3 + $0xe0] sm:$0xff]  ;;  %v677_v27 = vld [vmem:[%s9336_s3 + $0xf0] sm:$0xff]  ;;  %v7092_v29 = vcombine.low %v665_v18, %v669_v19  ;;  %v7074_v15 = vcombine.low %v648_v0, %v652_v2  ;;  %v7083_v18 = vcombine.high %v656_v10, %v660_v11 }
  0x78   :  { %v7097_v30 = vcombine.high %v671_v24, %v675_v25  ;;  %v7101_v31 = vcombine.high %v673_v26, %v677_v27  ;;  %v679_v32 = vld [vmem:[%s9336_s3 + $0x100] sm:$0xff]  ;;  %v681_v34 = vld [vmem:[%s9336_s3 + $0x110] sm:$0xff]  ;;  %v7096_v36 = vcombine.low %v671_v24, %v675_v25  ;;  %v7100_v37 = vcombine.low %v673_v26, %v677_v27 }
  0x79   :  { %1034 = vmatpush1.bf16.msra.mxu1 %v7080_v20  ;;  %1116 = vmatpush1.bf16.msra.mxu0 %v7084_v21  ;;  %v683_v33 = vld [vmem:[%s9336_s3 + $0x120] sm:$0xff]  ;;  %v685_v35 = vld [vmem:[%s9336_s3 + $0x130] sm:$0xff]  ;;  %v664_v20 = vld [vmem:[%s9336_s3 + $0x88] sm:$0xff]  ;;  %v8969_v24 = vpack.c.bf16 %v118_v16, %v118_v16  ;;  %v7082_v25 = vcombine.low %v656_v10, %v660_v11 }
  0x7a   :  { %1035 = vmatprep.subr.bf16.mxu1 %v7089_v22  ;;  %1117 = vmatprep.subr.bf16.mxu0 %v7093_v23  ;;  %v7105_v38 = vcombine.high %v679_v32, %v683_v33  ;;  %v7109_v39 = vcombine.high %v681_v34, %v685_v35  ;;  %v687_v40 = vld [vmem:[%s9336_s3 + $0x140] sm:$0xff]  ;;  %v689_v42 = vld [vmem:[%s9336_s3 + $0x150] sm:$0xff]  ;;  %v7104_v44 = vcombine.low %v679_v32, %v683_v33  ;;  %v668_v21 = vld [vmem:[%s9336_s3 + $0xa8] sm:$0xff] }
  0x7b   :  { %v691_v41 = vld [vmem:[%s9336_s3 + $0x160] sm:$0xff]  ;;  %v693_v43 = vld [vmem:[%s9336_s3 + $0x170] sm:$0xff]  ;;  %v7108_v45 = vcombine.low %v681_v34, %v685_v35  ;;  %v7091_v27 = vcombine.high %v664_v20, %v668_v21  ;;  %v7090_v33 = vcombine.low %v664_v20, %v668_v21  ;;  %v662_v16 = vld [vmem:[%s9336_s3 + $0x78] sm:$0xff] }
  0x7c   :  { %v7113_v46 = vcombine.high %v687_v40, %v691_v41  ;;  %v7117_v47 = vcombine.high %v689_v42, %v693_v43  ;;  %v695_v48 = vld [vmem:[%s9336_s3 + $0x180] sm:$0xff]  ;;  %v697_v50 = vld [vmem:[%s9336_s3 + $0x190] sm:$0xff]  ;;  %v7112_v52 = vcombine.low %v687_v40, %v691_v41  ;;  %v7116_v53 = vcombine.low %v689_v42, %v693_v43 }
  0x7d   :  { %1036 = vmatpush1.bf16.msra.mxu1 %v7088_v28  ;;  %1118 = vmatpush1.bf16.msra.mxu0 %v7092_v29  ;;  %v699_v49 = vld [vmem:[%s9336_s3 + $0x1a0] sm:$0xff]  ;;  %v701_v51 = vld [vmem:[%s9336_s3 + $0x1b0] sm:$0xff]  ;;  %v672_v29 = vld [vmem:[%s9336_s3 + $0xc8] sm:$0xff] }
  0x7e   :  { %1037 = vmatprep.subr.bf16.mxu1 %v7097_v30  ;;  %1119 = vmatprep.subr.bf16.mxu0 %v7101_v31  ;;  %v7121_v54 = vcombine.high %v695_v48, %v699_v49  ;;  %v7125_v55 = vcombine.high %v697_v50, %v701_v51  ;;  %v703_v56 = vld [vmem:[%s9336_s3 + $0x1c0] sm:$0xff]  ;;  %v705_v58 = vld [vmem:[%s9336_s3 + $0x1d0] sm:$0xff]  ;;  %v7120_v60 = vcombine.low %v695_v48, %v699_v49  ;;  %v676_v30 = vld [vmem:[%s9336_s3 + $0xe8] sm:$0xff] }
  0x7f   :  { %v707_v57 = vld [vmem:[%s9336_s3 + $0x1e0] sm:$0xff]  ;;  %v709_v59 = vld [vmem:[%s9336_s3 + $0x1f0] sm:$0xff]  ;;  %v7124_v61 = vcombine.low %v697_v50, %v701_v51  ;;  %v7099_v35 = vcombine.high %v672_v29, %v676_v30  ;;  %v7098_v41 = vcombine.low %v672_v29, %v676_v30 }
  0x80   :  { %v7129_v62 = vcombine.high %v703_v56, %v707_v57  ;;  %v7133_v63 = vcombine.high %v705_v58, %v709_v59  ;;  %v135_v3 = vld [vmem:[#allocation3] sm:$0xff]  ;;  %v7128_v5 = vcombine.low %v703_v56, %v707_v57  ;;  %v7132_v7 = vcombine.low %v705_v58, %v709_v59 }
  0x81   :  { %1038 = vmatpush1.bf16.msra.mxu1 %v7096_v36  ;;  %1120 = vmatpush1.bf16.msra.mxu0 %v7100_v37  ;;  %v139_v4 = vld [vmem:[#allocation3 + $0x20] sm:$0xff] }
  0x82   :  { %1039 = vmatprep.subr.bf16.mxu1 %v7105_v38  ;;  %1121 = vmatprep.subr.bf16.mxu0 %v7109_v39  ;;  %v133_v6 = vld [vmem:[%s9334_s1] sm:$0xff]  ;;  %v7137_v9 = vcombine.high %v135_v3, %v139_v4  ;;  %v7136_v17 = vcombine.low %v135_v3, %v139_v4  ;;  %v680_v37 = vld [vmem:[%s9336_s3 + $0x108] sm:$0xff] }
  0x83   :  { %v8957_v12 = vpack.c.bf16 %v133_v6, %v133_v6  ;;  %v143_v13 = vld [vmem:[#allocation3 + $0x40] sm:$0xff]  ;;  %v650_v6 = vld [vmem:[%s9336_s3 + $0x18] sm:$0xff] }
  0x84   :  { %v147_v14 = vld [vmem:[#allocation3 + $0x60] sm:$0xff] }
  0x85   :  { %1040 = vmatpush1.bf16.msra.mxu1 %v7104_v44  ;;  %1122 = vmatpush1.bf16.msra.mxu0 %v7108_v45  ;;  %v7145_v19 = vcombine.high %v143_v13, %v147_v14  ;;  %v151_v22 = vld [vmem:[#allocation3 + $0x80] sm:$0xff]  ;;  %v7144_v26 = vcombine.low %v143_v13, %v147_v14 }
  0x86   :  { %1041 = vmatprep.subr.bf16.mxu1 %v7113_v46  ;;  %1123 = vmatprep.subr.bf16.mxu0 %v7117_v47  ;;  %v155_v23 = vld [vmem:[#allocation3 + $0xa0] sm:$0xff] }
  0x87   :  { %v7153_v28 = vcombine.high %v151_v22, %v155_v23  ;;  %v159_v31 = vld [vmem:[#allocation3 + $0xc0] sm:$0xff]  ;;  %v7152_v34 = vcombine.low %v151_v22, %v155_v23  ;;  %v666_v23 = vld [vmem:[%s9336_s3 + $0x98] sm:$0xff] }
  0x88   :  { %v163_v32 = vld [vmem:[#allocation3 + $0xe0] sm:$0xff] }
  0x89   :  { %1042 = vmatpush1.bf16.msra.mxu1 %v7112_v52  ;;  %1124 = vmatpush1.bf16.msra.mxu0 %v7116_v53  ;;  %v7161_v36 = vcombine.high %v159_v31, %v163_v32  ;;  %v684_v38 = vld [vmem:[%s9336_s3 + $0x128] sm:$0xff]  ;;  %v7160_v42 = vcombine.low %v159_v31, %v163_v32  ;;  %v674_v31 = vld [vmem:[%s9336_s3 + $0xd8] sm:$0xff] }
  0x8a   :  { %1043 = vmatprep.subr.bf16.mxu1 %v7121_v54  ;;  %1125 = vmatprep.subr.bf16.mxu0 %v7125_v55  ;;  %v167_v39 = vld [vmem:[#allocation3 + $0x100] sm:$0xff]  ;;  %v7107_v43 = vcombine.high %v680_v37, %v684_v38  ;;  %v7106_v49 = vcombine.low %v680_v37, %v684_v38  ;;  %v678_v32 = vld [vmem:[%s9336_s3 + $0xf8] sm:$0xff] }
  0x8b   :  { %v171_v40 = vld [vmem:[#allocation3 + $0x120] sm:$0xff]  ;;  %v7103_v37 = vcombine.high %v674_v31, %v678_v32  ;;  %v682_v38 = vld [vmem:[%s9336_s3 + $0x118] sm:$0xff] }
  0x8c   :  { %v7169_v44 = vcombine.high %v167_v39, %v171_v40  ;;  %v688_v45 = vld [vmem:[%s9336_s3 + $0x148] sm:$0xff]  ;;  %v7168_v50 = vcombine.low %v167_v39, %v171_v40  ;;  %v686_v39 = vld [vmem:[%s9336_s3 + $0x138] sm:$0xff] }
  0x8d   :  { %1044 = vmatpush1.bf16.msra.mxu1 %v7120_v60  ;;  %1126 = vmatpush1.bf16.msra.mxu0 %v7124_v61  ;;  %v692_v46 = vld [vmem:[%s9336_s3 + $0x168] sm:$0xff] }
  0x8e   :  { %1045 = vmatprep.subr.bf16.mxu1 %v7129_v62  ;;  %1127 = vmatprep.subr.bf16.mxu0 %v7133_v63  ;;  %v175_v47 = vld [vmem:[#allocation3 + $0x140] sm:$0xff]  ;;  %v7115_v51 = vcombine.high %v688_v45, %v692_v46  ;;  %v7114_v57 = vcombine.low %v688_v45, %v692_v46  ;;  %v7111_v45 = vcombine.high %v682_v38, %v686_v39  ;;  %v690_v46 = vld [vmem:[%s9336_s3 + $0x158] sm:$0xff] }
  0x8f   :  { %v179_v48 = vld [vmem:[#allocation3 + $0x160] sm:$0xff] }
  0x90   :  { %v7177_v52 = vcombine.high %v175_v47, %v179_v48  ;;  %v696_v53 = vld [vmem:[%s9336_s3 + $0x188] sm:$0xff]  ;;  %v7176_v58 = vcombine.low %v175_v47, %v179_v48  ;;  %v694_v47 = vld [vmem:[%s9336_s3 + $0x178] sm:$0xff] }
  0x91   :  { %1046 = vmatpush1.bf16.msra.mxu1 %v7128_v5  ;;  %1128 = vmatpush1.bf16.msra.mxu0 %v7132_v7  ;;  %v700_v54 = vld [vmem:[%s9336_s3 + $0x1a8] sm:$0xff]  ;;  %v654_v7 = vld [vmem:[%s9336_s3 + $0x38] sm:$0xff] }
  0x92   :  { %1072 = vmatprep.subr.bf16.mxu1 %v7075_v8  ;;  %3755 = vmatprep.subr.bf16.mxu0 %v7137_v9  ;;  %v183_v55 = vld [vmem:[#allocation3 + $0x180] sm:$0xff]  ;;  %v7123_v59 = vcombine.high %v696_v53, %v700_v54  ;;  %v7122_v2 = vcombine.low %v696_v53, %v700_v54  ;;  %v7079_v13 = vcombine.high %v650_v6, %v654_v7  ;;  %v698_v54 = vld [vmem:[%s9336_s3 + $0x198] sm:$0xff] }
  0x93   :  { %v187_v56 = vld [vmem:[#allocation3 + $0x1a0] sm:$0xff]  ;;  %v7119_v53 = vcombine.high %v690_v46, %v694_v47 }
  0x94   :  { %1064 = vmatmul.mubr.bf16.vlgmr.msra.gmra.mrb[0].mxu1 %v8957_v12  ;;  %1146 = vmatmul.mubr.bf16.vlgmr.msra.gmra.mrb[0].mxu0 %v8957_v12  ;;  %v7185_v60 = vcombine.high %v183_v55, %v187_v56  ;;  %v704_v61 = vld [vmem:[%s9336_s3 + $0x1c8] sm:$0xff]  ;;  %v7184_v3 = vcombine.low %v183_v55, %v187_v56  ;;  %v702_v55 = vld [vmem:[%s9336_s3 + $0x1b8] sm:$0xff] }
  0x95   :  { %1073 = vmatpush1.bf16.msra.mxu1 %v7074_v15  ;;  %3756 = vmatpush1.bf16.msra.mxu0 %v7136_v17  ;;  %v708_v62 = vld [vmem:[%s9336_s3 + $0x1e8] sm:$0xff]  ;;  %v658_v15 = vld [vmem:[%s9336_s3 + $0x58] sm:$0xff] }
  0x96   :  { %1074 = vmatprep.subr.bf16.mxu1 %v7083_v18  ;;  %3757 = vmatprep.subr.bf16.mxu0 %v7145_v19  ;;  %v191_v63 = vld [vmem:[#allocation3 + $0x1c0] sm:$0xff]  ;;  %v7131_v4 = vcombine.high %v704_v61, %v708_v62  ;;  %v7130_v10 = vcombine.low %v704_v61, %v708_v62  ;;  %v7078_v19 = vcombine.low %v650_v6, %v654_v7  ;;  %v706_v62 = vld [vmem:[%s9336_s3 + $0x1d8] sm:$0xff] }
  0x97   :  { %1104 = vmatprep.mubr.bf16.mxu1 %v8708_v1  ;;  %3787 = vmatprep.mubr.bf16.mxu0 %v8969_v24  ;;  %v195_v0 = vld [vmem:[#allocation3 + $0x1e0] sm:$0xff]  ;;  %v7087_v21 = vcombine.high %v658_v15, %v662_v16  ;;  %v7127_v61 = vcombine.high %v698_v54, %v702_v55 }
  0x98   :  { %v7193_v5 = vcombine.high %v191_v63, %v195_v0  ;;  %v199_v8 = vld [vmem:[#allocation3 + $0x200] sm:$0xff]  ;;  %v7192_v11 = vcombine.low %v191_v63, %v195_v0  ;;  %v710_v63 = vld [vmem:[%s9336_s3 + $0x1f8] sm:$0xff] }
  0x99   :  { %1075 = vmatpush1.bf16.msra.mxu1 %v7082_v25  ;;  %3758 = vmatpush1.bf16.msra.mxu0 %v7144_v26  ;;  %v203_v9 = vld [vmem:[#allocation3 + $0x220] sm:$0xff]  ;;  %v670_v25 = vld [vmem:[%s9336_s3 + $0xb8] sm:$0xff]  ;;  %v7135_v6 = vcombine.high %v706_v62, %v710_v63 }
  0x9a   :  { %1076 = vmatprep.subr.bf16.mxu1 %v7091_v27  ;;  %3759 = vmatprep.subr.bf16.mxu0 %v7153_v28  ;;  %v7201_v14 = vcombine.high %v199_v8, %v203_v9  ;;  %v207_v17 = vld [vmem:[#allocation3 + $0x240] sm:$0xff]  ;;  %v7200_v20 = vcombine.low %v199_v8, %v203_v9  ;;  %v7086_v28 = vcombine.low %v658_v15, %v662_v16 }
  0x9b   :  { %v211_v18 = vld [vmem:[#allocation3 + $0x260] sm:$0xff]  ;;  %v7095_v30 = vcombine.high %v666_v23, %v670_v25 }
  0x9c   :  { %v7209_v22 = vcombine.high %v207_v17, %v211_v18  ;;  %v215_v26 = vld [vmem:[#allocation3 + $0x280] sm:$0xff]  ;;  %v7208_v29 = vcombine.low %v207_v17, %v211_v18 }
  0x9d   :  { %1077 = vmatpush1.bf16.msra.mxu1 %v7090_v33  ;;  %3760 = vmatpush1.bf16.msra.mxu0 %v7152_v34  ;;  %v219_v27 = vld [vmem:[#allocation3 + $0x2a0] sm:$0xff] }
  0x9e   :  { %1078 = vmatprep.subr.bf16.mxu1 %v7099_v35  ;;  %3761 = vmatprep.subr.bf16.mxu0 %v7161_v36  ;;  %v223_v33 = vld [vmem:[#allocation3 + $0x2c0] sm:$0xff]  ;;  %v7217_v34 = vcombine.high %v215_v26, %v219_v27  ;;  %v7094_v36 = vcombine.low %v666_v23, %v670_v25 }
  0x9f   :  { %v227_v35 = vld [vmem:[#allocation3 + $0x2e0] sm:$0xff] }
  0xa0   :  { %v231_v40 = vld [vmem:[#allocation3 + $0x300] sm:$0xff] }
  0xa1   :  { %1079 = vmatpush1.bf16.msra.mxu1 %v7098_v41  ;;  %3762 = vmatpush1.bf16.msra.mxu0 %v7160_v42  ;;  %v7225_v41 = vcombine.high %v223_v33, %v227_v35  ;;  %v235_v42 = vld [vmem:[#allocation3 + $0x320] sm:$0xff] }
  0xa2   :  { %1080 = vmatprep.subr.bf16.mxu1 %v7107_v43  ;;  %3763 = vmatprep.subr.bf16.mxu0 %v7169_v44  ;;  %v7102_v43 = vcombine.low %v674_v31, %v678_v32  ;;  %v7224_v44 = vcombine.low %v223_v33, %v227_v35  ;;  %v239_v48 = vld [vmem:[#allocation3 + $0x340] sm:$0xff] }
  0xa3   :  { %v247_v56 = vld [vmem:[#allocation3 + $0x380] sm:$0xff] }
  0xa4   :  { %v255_v0 = vld [vmem:[#allocation3 + $0x3c0] sm:$0xff] }
  0xa5   :  { %1081 = vmatpush1.bf16.msra.mxu1 %v7106_v49  ;;  %3764 = vmatpush1.bf16.msra.mxu0 %v7168_v50  ;;  %v7233_v49 = vcombine.high %v231_v40, %v235_v42  ;;  %v243_v50 = vld [vmem:[#allocation3 + $0x360] sm:$0xff] }
  0xa6   :  { %1082 = vmatprep.subr.bf16.mxu1 %v7115_v51  ;;  %3765 = vmatprep.subr.bf16.mxu0 %v7177_v52  ;;  %v7110_v51 = vcombine.low %v682_v38, %v686_v39  ;;  %v7232_v52 = vcombine.low %v231_v40, %v235_v42  ;;  %v263_v7 = vld [vmem:[#allocation3 + $0x400] sm:$0xff] }
  0xa7   :  { %v267_v8 = vld [vmem:[#allocation3 + $0x420] sm:$0xff] }
  0xa8   :  { %v391_v9 = vld [vmem:[#allocation3 + $0x800] sm:$0xff]  ;;  %v7265_v17 = vcombine.high %v263_v7, %v267_v8  ;;  %v7264_v25 = vcombine.low %v263_v7, %v267_v8 }
  0xa9   :  { %1083 = vmatpush1.bf16.msra.mxu1 %v7114_v57  ;;  %3766 = vmatpush1.bf16.msra.mxu0 %v7176_v58  ;;  %v7241_v57 = vcombine.high %v239_v48, %v243_v50  ;;  %v251_v58 = vld [vmem:[#allocation3 + $0x3a0] sm:$0xff] }
  0xaa   :  { %1084 = vmatprep.subr.bf16.mxu1 %v7123_v59  ;;  %3767 = vmatprep.subr.bf16.mxu0 %v7185_v60  ;;  %v7118_v59 = vcombine.low %v690_v46, %v694_v47  ;;  %v7240_v60 = vcombine.low %v239_v48, %v243_v50  ;;  %v271_v15 = vld [vmem:[#allocation3 + $0x440] sm:$0xff] }
  0xab   :  { %v275_v18 = vld [vmem:[#allocation3 + $0x460] sm:$0xff] }
  0xac   :  { %v407_v32 = vld [vmem:[#allocation3 + $0x880] sm:$0xff] }
  0xad   :  { %1085 = vmatpush1.bf16.msra.mxu1 %v7122_v2  ;;  %3768 = vmatpush1.bf16.msra.mxu0 %v7184_v3  ;;  %v7249_v2 = vcombine.high %v247_v56, %v251_v58  ;;  %v259_v3 = vld [vmem:[#allocation3 + $0x3e0] sm:$0xff] }
  0xae   :  { %1086 = vmatprep.subr.bf16.mxu1 %v7131_v4  ;;  %3769 = vmatprep.subr.bf16.mxu0 %v7193_v5  ;;  %v7126_v4 = vcombine.low %v698_v54, %v702_v55  ;;  %v7248_v5 = vcombine.low %v247_v56, %v251_v58  ;;  %v7256_v16 = vcombine.low %v255_v0, %v259_v3  ;;  %v411_v33 = vld [vmem:[#allocation3 + $0x8a0] sm:$0xff] }
  0xaf   :  { %v287_v38 = vld [vmem:[#allocation3 + $0x4c0] sm:$0xff] }
  0xb0   :  { %v291_v39 = vld [vmem:[#allocation3 + $0x4e0] sm:$0xff] }
  0xb1   :  { %1087 = vmatpush1.bf16.msra.mxu1 %v7130_v10  ;;  %3770 = vmatpush1.bf16.msra.mxu0 %v7192_v11  ;;  %v7257_v10 = vcombine.high %v255_v0, %v259_v3  ;;  %v395_v11 = vld [vmem:[#allocation3 + $0x820] sm:$0xff]  ;;  %v7288_v50 = vcombine.low %v287_v38, %v291_v39 }
  0xb2   :  { %1154 = vmatprep.subr.bf16.mxu1 %v7079_v13  ;;  %3771 = vmatprep.subr.bf16.mxu0 %v7201_v14  ;;  %v117_v13 = vld [vmem:[%s9333_s0] sm:$0xff]  ;;  %v7134_v14 = vcombine.low %v706_v62, %v710_v63 }
  0xb3   :  { %v9060_v23 = vpack.c.bf16 %v117_v13, %v117_v13  ;;  %v415_v40 = vld [vmem:[#allocation3 + $0x8c0] sm:$0xff] }
  0xb4   :  { %1105 = vmatmul.mubr.bf16.vlgmr.msra.gmra.mrb[4].mxu1 %v8957_v12  ;;  %v419_v42 = vld [vmem:[#allocation3 + $0x8e0] sm:$0xff] }
  0xb5   :  { %1155 = vmatpush1.bf16.msra.mxu1 %v7078_v19  ;;  %1186 = vmatprep.mubr.bf16.mxu1 %v8708_v1  ;;  %v7216_v1 = vcombine.low %v215_v26, %v219_v27  ;;  %v399_v19 = vld [vmem:[#allocation3 + $0x840] sm:$0xff]  ;;  %v7392_v27 = vcombine.low %v391_v9, %v395_v11  ;;  %v7417_v48 = vcombine.high %v415_v40, %v419_v42 }
  0xb6   :  { %3772 = vmatpush1.bf16.msra.mxu0 %v7200_v20  ;;  %1156 = vmatprep.subr.bf16.mxu1 %v7087_v21  ;;  %v403_v20 = vld [vmem:[#allocation3 + $0x860] sm:$0xff]  ;;  %v7393_v21 = vcombine.high %v391_v9, %v395_v11 }
  0xb7   :  { %3773 = vmatprep.subr.bf16.mxu0 %v7209_v22  ;;  %v120_v22 = vld [vmem:[%s9333_s0 + $0x18] sm:$0xff]  ;;  %v122_v26 = vld [vmem:[%s9333_s0 + $0x28] sm:$0xff]  ;;  %v7401_v31 = vcombine.high %v399_v19, %v403_v20 }
  0xb8   :  { %v9068_v35 = vpack.c.bf16 %v122_v26, %v122_v26  ;;  %v299_v46 = vld [vmem:[#allocation3 + $0x520] sm:$0xff] }
  0xb9   :  { %1157 = vmatpush1.bf16.msra.mxu1 %v7086_v28  ;;  %v7273_v28 = vcombine.high %v271_v15, %v275_v18  ;;  %v423_v47 = vld [vmem:[#allocation3 + $0x900] sm:$0xff] }
  0xba   :  { %3774 = vmatpush1.bf16.msra.mxu0 %v7208_v29  ;;  %1158 = vmatprep.subr.bf16.mxu1 %v7095_v30  ;;  %v279_v29 = vld [vmem:[#allocation3 + $0x480] sm:$0xff] }
  0xbb   :  { %3775 = vmatprep.subr.bf16.mxu0 %v7217_v34  ;;  %v283_v30 = vld [vmem:[#allocation3 + $0x4a0] sm:$0xff]  ;;  %v9065_v34 = vpack.c.bf16 %v120_v22, %v120_v22 }
  0xbc   :  { %v307_v54 = vld [vmem:[#allocation3 + $0x560] sm:$0xff] }
  0xbd   :  { %1159 = vmatpush1.bf16.msra.mxu1 %v7094_v36  ;;  %v7272_v36 = vcombine.low %v271_v15, %v275_v18  ;;  %v431_v55 = vld [vmem:[#allocation3 + $0x940] sm:$0xff] }
  0xbe   :  { %3776 = vmatpush1.bf16.msra.mxu0 %v7216_v1  ;;  %1160 = vmatprep.subr.bf16.mxu1 %v7103_v37  ;;  %v7400_v1 = vcombine.low %v399_v19, %v403_v20  ;;  %v7281_v37 = vcombine.high %v279_v29, %v283_v30  ;;  %v315_v62 = vld [vmem:[#allocation3 + $0x5a0] sm:$0xff] }
  0xbf   :  { %3777 = vmatprep.subr.bf16.mxu0 %v7225_v41  ;;  %v7409_v41 = vcombine.high %v407_v32, %v411_v33  ;;  %v439_v63 = vld [vmem:[#allocation3 + $0x980] sm:$0xff] }
  0xc0   :  { %v323_v7 = vld [vmem:[#allocation3 + $0x5e0] sm:$0xff] }
  0xc1   :  { %1161 = vmatpush1.bf16.msra.mxu1 %v7102_v43  ;;  %v7408_v43 = vcombine.low %v407_v32, %v411_v33  ;;  %v447_v8 = vld [vmem:[#allocation3 + $0x9c0] sm:$0xff] }
  0xc2   :  { %3778 = vmatpush1.bf16.msra.mxu0 %v7224_v44  ;;  %1162 = vmatprep.subr.bf16.mxu1 %v7111_v45  ;;  %v7289_v44 = vcombine.high %v287_v38, %v291_v39  ;;  %v295_v45 = vld [vmem:[#allocation3 + $0x500] sm:$0xff] }
  0xc3   :  { %3779 = vmatprep.subr.bf16.mxu0 %v7233_v49  ;;  %v427_v49 = vld [vmem:[#allocation3 + $0x920] sm:$0xff]  ;;  %v7296_v58 = vcombine.low %v295_v45, %v299_v46 }
  0xc4   :  { %v7425_v56 = vcombine.high %v423_v47, %v427_v49  ;;  %v327_v15 = vld [vmem:[#allocation3 + $0x600] sm:$0xff] }
  0xc5   :  { %1163 = vmatpush1.bf16.msra.mxu1 %v7110_v51  ;;  %v7416_v51 = vcombine.low %v415_v40, %v419_v42  ;;  %v459_v19 = vld [vmem:[#allocation3 + $0xa20] sm:$0xff] }
  0xc6   :  { %3780 = vmatpush1.bf16.msra.mxu0 %v7232_v52  ;;  %1164 = vmatprep.subr.bf16.mxu1 %v7119_v53  ;;  %v7297_v52 = vcombine.high %v295_v45, %v299_v46  ;;  %v303_v53 = vld [vmem:[#allocation3 + $0x540] sm:$0xff] }
  0xc7   :  { %3781 = vmatprep.subr.bf16.mxu0 %v7241_v57  ;;  %v435_v57 = vld [vmem:[#allocation3 + $0x960] sm:$0xff]  ;;  %v7304_v3 = vcombine.low %v303_v53, %v307_v54 }
  0xc8   :  { %v7433_v0 = vcombine.high %v431_v55, %v435_v57  ;;  %v339_v26 = vld [vmem:[#allocation3 + $0x660] sm:$0xff] }
  0xc9   :  { %1165 = vmatpush1.bf16.msra.mxu1 %v7118_v59  ;;  %v7424_v59 = vcombine.low %v423_v47, %v427_v49  ;;  %v343_v33 = vld [vmem:[#allocation3 + $0x680] sm:$0xff] }
  0xca   :  { %3782 = vmatpush1.bf16.msra.mxu0 %v7240_v60  ;;  %1166 = vmatprep.subr.bf16.mxu1 %v7127_v61  ;;  %v7305_v60 = vcombine.high %v303_v53, %v307_v54  ;;  %v311_v61 = vld [vmem:[#allocation3 + $0x580] sm:$0xff] }
  0xcb   :  { %3783 = vmatprep.subr.bf16.mxu0 %v7249_v2  ;;  %v443_v2 = vld [vmem:[#allocation3 + $0x9a0] sm:$0xff]  ;;  %v7312_v11 = vcombine.low %v311_v61, %v315_v62 }
  0xcc   :  { %v7441_v9 = vcombine.high %v439_v63, %v443_v2  ;;  %v7440_v13 = vcombine.low %v439_v63, %v443_v2  ;;  %v475_v38 = vld [vmem:[#allocation3 + $0xaa0] sm:$0xff] }
  0xcd   :  { %1167 = vmatpush1.bf16.msra.mxu1 %v7126_v4  ;;  %v7432_v4 = vcombine.low %v431_v55, %v435_v57  ;;  %v351_v42 = vld [vmem:[#allocation3 + $0x6c0] sm:$0xff] }
  0xce   :  { %3784 = vmatpush1.bf16.msra.mxu0 %v7248_v5  ;;  %1168 = vmatprep.subr.bf16.mxu1 %v7135_v6  ;;  %v7313_v5 = vcombine.high %v311_v61, %v315_v62  ;;  %v319_v6 = vld [vmem:[#allocation3 + $0x5c0] sm:$0xff] }
  0xcf   :  { %3785 = vmatprep.subr.bf16.mxu0 %v7257_v10  ;;  %v451_v10 = vld [vmem:[#allocation3 + $0x9e0] sm:$0xff]  ;;  %v7320_v20 = vcombine.low %v319_v6, %v323_v7 }
  0xd0   :  { %v7449_v18 = vcombine.high %v447_v8, %v451_v10  ;;  %v483_v45 = vld [vmem:[#allocation3 + $0xae0] sm:$0xff] }
  0xd1   :  { %1169 = vmatpush1.bf16.msra.mxu1 %v7134_v14  ;;  %v7321_v14 = vcombine.high %v319_v6, %v323_v7  ;;  %v359_v49 = vld [vmem:[#allocation3 + $0x700] sm:$0xff] }
  0xd2   :  { %3786 = vmatpush1.bf16.msra.mxu0 %v7256_v16  ;;  %3796 = vmatprep.subr.bf16.mxu1 %v7265_v17  ;;  %v331_v16 = vld [vmem:[#allocation3 + $0x620] sm:$0xff] }
  0xd3   :  { %3837 = vmatprep.subr.bf16.mxu0 %v7393_v21  ;;  %v455_v17 = vld [vmem:[#allocation3 + $0xa00] sm:$0xff]  ;;  %v7448_v21 = vcombine.low %v447_v8, %v451_v10  ;;  %v7329_v22 = vcombine.high %v327_v15, %v331_v16 }
  0xd4   :  { %1187 = vmatmul.mubr.bf16.vlgmr.msra.gmra.mrb[8].mxu1 %v8957_v12  ;;  %v7280_v12 = vcombine.low %v279_v29, %v283_v30  ;;  %v467_v29 = vld [vmem:[#allocation3 + $0xa60] sm:$0xff]  ;;  %v7328_v30 = vcombine.low %v327_v15, %v331_v16 }
  0xd5   :  { %3788 = vmatmul.mubr.bf16.vlgmr.msra.gmra.mrb[4].mxu0 %v9060_v23  ;;  %3797 = vmatpush1.bf16.msra.mxu1 %v7264_v25  ;;  %v335_v25 = vld [vmem:[#allocation3 + $0x640] sm:$0xff] }
  0xd6   :  { %3838 = vmatpush1.bf16.msra.mxu0 %v7392_v27  ;;  %3798 = vmatprep.subr.bf16.mxu1 %v7273_v28  ;;  %v463_v27 = vld [vmem:[#allocation3 + $0xa40] sm:$0xff]  ;;  %v7457_v28 = vcombine.high %v455_v17, %v459_v19  ;;  %v7337_v32 = vcombine.high %v335_v25, %v339_v26  ;;  %v7336_v39 = vcombine.low %v335_v25, %v339_v26  ;;  %v119_v25 = vld [vmem:[%s9333_s0 + $0x10] sm:$0xff] }
  0xd7   :  { %3839 = vmatprep.subr.bf16.mxu0 %v7401_v31  ;;  %3828 = vmatprep.mubr.bf16.mxu1 %v9065_v34  ;;  %v7456_v31 = vcombine.low %v455_v17, %v459_v19  ;;  %v7464_v40 = vcombine.low %v463_v27, %v467_v29  ;;  %v491_v53 = vld [vmem:[#allocation3 + $0xb20] sm:$0xff]  ;;  %v140_v26 = vld [vmem:[#allocation3 + $0x28] sm:$0xff] }
  0xd8   :  { %3869 = vmatprep.mubr.bf16.mxu0 %v9068_v35  ;;  %v367_v57 = vld [vmem:[#allocation3 + $0x740] sm:$0xff] }
  0xd9   :  { %3799 = vmatpush1.bf16.msra.mxu1 %v7272_v36  ;;  %v347_v36 = vld [vmem:[#allocation3 + $0x6a0] sm:$0xff] }
  0xda   :  { %3840 = vmatpush1.bf16.msra.mxu0 %v7400_v1  ;;  %3800 = vmatprep.subr.bf16.mxu1 %v7281_v37  ;;  %v471_v1 = vld [vmem:[#allocation3 + $0xa80] sm:$0xff]  ;;  %v7465_v37 = vcombine.high %v463_v27, %v467_v29  ;;  %v7344_v46 = vcombine.low %v343_v33, %v347_v36 }
  0xdb   :  { %3841 = vmatprep.subr.bf16.mxu0 %v7409_v41  ;;  %v7345_v41 = vcombine.high %v343_v33, %v347_v36  ;;  %v7472_v47 = vcombine.low %v471_v1, %v475_v38  ;;  %v499_v61 = vld [vmem:[#allocation3 + $0xb60] sm:$0xff]  ;;  %v144_v33 = vld [vmem:[#allocation3 + $0x48] sm:$0xff] }
  0xdc   :  { %v375_v2 = vld [vmem:[#allocation3 + $0x780] sm:$0xff]  ;;  %v148_v36 = vld [vmem:[#allocation3 + $0x68] sm:$0xff] }
  0xdd   :  { %3801 = vmatpush1.bf16.msra.mxu1 %v7280_v12  ;;  %v355_v12 = vld [vmem:[#allocation3 + $0x6e0] sm:$0xff] }
  0xde   :  { %3842 = vmatpush1.bf16.msra.mxu0 %v7408_v43  ;;  %3802 = vmatprep.subr.bf16.mxu1 %v7289_v44  ;;  %v479_v43 = vld [vmem:[#allocation3 + $0xac0] sm:$0xff]  ;;  %v7473_v44 = vcombine.high %v471_v1, %v475_v38  ;;  %v7352_v54 = vcombine.low %v351_v42, %v355_v12  ;;  %v9082_v38 = vpack.c.bf16 %v119_v25, %v119_v25  ;;  %v192_v25 = vld [vmem:[#allocation3 + $0x1c8] sm:$0xff] }
  0xdf   :  { %3843 = vmatprep.subr.bf16.mxu0 %v7417_v48  ;;  %v7353_v48 = vcombine.high %v351_v42, %v355_v12  ;;  %v7480_v55 = vcombine.low %v479_v43, %v483_v45  ;;  %v507_v6 = vld [vmem:[#allocation3 + $0xba0] sm:$0xff] }
  0xe0   :  { %v383_v10 = vld [vmem:[#allocation3 + $0x7c0] sm:$0xff] }
  0xe1   :  { %3803 = vmatpush1.bf16.msra.mxu1 %v7288_v50  ;;  %v363_v50 = vld [vmem:[#allocation3 + $0x720] sm:$0xff] }
  0xe2   :  { %3844 = vmatpush1.bf16.msra.mxu0 %v7416_v51  ;;  %3804 = vmatprep.subr.bf16.mxu1 %v7297_v52  ;;  %v487_v51 = vld [vmem:[#allocation3 + $0xb00] sm:$0xff]  ;;  %v7481_v52 = vcombine.high %v479_v43, %v483_v45  ;;  %v7360_v62 = vcombine.low %v359_v49, %v363_v50  ;;  %v7147_v45 = vcombine.high %v144_v33, %v148_v36 }
  0xe3   :  { %3845 = vmatprep.subr.bf16.mxu0 %v7425_v56  ;;  %v7361_v56 = vcombine.high %v359_v49, %v363_v50  ;;  %v7488_v63 = vcombine.low %v487_v51, %v491_v53  ;;  %v515_v15 = vld [vmem:[#allocation3 + $0xbe0] sm:$0xff]  ;;  %v7146_v49 = vcombine.low %v144_v33, %v148_v36  ;;  %v200_v33 = vld [vmem:[#allocation3 + $0x208] sm:$0xff] }
  0xe4   :  { %v519_v19 = vld [vmem:[#allocation3 + $0xc00] sm:$0xff] }
  0xe5   :  { %3805 = vmatpush1.bf16.msra.mxu1 %v7296_v58  ;;  %v371_v58 = vld [vmem:[#allocation3 + $0x760] sm:$0xff] }
  0xe6   :  { %3846 = vmatpush1.bf16.msra.mxu0 %v7424_v59  ;;  %3806 = vmatprep.subr.bf16.mxu1 %v7305_v60  ;;  %v495_v59 = vld [vmem:[#allocation3 + $0xb40] sm:$0xff]  ;;  %v7489_v60 = vcombine.high %v487_v51, %v491_v53  ;;  %v7368_v7 = vcombine.low %v367_v57, %v371_v58  ;;  %v160_v53 = vld [vmem:[#allocation3 + $0xc8] sm:$0xff] }
  0xe7   :  { %3847 = vmatprep.subr.bf16.mxu0 %v7433_v0  ;;  %v7369_v0 = vcombine.high %v367_v57, %v371_v58  ;;  %v7496_v8 = vcombine.low %v495_v59, %v499_v61  ;;  %v121_v27 = vld [vmem:[%s9333_s0 + $0x20] sm:$0xff] }
  0xe8   :  { %v527_v29 = vld [vmem:[#allocation3 + $0xc40] sm:$0xff] }
  0xe9   :  { %3807 = vmatpush1.bf16.msra.mxu1 %v7304_v3  ;;  %v379_v3 = vld [vmem:[#allocation3 + $0x7a0] sm:$0xff] }
  0xea   :  { %3848 = vmatpush1.bf16.msra.mxu0 %v7432_v4  ;;  %3808 = vmatprep.subr.bf16.mxu1 %v7313_v5  ;;  %v503_v4 = vld [vmem:[#allocation3 + $0xb80] sm:$0xff]  ;;  %v7497_v5 = vcombine.high %v495_v59, %v499_v61  ;;  %v7376_v16 = vcombine.low %v375_v2, %v379_v3  ;;  %v168_v61 = vld [vmem:[#allocation3 + $0x108] sm:$0xff] }
  0xeb   :  { %3849 = vmatprep.subr.bf16.mxu0 %v7441_v9  ;;  %v7377_v9 = vcombine.high %v375_v2, %v379_v3  ;;  %v7504_v17 = vcombine.low %v503_v4, %v507_v6  ;;  %v535_v12 = vld [vmem:[#allocation3 + $0xc80] sm:$0xff] }
  0xec   :  { %v539_v43 = vld [vmem:[#allocation3 + $0xca0] sm:$0xff] }
  0xed   :  { %3809 = vmatpush1.bf16.msra.mxu1 %v7312_v11  ;;  %v387_v11 = vld [vmem:[#allocation3 + $0x7e0] sm:$0xff]  ;;  %v7537_v50 = vcombine.high %v535_v12, %v539_v43 }
  0xee   :  { %3850 = vmatpush1.bf16.msra.mxu0 %v7440_v13  ;;  %3810 = vmatprep.subr.bf16.mxu1 %v7321_v14  ;;  %v511_v13 = vld [vmem:[#allocation3 + $0xbc0] sm:$0xff]  ;;  %v7505_v14 = vcombine.high %v503_v4, %v507_v6  ;;  %v176_v6 = vld [vmem:[#allocation3 + $0x148] sm:$0xff] }
  0xef   :  { %3851 = vmatprep.subr.bf16.mxu0 %v7449_v18  ;;  %v7385_v18 = vcombine.high %v383_v10, %v387_v11  ;;  %v543_v51 = vld [vmem:[#allocation3 + $0xcc0] sm:$0xff] }
  0xf0   :  { %v551_v59 = vld [vmem:[#allocation3 + $0xd00] sm:$0xff] }
  0xf1   :  { %3811 = vmatpush1.bf16.msra.mxu1 %v7320_v20  ;;  %v523_v20 = vld [vmem:[#allocation3 + $0xc20] sm:$0xff] }
  0xf2   :  { %3852 = vmatpush1.bf16.msra.mxu0 %v7448_v21  ;;  %3812 = vmatprep.subr.bf16.mxu1 %v7329_v22  ;;  %v136_v21 = vld [vmem:[#allocation3 + $0x8] sm:$0xff]  ;;  %v7513_v22 = vcombine.high %v511_v13, %v515_v15  ;;  %v559_v4 = vld [vmem:[#allocation3 + $0xd40] sm:$0xff] }
  0xf3   :  { %3853 = vmatprep.subr.bf16.mxu0 %v7457_v28  ;;  %v7384_v28 = vcombine.low %v383_v10, %v387_v11  ;;  %v7139_v1 = vcombine.high %v136_v21, %v140_v26 }
  0xf5   :  { %3813 = vmatpush1.bf16.msra.mxu1 %v7328_v30  ;;  %v7512_v30 = vcombine.low %v511_v13, %v515_v15  ;;  %v567_v13 = vld [vmem:[#allocation3 + $0xd80] sm:$0xff]  ;;  %v184_v15 = vld [vmem:[#allocation3 + $0x188] sm:$0xff] }
  0xf6   :  { %3854 = vmatpush1.bf16.msra.mxu0 %v7456_v31  ;;  %3814 = vmatprep.subr.bf16.mxu1 %v7337_v32  ;;  %v7521_v31 = vcombine.high %v519_v19, %v523_v20  ;;  %v531_v32 = vld [vmem:[#allocation3 + $0xc60] sm:$0xff] }
  0xf7   :  { %3855 = vmatprep.subr.bf16.mxu0 %v7465_v37  ;;  %v124_v37 = vld [vmem:[%s9333_s0 + $0x38] sm:$0xff]  ;;  %v7529_v42 = vcombine.high %v527_v29, %v531_v32 }
  0xf9   :  { %3815 = vmatpush1.bf16.msra.mxu1 %v7336_v39  ;;  %v7520_v39 = vcombine.low %v519_v19, %v523_v20 }
  0xfa   :  { %3856 = vmatpush1.bf16.msra.mxu0 %v7464_v40  ;;  %3816 = vmatprep.subr.bf16.mxu1 %v7345_v41  ;;  %v9084_v40 = vpack.c.bf16 %v121_v27, %v121_v27  ;;  %v7138_v41 = vcombine.low %v136_v21, %v140_v26  ;;  %v575_v21 = vld [vmem:[#allocation3 + $0xdc0] sm:$0xff]  ;;  %v196_v27 = vld [vmem:[#allocation3 + $0x1e8] sm:$0xff] }
  0xfb   :  { %3857 = vmatprep.subr.bf16.mxu0 %v7473_v44  ;;  %v152_v44 = vld [vmem:[#allocation3 + $0x88] sm:$0xff]  ;;  %v7195_v36 = vcombine.high %v192_v25, %v196_v27 }
  0xfd   :  { %3817 = vmatpush1.bf16.msra.mxu1 %v7344_v46  ;;  %v156_v46 = vld [vmem:[#allocation3 + $0xa8] sm:$0xff] }
  0xfe   :  { %3858 = vmatpush1.bf16.msra.mxu0 %v7472_v47  ;;  %3818 = vmatprep.subr.bf16.mxu1 %v7353_v48  ;;  %v9086_v47 = vpack.c.bf16 %v124_v37, %v124_v37  ;;  %v7528_v48 = vcombine.low %v527_v29, %v531_v32  ;;  %v7154_v57 = vcombine.low %v152_v44, %v156_v46  ;;  %v587_v32 = vld [vmem:[#allocation3 + $0xe20] sm:$0xff] }
  0xff   :  { %3859 = vmatprep.subr.bf16.mxu0 %v7481_v52  ;;  %v547_v52 = vld [vmem:[#allocation3 + $0xce0] sm:$0xff] }
 0x100   :  { %v7545_v58 = vcombine.high %v543_v51, %v547_v52 }
 0x101   :  { %3819 = vmatpush1.bf16.msra.mxu1 %v7352_v54  ;;  %v7155_v54 = vcombine.high %v152_v44, %v156_v46 }
 0x102   :  { %3860 = vmatpush1.bf16.msra.mxu0 %v7480_v55  ;;  %3820 = vmatprep.subr.bf16.mxu1 %v7361_v56  ;;  %v164_v55 = vld [vmem:[#allocation3 + $0xe8] sm:$0xff]  ;;  %v7536_v56 = vcombine.low %v535_v12, %v539_v43  ;;  %v595_v12 = vld [vmem:[#allocation3 + $0xe60] sm:$0xff] }
 0x103   :  { %3861 = vmatprep.subr.bf16.mxu0 %v7489_v60  ;;  %v555_v60 = vld [vmem:[#allocation3 + $0xd20] sm:$0xff]  ;;  %v7162_v2 = vcombine.low %v160_v53, %v164_v55  ;;  %v208_v43 = vld [vmem:[#allocation3 + $0x248] sm:$0xff] }
 0x104   :  { %v7553_v3 = vcombine.high %v551_v59, %v555_v60 }
 0x105   :  { %3821 = vmatpush1.bf16.msra.mxu1 %v7360_v62  ;;  %v7163_v62 = vcombine.high %v160_v53, %v164_v55 }
 0x106   :  { %3862 = vmatpush1.bf16.msra.mxu0 %v7488_v63  ;;  %3822 = vmatprep.subr.bf16.mxu1 %v7369_v0  ;;  %v172_v63 = vld [vmem:[#allocation3 + $0x128] sm:$0xff]  ;;  %v7544_v0 = vcombine.low %v543_v51, %v547_v52  ;;  %v603_v51 = vld [vmem:[#allocation3 + $0xea0] sm:$0xff] }
 0x107   :  { %3863 = vmatprep.subr.bf16.mxu0 %v7497_v5  ;;  %v563_v5 = vld [vmem:[#allocation3 + $0xd60] sm:$0xff]  ;;  %v7170_v10 = vcombine.low %v168_v61, %v172_v63  ;;  %v216_v52 = vld [vmem:[#allocation3 + $0x288] sm:$0xff] }
 0x108   :  { %v7561_v11 = vcombine.high %v559_v4, %v563_v5 }
 0x109   :  { %3823 = vmatpush1.bf16.msra.mxu1 %v7368_v7  ;;  %v7171_v7 = vcombine.high %v168_v61, %v172_v63 }
 0x10a   :  { %3864 = vmatpush1.bf16.msra.mxu0 %v7496_v8  ;;  %3824 = vmatprep.subr.bf16.mxu1 %v7377_v9  ;;  %v180_v8 = vld [vmem:[#allocation3 + $0x168] sm:$0xff]  ;;  %v7552_v9 = vcombine.low %v551_v59, %v555_v60  ;;  %v611_v59 = vld [vmem:[#allocation3 + $0xee0] sm:$0xff] }
 0x10b   :  { %3865 = vmatprep.subr.bf16.mxu0 %v7505_v14  ;;  %v571_v14 = vld [vmem:[#allocation3 + $0xda0] sm:$0xff]  ;;  %v7178_v19 = vcombine.low %v176_v6, %v180_v8  ;;  %v224_v60 = vld [vmem:[#allocation3 + $0x2c8] sm:$0xff] }
 0x10c   :  { %v7569_v20 = vcombine.high %v567_v13, %v571_v14 }
 0x10d   :  { %3825 = vmatpush1.bf16.msra.mxu1 %v7376_v16  ;;  %v7179_v16 = vcombine.high %v176_v6, %v180_v8 }
 0x10e   :  { %3866 = vmatpush1.bf16.msra.mxu0 %v7504_v17  ;;  %3826 = vmatprep.subr.bf16.mxu1 %v7385_v18  ;;  %v188_v17 = vld [vmem:[#allocation3 + $0x1a8] sm:$0xff]  ;;  %v7560_v18 = vcombine.low %v559_v4, %v563_v5  ;;  %v619_v4 = vld [vmem:[#allocation3 + $0xf20] sm:$0xff] }
 0x10f   :  { %3867 = vmatprep.subr.bf16.mxu0 %v7513_v22  ;;  %v579_v22 = vld [vmem:[#allocation3 + $0xde0] sm:$0xff]  ;;  %v7187_v26 = vcombine.high %v184_v15, %v188_v17  ;;  %v7186_v29 = vcombine.low %v184_v15, %v188_v17  ;;  %v232_v5 = vld [vmem:[#allocation3 + $0x308] sm:$0xff] }
 0x110   :  { %v7576_v37 = vcombine.low %v575_v21, %v579_v22 }
 0x111   :  { %3827 = vmatpush1.bf16.msra.mxu1 %v7384_v28  ;;  %v7568_v28 = vcombine.low %v567_v13, %v571_v14  ;;  %v627_v13 = vld [vmem:[#allocation3 + $0xf60] sm:$0xff]  ;;  %v240_v14 = vld [vmem:[#allocation3 + $0x348] sm:$0xff] }
 0x112   :  { %3868 = vmatpush1.bf16.msra.mxu0 %v7512_v30  ;;  %3878 = vmatprep.subr.bf16.mxu1 %v7521_v31  ;;  %v7577_v30 = vcombine.high %v575_v21, %v579_v22  ;;  %v583_v31 = vld [vmem:[#allocation3 + $0xe00] sm:$0xff]  ;;  %v248_v22 = vld [vmem:[#allocation3 + $0x388] sm:$0xff] }
 0x113   :  { %3919 = vmatprep.subr.bf16.mxu0 %v7139_v1  ;;  %v204_v1 = vld [vmem:[#allocation3 + $0x228] sm:$0xff]  ;;  %v7584_v46 = vcombine.low %v583_v31, %v587_v32  ;;  %v635_v21 = vld [vmem:[#allocation3 + $0xfa0] sm:$0xff] }
 0x114   :  { %3829 = vmatmul.mubr.bf16.vlgmr.msra.gmra.mrb[12].mxu1 %v9082_v38  ;;  %v7203_v44 = vcombine.high %v200_v33, %v204_v1 }
 0x115   :  { %3870 = vmatmul.mubr.bf16.vlgmr.msra.gmra.mrb[8].mxu0 %v9084_v40  ;;  %3879 = vmatpush1.bf16.msra.mxu1 %v7520_v39  ;;  %v7194_v39 = vcombine.low %v192_v25, %v196_v27 }
 0x116   :  { %3920 = vmatpush1.bf16.msra.mxu0 %v7138_v41  ;;  %3880 = vmatprep.subr.bf16.mxu1 %v7529_v42  ;;  %v7585_v41 = vcombine.high %v583_v31, %v587_v32  ;;  %v591_v42 = vld [vmem:[#allocation3 + $0xe40] sm:$0xff]  ;;  %v256_v32 = vld [vmem:[#allocation3 + $0x3c8] sm:$0xff] }
 0x117   :  { %3921 = vmatprep.subr.bf16.mxu0 %v7147_v45  ;;  %3910 = vmatprep.mubr.bf16.mxu1 %v9086_v47  ;;  %v212_v45 = vld [vmem:[#allocation3 + $0x268] sm:$0xff]  ;;  %v7592_v55 = vcombine.low %v591_v42, %v595_v12  ;;  %v643_v31 = vld [vmem:[#allocation3 + $0xfe0] sm:$0xff] }
 0x118   :  { %3951 = vmatprep.mubr.bf16.mxu0 %v8969_v24  ;;  %v7211_v53 = vcombine.high %v208_v43, %v212_v45 }
 0x119   :  { %3881 = vmatpush1.bf16.msra.mxu1 %v7528_v48  ;;  %v7202_v48 = vcombine.low %v200_v33, %v204_v1 }
 0x11a   :  { %3922 = vmatpush1.bf16.msra.mxu0 %v7146_v49  ;;  %3882 = vmatprep.subr.bf16.mxu1 %v7537_v50  ;;  %v7593_v49 = vcombine.high %v591_v42, %v595_v12  ;;  %v599_v50 = vld [vmem:[#allocation3 + $0xe80] sm:$0xff]  ;;  %v268_v42 = vld [vmem:[#allocation3 + $0x428] sm:$0xff] }
 0x11b   :  { %3923 = vmatprep.subr.bf16.mxu0 %v7155_v54  ;;  %v220_v54 = vld [vmem:[#allocation3 + $0x2a8] sm:$0xff]  ;;  %v7600_v63 = vcombine.low %v599_v50, %v603_v51 }
 0x11c   :  { %v7219_v61 = vcombine.high %v216_v52, %v220_v54  ;;  %v392_v12 = vld [vmem:[#allocation3 + $0x808] sm:$0xff] }
 0x11d   :  { %3883 = vmatpush1.bf16.msra.mxu1 %v7536_v56  ;;  %v7210_v56 = vcombine.low %v208_v43, %v212_v45  ;;  %v396_v45 = vld [vmem:[#allocation3 + $0x828] sm:$0xff] }
 0x11e   :  { %3924 = vmatpush1.bf16.msra.mxu0 %v7154_v57  ;;  %3884 = vmatprep.subr.bf16.mxu1 %v7545_v58  ;;  %v7601_v57 = vcombine.high %v599_v50, %v603_v51  ;;  %v607_v58 = vld [vmem:[#allocation3 + $0xec0] sm:$0xff]  ;;  %v272_v50 = vld [vmem:[#allocation3 + $0x448] sm:$0xff] }
 0x11f   :  { %3925 = vmatprep.subr.bf16.mxu0 %v7163_v62  ;;  %v228_v62 = vld [vmem:[#allocation3 + $0x2e8] sm:$0xff]  ;;  %v7608_v8 = vcombine.low %v607_v58, %v611_v59 }
 0x120   :  { %v7227_v6 = vcombine.high %v224_v60, %v228_v62  ;;  %v276_v51 = vld [vmem:[#allocation3 + $0x468] sm:$0xff] }
 0x121   :  { %3885 = vmatpush1.bf16.msra.mxu1 %v7544_v0  ;;  %v7218_v0 = vcombine.low %v216_v52, %v220_v54  ;;  %v400_v52 = vld [vmem:[#allocation3 + $0x848] sm:$0xff] }
 0x122   :  { %3926 = vmatpush1.bf16.msra.mxu0 %v7162_v2  ;;  %3886 = vmatprep.subr.bf16.mxu1 %v7553_v3  ;;  %v7609_v2 = vcombine.high %v607_v58, %v611_v59  ;;  %v615_v3 = vld [vmem:[#allocation3 + $0xf00] sm:$0xff]  ;;  %v404_v54 = vld [vmem:[#allocation3 + $0x868] sm:$0xff]  ;;  %v7275_v58 = vcombine.high %v272_v50, %v276_v51 }
 0x123   :  { %3927 = vmatprep.subr.bf16.mxu0 %v7171_v7  ;;  %v236_v7 = vld [vmem:[#allocation3 + $0x328] sm:$0xff]  ;;  %v7616_v17 = vcombine.low %v615_v3, %v619_v4 }
 0x124   :  { %v7235_v15 = vcombine.high %v232_v5, %v236_v7  ;;  %v280_v59 = vld [vmem:[#allocation3 + $0x488] sm:$0xff] }
 0x125   :  { %3887 = vmatpush1.bf16.msra.mxu1 %v7552_v9  ;;  %v7226_v9 = vcombine.low %v224_v60, %v228_v62  ;;  %v284_v60 = vld [vmem:[#allocation3 + $0x4a8] sm:$0xff]  ;;  %v7403_v62 = vcombine.high %v400_v52, %v404_v54 }
 0x126   :  { %3928 = vmatpush1.bf16.msra.mxu0 %v7170_v10  ;;  %3888 = vmatprep.subr.bf16.mxu1 %v7561_v11  ;;  %v7617_v10 = vcombine.high %v615_v3, %v619_v4  ;;  %v623_v11 = vld [vmem:[#allocation3 + $0xf40] sm:$0xff]  ;;  %v7283_v3 = vcombine.high %v280_v59, %v284_v60  ;;  %v288_v4 = vld [vmem:[#allocation3 + $0x4c8] sm:$0xff] }
 0x127   :  { %3929 = vmatprep.subr.bf16.mxu0 %v7179_v16  ;;  %v244_v16 = vld [vmem:[#allocation3 + $0x368] sm:$0xff]  ;;  %v7624_v27 = vcombine.low %v623_v11, %v627_v13 }
 0x128   :  { %v7243_v25 = vcombine.high %v240_v14, %v244_v16 }
 0x129   :  { %3889 = vmatpush1.bf16.msra.mxu1 %v7560_v18  ;;  %v7234_v18 = vcombine.low %v232_v5, %v236_v7  ;;  %v292_v5 = vld [vmem:[#allocation3 + $0x4e8] sm:$0xff] }
 0x12a   :  { %3930 = vmatpush1.bf16.msra.mxu0 %v7178_v19  ;;  %3890 = vmatprep.subr.bf16.mxu1 %v7569_v20  ;;  %v7625_v19 = vcombine.high %v623_v11, %v627_v13  ;;  %v631_v20 = vld [vmem:[#allocation3 + $0xf80] sm:$0xff]  ;;  %v7291_v11 = vcombine.high %v288_v4, %v292_v5  ;;  %v296_v13 = vld [vmem:[#allocation3 + $0x508] sm:$0xff] }
 0x12b   :  { %3931 = vmatprep.subr.bf16.mxu0 %v7187_v26  ;;  %v252_v26 = vld [vmem:[#allocation3 + $0x3a8] sm:$0xff]  ;;  %v7632_v1 = vcombine.low %v631_v20, %v635_v21 }
 0x12c   :  { %v7251_v33 = vcombine.high %v248_v22, %v252_v26 }
 0x12d   :  { %3891 = vmatpush1.bf16.msra.mxu1 %v7568_v28  ;;  %v7242_v28 = vcombine.low %v240_v14, %v244_v16  ;;  %v300_v14 = vld [vmem:[#allocation3 + $0x528] sm:$0xff] }
 0x12e   :  { %3932 = vmatpush1.bf16.msra.mxu0 %v7186_v29  ;;  %3892 = vmatprep.subr.bf16.mxu1 %v7577_v30  ;;  %v7633_v29 = vcombine.high %v631_v20, %v635_v21  ;;  %v639_v30 = vld [vmem:[#allocation3 + $0xfc0] sm:$0xff]  ;;  %v7299_v20 = vcombine.high %v296_v13, %v300_v14  ;;  %v304_v21 = vld [vmem:[#allocation3 + $0x548] sm:$0xff] }
 0x12f   :  { %3933 = vmatprep.subr.bf16.mxu0 %v7195_v36  ;;  %v260_v36 = vld [vmem:[#allocation3 + $0x3e8] sm:$0xff] }
 0x130   :  { %v7259_v43 = vcombine.high %v256_v32, %v260_v36 }
 0x131   :  { %3893 = vmatpush1.bf16.msra.mxu1 %v7576_v37  ;;  %v7250_v37 = vcombine.low %v248_v22, %v252_v26  ;;  %v308_v22 = vld [vmem:[#allocation3 + $0x568] sm:$0xff] }
 0x132   :  { %3934 = vmatpush1.bf16.msra.mxu0 %v7194_v39  ;;  %3894 = vmatprep.subr.bf16.mxu1 %v7585_v41  ;;  %v7641_v39 = vcombine.high %v639_v30, %v643_v31  ;;  %v264_v41 = vld [vmem:[#allocation3 + $0x408] sm:$0xff] }
 0x133   :  { %3935 = vmatprep.subr.bf16.mxu0 %v7203_v44  ;;  %v123_v44 = vld [vmem:[%s9333_s0 + $0x30] sm:$0xff] }
 0x135   :  { %3895 = vmatpush1.bf16.msra.mxu1 %v7584_v46  ;;  %v7640_v46 = vcombine.low %v639_v30, %v643_v31  ;;  %v7307_v30 = vcombine.high %v304_v21, %v308_v22  ;;  %v312_v31 = vld [vmem:[#allocation3 + $0x588] sm:$0xff] }
 0x136   :  { %3936 = vmatpush1.bf16.msra.mxu0 %v7202_v48  ;;  %3896 = vmatprep.subr.bf16.mxu1 %v7593_v49  ;;  %v7258_v48 = vcombine.low %v256_v32, %v260_v36  ;;  %v7267_v49 = vcombine.high %v264_v41, %v268_v42  ;;  %v316_v32 = vld [vmem:[#allocation3 + $0x5a8] sm:$0xff] }
 0x137   :  { %3937 = vmatprep.subr.bf16.mxu0 %v7211_v53  ;;  %v7395_v53 = vcombine.high %v392_v12, %v396_v45 }
 0x139   :  { %3897 = vmatpush1.bf16.msra.mxu1 %v7592_v55  ;;  %v9095_v55 = vpack.c.bf16 %v123_v44, %v123_v44  ;;  %v324_v44 = vld [vmem:[#allocation3 + $0x5e8] sm:$0xff] }
 0x13a   :  { %3938 = vmatpush1.bf16.msra.mxu0 %v7210_v56  ;;  %3898 = vmatprep.subr.bf16.mxu1 %v7601_v57  ;;  %v7266_v56 = vcombine.low %v264_v41, %v268_v42  ;;  %v7394_v57 = vcombine.low %v392_v12, %v396_v45  ;;  %v7315_v41 = vcombine.high %v312_v31, %v316_v32 }
 0x13b   :  { %3939 = vmatprep.subr.bf16.mxu0 %v7219_v61  ;;  %v408_v61 = vld [vmem:[#allocation3 + $0x888] sm:$0xff] }
 0x13d   :  { %3899 = vmatpush1.bf16.msra.mxu1 %v7600_v63  ;;  %v412_v63 = vld [vmem:[#allocation3 + $0x8a8] sm:$0xff] }
 0x13e   :  { %3940 = vmatpush1.bf16.msra.mxu0 %v7218_v0  ;;  %3900 = vmatprep.subr.bf16.mxu1 %v7609_v2  ;;  %v7274_v0 = vcombine.low %v272_v50, %v276_v51  ;;  %v7402_v2 = vcombine.low %v400_v52, %v404_v54  ;;  %v7411_v7 = vcombine.high %v408_v61, %v412_v63 }
 0x13f   :  { %3941 = vmatprep.subr.bf16.mxu0 %v7227_v6  ;;  %v416_v6 = vld [vmem:[#allocation3 + $0x8c8] sm:$0xff]  ;;  %v7314_v51 = vcombine.low %v312_v31, %v316_v32 }
 0x140   :  { %v360_v32 = vld [vmem:[#allocation3 + $0x708] sm:$0xff] }
 0x141   :  { %3901 = vmatpush1.bf16.msra.mxu1 %v7608_v8  ;;  %v420_v8 = vld [vmem:[#allocation3 + $0x8e8] sm:$0xff] }
 0x142   :  { %3942 = vmatpush1.bf16.msra.mxu0 %v7226_v9  ;;  %3902 = vmatprep.subr.bf16.mxu1 %v7617_v10  ;;  %v7282_v9 = vcombine.low %v280_v59, %v284_v60  ;;  %v7410_v10 = vcombine.low %v408_v61, %v412_v63  ;;  %v7419_v16 = vcombine.high %v416_v6, %v420_v8  ;;  %v328_v59 = vld [vmem:[#allocation3 + $0x608] sm:$0xff] }
 0x143   :  { %3943 = vmatprep.subr.bf16.mxu0 %v7235_v15  ;;  %v424_v15 = vld [vmem:[#allocation3 + $0x908] sm:$0xff] }
 0x144   :  { %v332_v60 = vld [vmem:[#allocation3 + $0x628] sm:$0xff] }
 0x145   :  { %3903 = vmatpush1.bf16.msra.mxu1 %v7616_v17  ;;  %v428_v17 = vld [vmem:[#allocation3 + $0x928] sm:$0xff] }
 0x146   :  { %3944 = vmatpush1.bf16.msra.mxu0 %v7234_v18  ;;  %3904 = vmatprep.subr.bf16.mxu1 %v7625_v19  ;;  %v7290_v18 = vcombine.low %v288_v4, %v292_v5  ;;  %v7418_v19 = vcombine.low %v416_v6, %v420_v8  ;;  %v7427_v26 = vcombine.high %v424_v15, %v428_v17  ;;  %v460_v63 = vld [vmem:[#allocation3 + $0xa28] sm:$0xff] }
 0x147   :  { %3945 = vmatprep.subr.bf16.mxu0 %v7243_v25  ;;  %v432_v25 = vld [vmem:[#allocation3 + $0x948] sm:$0xff] }
 0x148   :  { %v336_v5 = vld [vmem:[#allocation3 + $0x648] sm:$0xff] }
 0x149   :  { %3905 = vmatpush1.bf16.msra.mxu1 %v7624_v27  ;;  %v436_v27 = vld [vmem:[#allocation3 + $0x968] sm:$0xff] }
 0x14a   :  { %3946 = vmatpush1.bf16.msra.mxu0 %v7242_v28  ;;  %3906 = vmatprep.subr.bf16.mxu1 %v7633_v29  ;;  %v7298_v28 = vcombine.low %v296_v13, %v300_v14  ;;  %v7426_v29 = vcombine.low %v424_v15, %v428_v17  ;;  %v7435_v36 = vcombine.high %v432_v25, %v436_v27  ;;  %v340_v6 = vld [vmem:[#allocation3 + $0x668] sm:$0xff] }
 0x14b   :  { %3947 = vmatprep.subr.bf16.mxu0 %v7251_v33  ;;  %v440_v33 = vld [vmem:[#allocation3 + $0x988] sm:$0xff] }
 0x14c   :  { %v468_v8 = vld [vmem:[#allocation3 + $0xa68] sm:$0xff] }
 0x14d   :  { %3907 = vmatpush1.bf16.msra.mxu1 %v7632_v1  ;;  %v444_v1 = vld [vmem:[#allocation3 + $0x9a8] sm:$0xff] }
 0x14e   :  { %3948 = vmatpush1.bf16.msra.mxu0 %v7250_v37  ;;  %3908 = vmatprep.subr.bf16.mxu1 %v7641_v39  ;;  %v7306_v37 = vcombine.low %v304_v21, %v308_v22  ;;  %v7434_v39 = vcombine.low %v432_v25, %v436_v27  ;;  %v7443_v12 = vcombine.high %v440_v33, %v444_v1  ;;  %v344_v14 = vld [vmem:[#allocation3 + $0x688] sm:$0xff] }
 0x14f   :  { %3949 = vmatprep.subr.bf16.mxu0 %v7259_v43  ;;  %v320_v43 = vld [vmem:[#allocation3 + $0x5c8] sm:$0xff]  ;;  %v7442_v54 = vcombine.low %v440_v33, %v444_v1 }
 0x150   :  { %v348_v15 = vld [vmem:[#allocation3 + $0x6a8] sm:$0xff] }
 0x151   :  { %3909 = vmatpush1.bf16.msra.mxu1 %v7640_v46  ;;  %v448_v46 = vld [vmem:[#allocation3 + $0x9c8] sm:$0xff] }
 0x152   :  { %3950 = vmatpush1.bf16.msra.mxu0 %v7258_v48  ;;  %3960 = vmatprep.subr.bf16.mxu1 %v7267_v49  ;;  %v452_v48 = vld [vmem:[#allocation3 + $0x9e8] sm:$0xff] }
 0x153   :  { %4001 = vmatprep.subr.bf16.mxu0 %v7395_v53  ;;  %v476_v17 = vld [vmem:[#allocation3 + $0xaa8] sm:$0xff] }
 0x154   :  { %3911 = vmatmul.mubr.bf16.vlgmr.msra.gmra.mrb[16].mxu1 %v9095_v55  ;;  %v352_v22 = vld [vmem:[#allocation3 + $0x6c8] sm:$0xff] }
 0x155   :  { %3952 = vmatmul.mubr.bf16.vlgmr.msra.gmra.mrb[12].mxu0 %v9060_v23  ;;  %3961 = vmatpush1.bf16.msra.mxu1 %v7266_v56  ;;  %v7323_v56 = vcombine.high %v320_v43, %v324_v44  ;;  %v356_v25 = vld [vmem:[#allocation3 + $0x6e8] sm:$0xff] }
 0x156   :  { %4002 = vmatpush1.bf16.msra.mxu0 %v7394_v57  ;;  %3962 = vmatprep.subr.bf16.mxu1 %v7275_v58  ;;  %v7451_v58 = vcombine.high %v448_v46, %v452_v48  ;;  %v484_v27 = vld [vmem:[#allocation3 + $0xae8] sm:$0xff] }
 0x157   :  { %4003 = vmatprep.subr.bf16.mxu0 %v7403_v62  ;;  %3992 = vmatprep.mubr.bf16.mxu1 %v9065_v34  ;;  %v456_v62 = vld [vmem:[#allocation3 + $0xa08] sm:$0xff] }
 0x158   :  { %4033 = vmatprep.mubr.bf16.mxu0 %v9068_v35  ;;  %v7459_v4 = vcombine.high %v456_v62, %v460_v63  ;;  %v364_v33 = vld [vmem:[#allocation3 + $0x728] sm:$0xff] }
 0x159   :  { %3963 = vmatpush1.bf16.msra.mxu1 %v7274_v0  ;;  %v7322_v0 = vcombine.low %v320_v43, %v324_v44  ;;  %v492_v1 = vld [vmem:[#allocation3 + $0xb28] sm:$0xff] }
 0x15a   :  { %4004 = vmatpush1.bf16.msra.mxu0 %v7402_v2  ;;  %3964 = vmatprep.subr.bf16.mxu1 %v7283_v3  ;;  %v7450_v2 = vcombine.low %v448_v46, %v452_v48  ;;  %v7331_v3 = vcombine.high %v328_v59, %v332_v60  ;;  %v368_v43 = vld [vmem:[#allocation3 + $0x748] sm:$0xff] }
 0x15b   :  { %4005 = vmatprep.subr.bf16.mxu0 %v7411_v7  ;;  %v464_v7 = vld [vmem:[#allocation3 + $0xa48] sm:$0xff] }
 0x15c   :  { %v7467_v13 = vcombine.high %v464_v7, %v468_v8  ;;  %v372_v44 = vld [vmem:[#allocation3 + $0x768] sm:$0xff] }
 0x15d   :  { %3965 = vmatpush1.bf16.msra.mxu1 %v7282_v9  ;;  %v7330_v9 = vcombine.low %v328_v59, %v332_v60  ;;  %v496_v46 = vld [vmem:[#allocation3 + $0xb48] sm:$0xff]  ;;  %v7370_v60 = vcombine.low %v368_v43, %v372_v44 }
 0x15e   :  { %4006 = vmatpush1.bf16.msra.mxu0 %v7410_v10  ;;  %3966 = vmatprep.subr.bf16.mxu1 %v7291_v11  ;;  %v7458_v10 = vcombine.low %v456_v62, %v460_v63  ;;  %v7339_v11 = vcombine.high %v336_v5, %v340_v6  ;;  %v500_v48 = vld [vmem:[#allocation3 + $0xb68] sm:$0xff] }
 0x15f   :  { %4007 = vmatprep.subr.bf16.mxu0 %v7419_v16  ;;  %v472_v16 = vld [vmem:[#allocation3 + $0xa88] sm:$0xff] }
 0x160   :  { %v7475_v21 = vcombine.high %v472_v16, %v476_v17  ;;  %v508_v59 = vld [vmem:[#allocation3 + $0xba8] sm:$0xff] }
 0x161   :  { %3967 = vmatpush1.bf16.msra.mxu1 %v7290_v18  ;;  %v7338_v18 = vcombine.low %v336_v5, %v340_v6  ;;  %v512_v5 = vld [vmem:[#allocation3 + $0xbc8] sm:$0xff] }
 0x162   :  { %4008 = vmatpush1.bf16.msra.mxu0 %v7418_v19  ;;  %3968 = vmatprep.subr.bf16.mxu1 %v7299_v20  ;;  %v7466_v19 = vcombine.low %v464_v7, %v468_v8  ;;  %v7347_v20 = vcombine.high %v344_v14, %v348_v15  ;;  %v516_v6 = vld [vmem:[#allocation3 + $0xbe8] sm:$0xff] }
 0x163   :  { %4009 = vmatprep.subr.bf16.mxu0 %v7427_v26  ;;  %v480_v26 = vld [vmem:[#allocation3 + $0xac8] sm:$0xff] }
 0x164   :  { %v7483_v31 = vcombine.high %v480_v26, %v484_v27 }
 0x165   :  { %3969 = vmatpush1.bf16.msra.mxu1 %v7298_v28  ;;  %v7346_v28 = vcombine.low %v344_v14, %v348_v15  ;;  %v520_v14 = vld [vmem:[#allocation3 + $0xc08] sm:$0xff] }
 0x166   :  { %4010 = vmatpush1.bf16.msra.mxu0 %v7426_v29  ;;  %3970 = vmatprep.subr.bf16.mxu1 %v7307_v30  ;;  %v7474_v29 = vcombine.low %v472_v16, %v476_v17  ;;  %v7355_v30 = vcombine.high %v352_v22, %v356_v25  ;;  %v524_v15 = vld [vmem:[#allocation3 + $0xc28] sm:$0xff]  ;;  %v137_v16 = vld [vmem:[#allocation3 + $0x10] sm:$0xff] }
 0x167   :  { %v9101_v42 = vpop.f32.mrb[0].mxu1  ;;  %4011 = vmatprep.subr.bf16.mxu0 %v7435_v36  ;;  %v9105_v49 = vpop.f32.mrb[0].mxu0  ;;  %v488_v36 = vld [vmem:[#allocation3 + $0xb08] sm:$0xff]  ;;  %v141_v17 = vld [vmem:[#allocation3 + $0x30] sm:$0xff] }
 0x168   :  { %v9103_v45 = vpop.f32.mrb[1].mxu1  ;;  %v9107_v52 = vpop.f32.mrb[1].mxu0 }
 0x169   :  { %v1069_v50 = vpop.f32.mrb[2].mxu1  ;;  %3971 = vmatpush1.bf16.msra.mxu1 %v7306_v37  ;;  %v1151_v57 = vpop.f32.mrb[2].mxu0  ;;  %v7354_v37 = vcombine.low %v352_v22, %v356_v25  ;;  %v528_v22 = vld [vmem:[#allocation3 + $0xc48] sm:$0xff] }
 0x16a   :  { %4012 = vmatpush1.bf16.msra.mxu0 %v7434_v39  ;;  %v1070_v53 = vpop.f32.mrb[3].mxu1  ;;  %3972 = vmatprep.subr.bf16.mxu1 %v7315_v41  ;;  %v1152_v61 = vpop.f32.mrb[3].mxu0  ;;  %v7482_v39 = vcombine.low %v480_v26, %v484_v27  ;;  %v7363_v41 = vcombine.high %v360_v32, %v364_v33  ;;  %v7362_v50 = vcombine.low %v360_v32, %v364_v33  ;;  %v380_v57 = vld [vmem:[#allocation3 + $0x7a8] sm:$0xff]  ;;  %v145_v26 = vld [vmem:[#allocation3 + $0x50] sm:$0xff] }
 0x16b   :  { %4013 = vmatprep.subr.bf16.mxu0 %v7443_v12  ;;  %v7491_v12 = vcombine.high %v488_v36, %v492_v1  ;;  %v7371_v53 = vcombine.high %v368_v43, %v372_v44  ;;  %v7498_v61 = vcombine.low %v496_v46, %v500_v48  ;;  %v532_v25 = vld [vmem:[#allocation3 + $0xc68] sm:$0xff]  ;;  %v149_v27 = vld [vmem:[#allocation3 + $0x70] sm:$0xff] }
 0x16c   :  { %v536_v32 = vld [vmem:[#allocation3 + $0xc88] sm:$0xff] }
 0x16d   :  { %3973 = vmatpush1.bf16.msra.mxu1 %v7314_v51  ;;  %v7490_v51 = vcombine.low %v488_v36, %v492_v1  ;;  %v540_v33 = vld [vmem:[#allocation3 + $0xca8] sm:$0xff]  ;;  %v153_v36 = vld [vmem:[#allocation3 + $0x90] sm:$0xff] }
 0x16e   :  { %4014 = vmatpush1.bf16.msra.mxu0 %v7442_v54  ;;  %3974 = vmatprep.subr.bf16.mxu1 %v7323_v56  ;;  %v7499_v54 = vcombine.high %v496_v46, %v500_v48  ;;  %v376_v56 = vld [vmem:[#allocation3 + $0x788] sm:$0xff]  ;;  %v157_v1 = vld [vmem:[#allocation3 + $0xb0] sm:$0xff] }
 0x16f   :  { %4015 = vmatprep.subr.bf16.mxu0 %v7451_v58  ;;  %v504_v58 = vld [vmem:[#allocation3 + $0xb88] sm:$0xff]  ;;  %v7379_v62 = vcombine.high %v376_v56, %v380_v57  ;;  %v7378_v8 = vcombine.low %v376_v56, %v380_v57  ;;  %v161_v46 = vld [vmem:[#allocation3 + $0xd0] sm:$0xff] }
 0x170   :  { %v544_v43 = vld [vmem:[#allocation3 + $0xcc8] sm:$0xff]  ;;  %v165_v48 = vld [vmem:[#allocation3 + $0xf0] sm:$0xff] }
 0x171   :  { %3975 = vmatpush1.bf16.msra.mxu1 %v7322_v0  ;;  %v7507_v0 = vcombine.high %v504_v58, %v508_v59  ;;  %v548_v44 = vld [vmem:[#allocation3 + $0xce8] sm:$0xff] }
 0x172   :  { %4016 = vmatpush1.bf16.msra.mxu0 %v7450_v2  ;;  %3976 = vmatprep.subr.bf16.mxu1 %v7331_v3  ;;  %v384_v2 = vld [vmem:[#allocation3 + $0x7c8] sm:$0xff] }
 0x173   :  { %4017 = vmatprep.subr.bf16.mxu0 %v7459_v4  ;;  %v388_v3 = vld [vmem:[#allocation3 + $0x7e8] sm:$0xff] }
 0x174   :  { %v552_v56 = vld [vmem:[#allocation3 + $0xd08] sm:$0xff] }
 0x175   :  { %3977 = vmatpush1.bf16.msra.mxu1 %v7330_v9  ;;  %v556_v57 = vld [vmem:[#allocation3 + $0xd28] sm:$0xff] }
 0x176   :  { %4018 = vmatpush1.bf16.msra.mxu0 %v7458_v10  ;;  %3978 = vmatprep.subr.bf16.mxu1 %v7339_v11  ;;  %v7506_v10 = vcombine.low %v504_v58, %v508_v59  ;;  %v7387_v11 = vcombine.high %v384_v2, %v388_v3  ;;  %v169_v58 = vld [vmem:[#allocation3 + $0x110] sm:$0xff] }
 0x177   :  { %4019 = vmatprep.subr.bf16.mxu0 %v7467_v13  ;;  %v7515_v13 = vcombine.high %v512_v5, %v516_v6  ;;  %v173_v59 = vld [vmem:[#allocation3 + $0x130] sm:$0xff] }
 0x179   :  { %3979 = vmatpush1.bf16.msra.mxu1 %v7338_v18  ;;  %v7386_v18 = vcombine.low %v384_v2, %v388_v3  ;;  %v560_v2 = vld [vmem:[#allocation3 + $0xd48] sm:$0xff] }
 0x17a   :  { %4020 = vmatpush1.bf16.msra.mxu0 %v7466_v19  ;;  %3980 = vmatprep.subr.bf16.mxu1 %v7347_v20  ;;  %v7514_v19 = vcombine.low %v512_v5, %v516_v6  ;;  %v7523_v20 = vcombine.high %v520_v14, %v524_v15  ;;  %v564_v3 = vld [vmem:[#allocation3 + $0xd68] sm:$0xff]  ;;  %v177_v5 = vld [vmem:[#allocation3 + $0x150] sm:$0xff] }
 0x17b   :  { %4021 = vmatprep.subr.bf16.mxu0 %v7475_v21  ;;  %v7141_v21 = vcombine.high %v137_v16, %v141_v17  ;;  %v181_v6 = vld [vmem:[#allocation3 + $0x170] sm:$0xff] }
 0x17d   :  { %3981 = vmatpush1.bf16.msra.mxu1 %v7346_v28  ;;  %v7522_v28 = vcombine.low %v520_v14, %v524_v15  ;;  %v185_v14 = vld [vmem:[#allocation3 + $0x190] sm:$0xff] }
 0x17e   :  { %4022 = vmatpush1.bf16.msra.mxu0 %v7474_v29  ;;  %3982 = vmatprep.subr.bf16.mxu1 %v7355_v30  ;;  %v7140_v29 = vcombine.low %v137_v16, %v141_v17  ;;  %v7531_v30 = vcombine.high %v528_v22, %v532_v25  ;;  %v189_v15 = vld [vmem:[#allocation3 + $0x1b0] sm:$0xff]  ;;  %v7562_v16 = vcombine.low %v560_v2, %v564_v3 }
 0x17f   :  { %4023 = vmatprep.subr.bf16.mxu0 %v7483_v31  ;;  %v7149_v31 = vcombine.high %v145_v26, %v149_v27  ;;  %v7180_v17 = vcombine.low %v177_v5, %v181_v6 }
 0x181   :  { %3983 = vmatpush1.bf16.msra.mxu1 %v7354_v37  ;;  %v7530_v37 = vcombine.low %v528_v22, %v532_v25  ;;  %v580_v22 = vld [vmem:[#allocation3 + $0xde8] sm:$0xff] }
 0x182   :  { %4024 = vmatpush1.bf16.msra.mxu0 %v7482_v39  ;;  %3984 = vmatprep.subr.bf16.mxu1 %v7363_v41  ;;  %v7148_v39 = vcombine.low %v145_v26, %v149_v27  ;;  %v7539_v41 = vcombine.high %v536_v32, %v540_v33  ;;  %v193_v27 = vld [vmem:[#allocation3 + $0x1d0] sm:$0xff] }
 0x183   :  { %4025 = vmatprep.subr.bf16.mxu0 %v7491_v12  ;;  %v7157_v12 = vcombine.high %v153_v36, %v157_v1 }
 0x185   :  { %3985 = vmatpush1.bf16.msra.mxu1 %v7362_v50  ;;  %v7538_v50 = vcombine.low %v536_v32, %v540_v33 }
 0x186   :  { %4026 = vmatpush1.bf16.msra.mxu0 %v7490_v51  ;;  %3986 = vmatprep.subr.bf16.mxu1 %v7371_v53  ;;  %v7156_v51 = vcombine.low %v153_v36, %v157_v1  ;;  %v7547_v53 = vcombine.high %v544_v43, %v548_v44  ;;  %v7188_v1 = vcombine.low %v185_v14, %v189_v15 }
 0x187   :  { %v9109_v63 = vpop.f32.mrb[4].mxu1  ;;  %4027 = vmatprep.subr.bf16.mxu0 %v7499_v54  ;;  %v7165_v54 = vcombine.high %v161_v46, %v165_v48 }
 0x188   :  { %v9111_v4 = vpop.f32.mrb[5].mxu1 }
 0x189   :  { %v1110_v7 = vpop.f32.mrb[6].mxu1  ;;  %3987 = vmatpush1.bf16.msra.mxu1 %v7370_v60  ;;  %v7546_v60 = vcombine.low %v544_v43, %v548_v44  ;;  %v588_v43 = vld [vmem:[#allocation3 + $0xe28] sm:$0xff] }
 0x18a   :  { %4028 = vmatpush1.bf16.msra.mxu0 %v7498_v61  ;;  %v1111_v9 = vpop.f32.mrb[7].mxu1  ;;  %3988 = vmatprep.subr.bf16.mxu1 %v7379_v62  ;;  %v7164_v61 = vcombine.low %v161_v46, %v165_v48  ;;  %v7555_v62 = vcombine.high %v552_v56, %v556_v57  ;;  %v7554_v7 = vcombine.low %v552_v56, %v556_v57  ;;  %v205_v46 = vld [vmem:[#allocation3 + $0x230] sm:$0xff] }
 0x18b   :  { %4029 = vmatprep.subr.bf16.mxu0 %v7507_v0  ;;  %v7173_v0 = vcombine.high %v169_v58, %v173_v59  ;;  %v7563_v9 = vcombine.high %v560_v2, %v564_v3  ;;  %v209_v56 = vld [vmem:[#allocation3 + $0x250] sm:$0xff] }
 0x18c   :  { %v213_v57 = vld [vmem:[#allocation3 + $0x270] sm:$0xff] }
 0x18d   :  { %3989 = vmatpush1.bf16.msra.mxu1 %v7378_v8  ;;  %v7172_v8 = vcombine.low %v169_v58, %v173_v59  ;;  %v217_v2 = vld [vmem:[#allocation3 + $0x290] sm:$0xff] }
 0x18e   :  { %4030 = vmatpush1.bf16.msra.mxu0 %v7506_v10  ;;  %3990 = vmatprep.subr.bf16.mxu1 %v7387_v11  ;;  %v7181_v10 = vcombine.high %v177_v5, %v181_v6  ;;  %v568_v11 = vld [vmem:[#allocation3 + $0xd88] sm:$0xff]  ;;  %v221_v3 = vld [vmem:[#allocation3 + $0x2b0] sm:$0xff]  ;;  %v7212_v6 = vcombine.low %v209_v56, %v213_v57 }
 0x18f   :  { %4031 = vmatprep.subr.bf16.mxu0 %v7515_v13  ;;  %v572_v13 = vld [vmem:[#allocation3 + $0xda8] sm:$0xff] }
 0x190   :  { %v7570_v32 = vcombine.low %v568_v11, %v572_v13 }
 0x191   :  { %3991 = vmatpush1.bf16.msra.mxu1 %v7386_v18  ;;  %v7571_v18 = vcombine.high %v568_v11, %v572_v13  ;;  %v225_v11 = vld [vmem:[#allocation3 + $0x2d0] sm:$0xff] }
 0x192   :  { %4032 = vmatpush1.bf16.msra.mxu0 %v7514_v19  ;;  %4042 = vmatprep.subr.bf16.mxu1 %v7523_v20  ;;  %v7189_v20 = vcombine.high %v185_v14, %v189_v15  ;;  %v229_v13 = vld [vmem:[#allocation3 + $0x2f0] sm:$0xff]  ;;  %v7220_v15 = vcombine.low %v217_v2, %v221_v3 }
 0x193   :  { %4083 = vmatprep.subr.bf16.mxu0 %v7141_v21  ;;  %v576_v21 = vld [vmem:[#allocation3 + $0xdc8] sm:$0xff] }
 0x194   :  { %3993 = vmatmul.mubr.bf16.vlgmr.msra.gmra.mrb[20].mxu1 %v9082_v38  ;;  %v7578_v48 = vcombine.low %v576_v21, %v580_v22 }
 0x195   :  { %4034 = vmatmul.mubr.bf16.vlgmr.msra.gmra.mrb[16].mxu0 %v9084_v40  ;;  %4043 = vmatpush1.bf16.msra.mxu1 %v7522_v28  ;;  %v197_v28 = vld [vmem:[#allocation3 + $0x1f0] sm:$0xff] }
 0x196   :  { %4084 = vmatpush1.bf16.msra.mxu0 %v7140_v29  ;;  %4044 = vmatprep.subr.bf16.mxu1 %v7531_v30 }
 0x197   :  { %4085 = vmatprep.subr.bf16.mxu0 %v7149_v31  ;;  %4074 = vmatprep.mubr.bf16.mxu1 %v9086_v47 }
 0x198   :  { %4115 = vmatprep.mubr.bf16.mxu0 %v8969_v24 }
 0x199   :  { %4045 = vmatpush1.bf16.msra.mxu1 %v7530_v37  ;;  %v7579_v37 = vcombine.high %v576_v21, %v580_v22  ;;  %v233_v21 = vld [vmem:[#allocation3 + $0x310] sm:$0xff] }
 0x19a   :  { %4086 = vmatpush1.bf16.msra.mxu0 %v7148_v39  ;;  %4046 = vmatprep.subr.bf16.mxu1 %v7539_v41  ;;  %v7197_v41 = vcombine.high %v193_v27, %v197_v28  ;;  %v237_v22 = vld [vmem:[#allocation3 + $0x330] sm:$0xff] }
 0x19b   :  { %4087 = vmatprep.subr.bf16.mxu0 %v7157_v12  ;;  %v584_v12 = vld [vmem:[#allocation3 + $0xe08] sm:$0xff] }
 0x19c   :  { %v7586_v58 = vcombine.low %v584_v12, %v588_v43 }
 0x19d   :  { %4047 = vmatpush1.bf16.msra.mxu1 %v7538_v50  ;;  %v7196_v50 = vcombine.low %v193_v27, %v197_v28  ;;  %v7228_v27 = vcombine.low %v225_v11, %v229_v13 }
 0x19e   :  { %4088 = vmatpush1.bf16.msra.mxu0 %v7156_v51  ;;  %4048 = vmatprep.subr.bf16.mxu1 %v7547_v53  ;;  %v592_v53 = vld [vmem:[#allocation3 + $0xe48] sm:$0xff] }
 0x19f   :  { %4089 = vmatprep.subr.bf16.mxu0 %v7165_v54  ;;  %v596_v54 = vld [vmem:[#allocation3 + $0xe68] sm:$0xff] }
 0x1a0   :  { %v7594_v5 = vcombine.low %v592_v53, %v596_v54 }
 0x1a1   :  { %4049 = vmatpush1.bf16.msra.mxu1 %v7546_v60  ;;  %v7595_v60 = vcombine.high %v592_v53, %v596_v54  ;;  %v640_v53 = vld [vmem:[#allocation3 + $0xfc8] sm:$0xff] }
 0x1a2   :  { %4090 = vmatpush1.bf16.msra.mxu0 %v7164_v61  ;;  %4050 = vmatprep.subr.bf16.mxu1 %v7555_v62  ;;  %v7213_v61 = vcombine.high %v209_v56, %v213_v57  ;;  %v600_v62 = vld [vmem:[#allocation3 + $0xe88] sm:$0xff]  ;;  %v257_v56 = vld [vmem:[#allocation3 + $0x3d0] sm:$0xff] }
 0x1a3   :  { %4091 = vmatprep.subr.bf16.mxu0 %v7173_v0  ;;  %v604_v0 = vld [vmem:[#allocation3 + $0xea8] sm:$0xff]  ;;  %v261_v57 = vld [vmem:[#allocation3 + $0x3f0] sm:$0xff] }
 0x1a4   :  { %v7602_v14 = vcombine.low %v600_v62, %v604_v0  ;;  %v644_v54 = vld [vmem:[#allocation3 + $0xfe8] sm:$0xff] }
 0x1a5   :  { %4051 = vmatpush1.bf16.msra.mxu1 %v7554_v7  ;;  %v7603_v7 = vcombine.high %v600_v62, %v604_v0  ;;  %v265_v62 = vld [vmem:[#allocation3 + $0x410] sm:$0xff] }
 0x1a6   :  { %4092 = vmatpush1.bf16.msra.mxu0 %v7172_v8  ;;  %4052 = vmatprep.subr.bf16.mxu1 %v7563_v9  ;;  %v7221_v8 = vcombine.high %v217_v2, %v221_v3  ;;  %v608_v9 = vld [vmem:[#allocation3 + $0xec8] sm:$0xff]  ;;  %v269_v0 = vld [vmem:[#allocation3 + $0x430] sm:$0xff] }
 0x1a7   :  { %v9117_v19 = vpop.f32.mrb[8].mxu1  ;;  %4093 = vmatprep.subr.bf16.mxu0 %v7181_v10  ;;  %v612_v10 = vld [vmem:[#allocation3 + $0xee8] sm:$0xff]  ;;  %v393_v2 = vld [vmem:[#allocation3 + $0x810] sm:$0xff] }
 0x1a8   :  { %v3789_v25 = vpop.f32.mrb[4].mxu0  ;;  %v9119_v26 = vpop.f32.mrb[9].mxu1  ;;  %v397_v3 = vld [vmem:[#allocation3 + $0x830] sm:$0xff] }
 0x1a9   :  { %v9122_v29 = vadd.f32 %v3789_v25, %v9101_v42  ;;  %v3791_v30 = vpop.f32.mrb[5].mxu0  ;;  %v1192_v31 = vpop.f32.mrb[10].mxu1  ;;  %4053 = vmatpush1.bf16.msra.mxu1 %v7562_v16  ;;  %v201_v42 = vld [vmem:[#allocation3 + $0x210] sm:$0xff]  ;;  %v7611_v16 = vcombine.high %v608_v9, %v612_v10  ;;  %v7610_v25 = vcombine.low %v608_v9, %v612_v10 }
 0x1aa   :  { %v9125_v33 = vadd.f32 %v3791_v30, %v9103_v45  ;;  %4094 = vmatpush1.bf16.msra.mxu0 %v7180_v17  ;;  %v1193_v36 = vpop.f32.mrb[11].mxu1  ;;  %4054 = vmatprep.subr.bf16.mxu1 %v7571_v18  ;;  %v3793_v39 = vpop.f32.mrb[6].mxu0  ;;  %v7587_v45 = vcombine.high %v584_v12, %v588_v43  ;;  %v7205_v51 = vcombine.high %v201_v42, %v205_v46  ;;  %v616_v18 = vld [vmem:[#allocation3 + $0xf08] sm:$0xff]  ;;  %v273_v9 = vld [vmem:[#allocation3 + $0x450] sm:$0xff] }
 0x1ab   :  { %4095 = vmatprep.subr.bf16.mxu0 %v7189_v20  ;;  %v3794_v44 = vpop.f32.mrb[7].mxu0  ;;  %v7204_v59 = vcombine.low %v201_v42, %v205_v46  ;;  %v7229_v17 = vcombine.high %v225_v11, %v229_v13  ;;  %v620_v20 = vld [vmem:[#allocation3 + $0xf28] sm:$0xff]  ;;  %v7237_v30 = vcombine.high %v233_v21, %v237_v22  ;;  %v241_v36 = vld [vmem:[#allocation3 + $0x350] sm:$0xff]  ;;  %v7236_v39 = vcombine.low %v233_v21, %v237_v22 }
 0x1ac   :  { %v7619_v28 = vcombine.high %v616_v18, %v620_v20  ;;  %v624_v31 = vld [vmem:[#allocation3 + $0xf48] sm:$0xff]  ;;  %v249_v42 = vld [vmem:[#allocation3 + $0x390] sm:$0xff] }
 0x1ad   :  { %4055 = vmatpush1.bf16.msra.mxu1 %v7570_v32  ;;  %v628_v32 = vld [vmem:[#allocation3 + $0xf68] sm:$0xff]  ;;  %v253_v46 = vld [vmem:[#allocation3 + $0x3b0] sm:$0xff] }
 0x1ae   :  { %4096 = vmatpush1.bf16.msra.mxu0 %v7188_v1  ;;  %4056 = vmatprep.subr.bf16.mxu1 %v7579_v37  ;;  %v245_v1 = vld [vmem:[#allocation3 + $0x370] sm:$0xff]  ;;  %v7618_v37 = vcombine.low %v616_v18, %v620_v20  ;;  %v632_v43 = vld [vmem:[#allocation3 + $0xf88] sm:$0xff] }
 0x1af   :  { %4097 = vmatprep.subr.bf16.mxu0 %v7197_v41  ;;  %v7627_v41 = vcombine.high %v624_v31, %v628_v32  ;;  %v7245_v12 = vcombine.high %v241_v36, %v245_v1  ;;  %v636_v44 = vld [vmem:[#allocation3 + $0xfa8] sm:$0xff]  ;;  %v277_v10 = vld [vmem:[#allocation3 + $0x470] sm:$0xff] }
 0x1b0   :  { %v401_v11 = vld [vmem:[#allocation3 + $0x850] sm:$0xff] }
 0x1b1   :  { %4057 = vmatpush1.bf16.msra.mxu1 %v7578_v48  ;;  %v7626_v48 = vcombine.low %v624_v31, %v628_v32  ;;  %v405_v13 = vld [vmem:[#allocation3 + $0x870] sm:$0xff] }
 0x1b2   :  { %4098 = vmatpush1.bf16.msra.mxu0 %v7196_v50  ;;  %4058 = vmatprep.subr.bf16.mxu1 %v7587_v45  ;;  %v7244_v50 = vcombine.low %v241_v36, %v245_v1  ;;  %v7635_v45 = vcombine.high %v632_v43, %v636_v44  ;;  %v281_v18 = vld [vmem:[#allocation3 + $0x490] sm:$0xff] }
 0x1b3   :  { %4099 = vmatprep.subr.bf16.mxu0 %v7205_v51  ;;  %v7253_v51 = vcombine.high %v249_v42, %v253_v46  ;;  %v285_v20 = vld [vmem:[#allocation3 + $0x4b0] sm:$0xff] }
 0x1b4   :  { %v409_v21 = vld [vmem:[#allocation3 + $0x890] sm:$0xff] }
 0x1b5   :  { %4059 = vmatpush1.bf16.msra.mxu1 %v7586_v58  ;;  %v7634_v58 = vcombine.low %v632_v43, %v636_v44  ;;  %v413_v22 = vld [vmem:[#allocation3 + $0x8b0] sm:$0xff] }
 0x1b6   :  { %4100 = vmatpush1.bf16.msra.mxu0 %v7204_v59  ;;  %4060 = vmatprep.subr.bf16.mxu1 %v7595_v60  ;;  %v7252_v59 = vcombine.low %v249_v42, %v253_v46  ;;  %v7643_v60 = vcombine.high %v640_v53, %v644_v54  ;;  %v289_v31 = vld [vmem:[#allocation3 + $0x4d0] sm:$0xff] }
 0x1b7   :  { %4101 = vmatprep.subr.bf16.mxu0 %v7213_v61  ;;  %v7261_v61 = vcombine.high %v257_v56, %v261_v57  ;;  %v293_v32 = vld [vmem:[#allocation3 + $0x4f0] sm:$0xff] }
 0x1b8   :  { %v417_v36 = vld [vmem:[#allocation3 + $0x8d0] sm:$0xff] }
 0x1b9   :  { %4061 = vmatpush1.bf16.msra.mxu1 %v7594_v5  ;;  %v7642_v5 = vcombine.low %v640_v53, %v644_v54  ;;  %v421_v1 = vld [vmem:[#allocation3 + $0x8f0] sm:$0xff] }
 0x1ba   :  { %4102 = vmatpush1.bf16.msra.mxu0 %v7212_v6  ;;  %4062 = vmatprep.subr.bf16.mxu1 %v7603_v7  ;;  %v7260_v6 = vcombine.low %v257_v56, %v261_v57  ;;  %v7269_v7 = vcombine.high %v265_v62, %v269_v0  ;;  %v297_v43 = vld [vmem:[#allocation3 + $0x510] sm:$0xff] }
 0x1bb   :  { %4103 = vmatprep.subr.bf16.mxu0 %v7221_v8  ;;  %v7397_v8 = vcombine.high %v393_v2, %v397_v3  ;;  %v301_v44 = vld [vmem:[#allocation3 + $0x530] sm:$0xff] }
 0x1bc   :  { %v425_v42 = vld [vmem:[#allocation3 + $0x910] sm:$0xff] }
 0x1bd   :  { %4063 = vmatpush1.bf16.msra.mxu1 %v7602_v14  ;;  %v7268_v14 = vcombine.low %v265_v62, %v269_v0  ;;  %v429_v46 = vld [vmem:[#allocation3 + $0x930] sm:$0xff] }
 0x1be   :  { %4104 = vmatpush1.bf16.msra.mxu0 %v7220_v15  ;;  %4064 = vmatprep.subr.bf16.mxu1 %v7611_v16  ;;  %v7396_v15 = vcombine.low %v393_v2, %v397_v3  ;;  %v7277_v16 = vcombine.high %v273_v9, %v277_v10  ;;  %v305_v53 = vld [vmem:[#allocation3 + $0x550] sm:$0xff] }
 0x1bf   :  { %4105 = vmatprep.subr.bf16.mxu0 %v7229_v17  ;;  %v7405_v17 = vcombine.high %v401_v11, %v405_v13  ;;  %v309_v54 = vld [vmem:[#allocation3 + $0x570] sm:$0xff] }
 0x1c0   :  { %v433_v56 = vld [vmem:[#allocation3 + $0x950] sm:$0xff] }
 0x1c1   :  { %4065 = vmatpush1.bf16.msra.mxu1 %v7610_v25  ;;  %v7276_v25 = vcombine.low %v273_v9, %v277_v10  ;;  %v437_v57 = vld [vmem:[#allocation3 + $0x970] sm:$0xff] }
 0x1c2   :  { %4106 = vmatpush1.bf16.msra.mxu0 %v7228_v27  ;;  %4066 = vmatprep.subr.bf16.mxu1 %v7619_v28  ;;  %v7404_v27 = vcombine.low %v401_v11, %v405_v13  ;;  %v7285_v28 = vcombine.high %v281_v18, %v285_v20  ;;  %v313_v62 = vld [vmem:[#allocation3 + $0x590] sm:$0xff] }
 0x1c3   :  { %4107 = vmatprep.subr.bf16.mxu0 %v7237_v30  ;;  %v7413_v30 = vcombine.high %v409_v21, %v413_v22  ;;  %v317_v0 = vld [vmem:[#allocation3 + $0x5b0] sm:$0xff] }
 0x1c4   :  { %v441_v2 = vld [vmem:[#allocation3 + $0x990] sm:$0xff] }
 0x1c5   :  { %4067 = vmatpush1.bf16.msra.mxu1 %v7618_v37  ;;  %v7284_v37 = vcombine.low %v281_v18, %v285_v20  ;;  %v445_v3 = vld [vmem:[#allocation3 + $0x9b0] sm:$0xff] }
 0x1c6   :  { %4108 = vmatpush1.bf16.msra.mxu0 %v7236_v39  ;;  %4068 = vmatprep.subr.bf16.mxu1 %v7627_v41  ;;  %v7412_v39 = vcombine.low %v409_v21, %v413_v22  ;;  %v7293_v41 = vcombine.high %v289_v31, %v293_v32  ;;  %v7445_v9 = vcombine.high %v441_v2, %v445_v3  ;;  %v321_v10 = vld [vmem:[#allocation3 + $0x5d0] sm:$0xff] }
 0x1c7   :  { %4109 = vmatprep.subr.bf16.mxu0 %v7245_v12  ;;  %v7421_v12 = vcombine.high %v417_v36, %v421_v1  ;;  %v325_v11 = vld [vmem:[#allocation3 + $0x5f0] sm:$0xff]  ;;  %v7316_v22 = vcombine.low %v313_v62, %v317_v0 }
 0x1c9   :  { %4069 = vmatpush1.bf16.msra.mxu1 %v7626_v48  ;;  %v7292_v48 = vcombine.low %v289_v31, %v293_v32 }
 0x1ca   :  { %4110 = vmatpush1.bf16.msra.mxu0 %v7244_v50  ;;  %4070 = vmatprep.subr.bf16.mxu1 %v7635_v45  ;;  %v7420_v50 = vcombine.low %v417_v36, %v421_v1  ;;  %v7301_v45 = vcombine.high %v297_v43, %v301_v44  ;;  %v329_v36 = vld [vmem:[#allocation3 + $0x610] sm:$0xff] }
 0x1cb   :  { %4111 = vmatprep.subr.bf16.mxu0 %v7253_v51  ;;  %v7429_v51 = vcombine.high %v425_v42, %v429_v46  ;;  %v333_v1 = vld [vmem:[#allocation3 + $0x630] sm:$0xff] }
 0x1cd   :  { %4071 = vmatpush1.bf16.msra.mxu1 %v7634_v58  ;;  %v7300_v58 = vcombine.low %v297_v43, %v301_v44  ;;  %v7333_v43 = vcombine.high %v329_v36, %v333_v1 }
 0x1ce   :  { %4112 = vmatpush1.bf16.msra.mxu0 %v7252_v59  ;;  %4072 = vmatprep.subr.bf16.mxu1 %v7643_v60  ;;  %v7428_v59 = vcombine.low %v425_v42, %v429_v46  ;;  %v7309_v60 = vcombine.high %v305_v53, %v309_v54  ;;  %v337_v42 = vld [vmem:[#allocation3 + $0x650] sm:$0xff] }
 0x1cf   :  { %4113 = vmatprep.subr.bf16.mxu0 %v7261_v61  ;;  %v7437_v61 = vcombine.high %v433_v56, %v437_v57  ;;  %v341_v46 = vld [vmem:[#allocation3 + $0x670] sm:$0xff] }
 0x1d1   :  { %4073 = vmatpush1.bf16.msra.mxu1 %v7642_v5  ;;  %v7308_v5 = vcombine.low %v305_v53, %v309_v54  ;;  %v7341_v53 = vcombine.high %v337_v42, %v341_v46 }
 0x1d2   :  { %4114 = vmatpush1.bf16.msra.mxu0 %v7260_v6  ;;  %4124 = vmatprep.subr.bf16.mxu1 %v7269_v7  ;;  %v7436_v6 = vcombine.low %v433_v56, %v437_v57  ;;  %v7317_v7 = vcombine.high %v313_v62, %v317_v0  ;;  %v345_v56 = vld [vmem:[#allocation3 + $0x690] sm:$0xff] }
 0x1d3   :  { %4165 = vmatprep.subr.bf16.mxu0 %v7397_v8  ;;  %v349_v57 = vld [vmem:[#allocation3 + $0x6b0] sm:$0xff] }
 0x1d4   :  { %4075 = vmatmul.mubr.bf16.vlgmr.msra.gmra.mrb[24].mxu1 %v9095_v55  ;;  %v7349_v62 = vcombine.high %v345_v56, %v349_v57 }
 0x1d5   :  { %4116 = vmatmul.mubr.bf16.vlgmr.msra.gmra.mrb[20].mxu0 %v9060_v23  ;;  %4125 = vmatpush1.bf16.msra.mxu1 %v7268_v14 }
 0x1d6   :  { %4166 = vmatpush1.bf16.msra.mxu0 %v7396_v15  ;;  %4126 = vmatprep.subr.bf16.mxu1 %v7277_v16  ;;  %v449_v16 = vld [vmem:[#allocation3 + $0x9d0] sm:$0xff] }
 0x1d7   :  { %4167 = vmatprep.subr.bf16.mxu0 %v7405_v17  ;;  %4156 = vmatprep.mubr.bf16.mxu1 %v9065_v34  ;;  %v453_v17 = vld [vmem:[#allocation3 + $0x9f0] sm:$0xff] }
 0x1d8   :  { %4197 = vmatprep.mubr.bf16.mxu0 %v9068_v35 }
 0x1d9   :  { %4127 = vmatpush1.bf16.msra.mxu1 %v7276_v25 }
 0x1da   :  { %4168 = vmatpush1.bf16.msra.mxu0 %v7404_v27  ;;  %4128 = vmatprep.subr.bf16.mxu1 %v7285_v28  ;;  %v7444_v28 = vcombine.low %v441_v2, %v445_v3  ;;  %v353_v2 = vld [vmem:[#allocation3 + $0x6d0] sm:$0xff] }
 0x1db   :  { %4169 = vmatprep.subr.bf16.mxu0 %v7413_v30  ;;  %v7325_v30 = vcombine.high %v321_v10, %v325_v11  ;;  %v357_v3 = vld [vmem:[#allocation3 + $0x6f0] sm:$0xff] }
 0x1dd   :  { %4129 = vmatpush1.bf16.msra.mxu1 %v7284_v37 }
 0x1de   :  { %4170 = vmatpush1.bf16.msra.mxu0 %v7412_v39  ;;  %4130 = vmatprep.subr.bf16.mxu1 %v7293_v41  ;;  %v461_v39 = vld [vmem:[#allocation3 + $0xa30] sm:$0xff]  ;;  %v7324_v41 = vcombine.low %v321_v10, %v325_v11 }
 0x1df   :  { %4171 = vmatprep.subr.bf16.mxu0 %v7421_v12  ;;  %v7452_v12 = vcombine.low %v449_v16, %v453_v17  ;;  %v361_v11 = vld [vmem:[#allocation3 + $0x710] sm:$0xff] }
 0x1e1   :  { %4131 = vmatpush1.bf16.msra.mxu1 %v7292_v48  ;;  %v465_v48 = vld [vmem:[#allocation3 + $0xa50] sm:$0xff] }
 0x1e2   :  { %4172 = vmatpush1.bf16.msra.mxu0 %v7420_v50  ;;  %4132 = vmatprep.subr.bf16.mxu1 %v7301_v45  ;;  %v469_v50 = vld [vmem:[#allocation3 + $0xa70] sm:$0xff]  ;;  %v7332_v45 = vcombine.low %v329_v36, %v333_v1 }
 0x1e3   :  { %4173 = vmatprep.subr.bf16.mxu0 %v7429_v51  ;;  %v7469_v54 = vcombine.high %v465_v48, %v469_v50  ;;  %v377_v1 = vld [vmem:[#allocation3 + $0x790] sm:$0xff] }
 0x1e5   :  { %4133 = vmatpush1.bf16.msra.mxu1 %v7300_v58  ;;  %v473_v58 = vld [vmem:[#allocation3 + $0xa90] sm:$0xff] }
 0x1e6   :  { %4174 = vmatpush1.bf16.msra.mxu0 %v7428_v59  ;;  %4134 = vmatprep.subr.bf16.mxu1 %v7309_v60  ;;  %v477_v59 = vld [vmem:[#allocation3 + $0xab0] sm:$0xff]  ;;  %v7340_v60 = vcombine.low %v337_v42, %v341_v46 }
 0x1e7   :  { %v3830_v8 = vpop.f32.mrb[12].mxu1  ;;  %4175 = vmatprep.subr.bf16.mxu0 %v7437_v61  ;;  %v7468_v61 = vcombine.low %v465_v48, %v469_v50  ;;  %v7477_v0 = vcombine.high %v473_v58, %v477_v59  ;;  %v385_v42 = vld [vmem:[#allocation3 + $0x7d0] sm:$0xff] }
 0x1e8   :  { %v3831_v13 = vadd.f32 %v3830_v8, %v9122_v29  ;;  %v3832_v14 = vpop.f32.mrb[13].mxu1  ;;  %v3871_v15 = vpop.f32.mrb[8].mxu0  ;;  %v7453_v29 = vcombine.high %v449_v16, %v453_v17  ;;  %v7476_v8 = vcombine.low %v473_v58, %v477_v59  ;;  %v7356_v16 = vcombine.low %v353_v2, %v357_v3  ;;  %v389_v46 = vld [vmem:[#allocation3 + $0x7f0] sm:$0xff]  ;;  %v138_v58 = vld [vmem:[#allocation3 + $0x18] sm:$0xff] }
 0x1e9   :  { %v3833_v18 = vadd.f32 %v3832_v14, %v9125_v33  ;;  %v3834_v20 = vpop.f32.mrb[14].mxu1  ;;  %4135 = vmatpush1.bf16.msra.mxu1 %v7308_v5  ;;  %v3873_v21 = vpop.f32.mrb[9].mxu0  ;;  %v457_v33 = vld [vmem:[#allocation3 + $0xa10] sm:$0xff]  ;;  %v142_v59 = vld [vmem:[#allocation3 + $0x38] sm:$0xff] }
 0x1ea   :  { %v9133_v25 = vadd.f32 %v3871_v15, %v3831_v13  ;;  %4176 = vmatpush1.bf16.msra.mxu0 %v7436_v6  ;;  %v3835_v27 = vpop.f32.mrb[15].mxu1  ;;  %4136 = vmatprep.subr.bf16.mxu1 %v7317_v7  ;;  %v3875_v31 = vpop.f32.mrb[10].mxu0  ;;  %v7461_v44 = vcombine.high %v457_v33, %v461_v39  ;;  %v7460_v51 = vcombine.low %v457_v33, %v461_v39  ;;  %v481_v5 = vld [vmem:[#allocation3 + $0xad0] sm:$0xff] }
 0x1eb   :  { %v9135_v32 = vadd.f32 %v3873_v21, %v3833_v18  ;;  %4177 = vmatprep.subr.bf16.mxu0 %v7445_v9  ;;  %v3876_v37 = vpop.f32.mrb[11].mxu0  ;;  %v485_v6 = vld [vmem:[#allocation3 + $0xaf0] sm:$0xff]  ;;  %v7348_v7 = vcombine.low %v345_v56, %v349_v57  ;;  %v7357_v9 = vcombine.high %v353_v2, %v357_v3 }
 0x1ec   :  { %v7485_v10 = vcombine.high %v481_v5, %v485_v6  ;;  %v365_v13 = vld [vmem:[#allocation3 + $0x730] sm:$0xff]  ;;  %v7484_v17 = vcombine.low %v481_v5, %v485_v6  ;;  %v146_v5 = vld [vmem:[#allocation3 + $0x58] sm:$0xff] }
 0x1ed   :  { %4137 = vmatpush1.bf16.msra.mxu1 %v7316_v22  ;;  %v489_v14 = vld [vmem:[#allocation3 + $0xb10] sm:$0xff]  ;;  %v7365_v18 = vcombine.high %v361_v11, %v365_v13  ;;  %v150_v6 = vld [vmem:[#allocation3 + $0x78] sm:$0xff] }
 0x1ee   :  { %4178 = vmatpush1.bf16.msra.mxu0 %v7444_v28  ;;  %4138 = vmatprep.subr.bf16.mxu1 %v7325_v30  ;;  %v493_v15 = vld [vmem:[#allocation3 + $0xb30] sm:$0xff]  ;;  %v7364_v30 = vcombine.low %v361_v11, %v365_v13 }
 0x1ef   :  { %4179 = vmatprep.subr.bf16.mxu0 %v7453_v29  ;;  %v7493_v20 = vcombine.high %v489_v14, %v493_v15  ;;  %v369_v21 = vld [vmem:[#allocation3 + $0x750] sm:$0xff]  ;;  %v7492_v31 = vcombine.low %v489_v14, %v493_v15  ;;  %v154_v14 = vld [vmem:[#allocation3 + $0x98] sm:$0xff] }
 0x1f0   :  { %v373_v22 = vld [vmem:[#allocation3 + $0x770] sm:$0xff]  ;;  %v158_v15 = vld [vmem:[#allocation3 + $0xb8] sm:$0xff] }
 0x1f1   :  { %4139 = vmatpush1.bf16.msra.mxu1 %v7324_v41  ;;  %v497_v27 = vld [vmem:[#allocation3 + $0xb50] sm:$0xff]  ;;  %v7373_v29 = vcombine.high %v369_v21, %v373_v22  ;;  %v7372_v41 = vcombine.low %v369_v21, %v373_v22 }
 0x1f2   :  { %4180 = vmatpush1.bf16.msra.mxu0 %v7452_v12  ;;  %4140 = vmatprep.subr.bf16.mxu1 %v7333_v43  ;;  %v501_v28 = vld [vmem:[#allocation3 + $0xb70] sm:$0xff] }
 0x1f3   :  { %4181 = vmatprep.subr.bf16.mxu0 %v7461_v44  ;;  %v7501_v36 = vcombine.high %v497_v27, %v501_v28  ;;  %v381_v37 = vld [vmem:[#allocation3 + $0x7b0] sm:$0xff]  ;;  %v7500_v12 = vcombine.low %v497_v27, %v501_v28  ;;  %v162_v27 = vld [vmem:[#allocation3 + $0xd8] sm:$0xff] }
 0x1f4   :  { %v505_v33 = vld [vmem:[#allocation3 + $0xb90] sm:$0xff]  ;;  %v7381_v43 = vcombine.high %v377_v1, %v381_v37  ;;  %v166_v28 = vld [vmem:[#allocation3 + $0xf8] sm:$0xff] }
 0x1f5   :  { %4141 = vmatpush1.bf16.msra.mxu1 %v7332_v45  ;;  %v509_v39 = vld [vmem:[#allocation3 + $0xbb0] sm:$0xff]  ;;  %v7380_v45 = vcombine.low %v377_v1, %v381_v37 }
 0x1f6   :  { %4182 = vmatpush1.bf16.msra.mxu0 %v7460_v51  ;;  %4142 = vmatprep.subr.bf16.mxu1 %v7341_v53  ;;  %v7509_v44 = vcombine.high %v505_v33, %v509_v39  ;;  %v513_v48 = vld [vmem:[#allocation3 + $0xbd0] sm:$0xff]  ;;  %v7508_v51 = vcombine.low %v505_v33, %v509_v39  ;;  %v7389_v53 = vcombine.high %v385_v42, %v389_v46  ;;  %v170_v33 = vld [vmem:[#allocation3 + $0x118] sm:$0xff] }
 0x1f7   :  { %4183 = vmatprep.subr.bf16.mxu0 %v7469_v54  ;;  %v517_v50 = vld [vmem:[#allocation3 + $0xbf0] sm:$0xff]  ;;  %v174_v39 = vld [vmem:[#allocation3 + $0x138] sm:$0xff] }
 0x1f8   :  { %v7517_v54 = vcombine.high %v513_v48, %v517_v50  ;;  %v521_v56 = vld [vmem:[#allocation3 + $0xc10] sm:$0xff] }
 0x1f9   :  { %4143 = vmatpush1.bf16.msra.mxu1 %v7340_v60  ;;  %v525_v57 = vld [vmem:[#allocation3 + $0xc30] sm:$0xff]  ;;  %v7388_v60 = vcombine.low %v385_v42, %v389_v46  ;;  %v178_v46 = vld [vmem:[#allocation3 + $0x158] sm:$0xff] }
 0x1fa   :  { %4184 = vmatpush1.bf16.msra.mxu0 %v7468_v61  ;;  %4144 = vmatprep.subr.bf16.mxu1 %v7349_v62  ;;  %v7516_v61 = vcombine.low %v513_v48, %v517_v50  ;;  %v7525_v62 = vcombine.high %v521_v56, %v525_v57  ;;  %v529_v2 = vld [vmem:[#allocation3 + $0xc50] sm:$0xff]  ;;  %v182_v48 = vld [vmem:[#allocation3 + $0x178] sm:$0xff] }
 0x1fb   :  { %4185 = vmatprep.subr.bf16.mxu0 %v7477_v0  ;;  %v7143_v0 = vcombine.high %v138_v58, %v142_v59  ;;  %v533_v3 = vld [vmem:[#allocation3 + $0xc70] sm:$0xff] }
 0x1fc   :  { %v537_v11 = vld [vmem:[#allocation3 + $0xc90] sm:$0xff] }
 0x1fd   :  { %4145 = vmatpush1.bf16.msra.mxu1 %v7348_v7  ;;  %v7524_v7 = vcombine.low %v521_v56, %v525_v57  ;;  %v541_v13 = vld [vmem:[#allocation3 + $0xcb0] sm:$0xff]  ;;  %v186_v57 = vld [vmem:[#allocation3 + $0x198] sm:$0xff] }
 0x1fe   :  { %4186 = vmatpush1.bf16.msra.mxu0 %v7476_v8  ;;  %4146 = vmatprep.subr.bf16.mxu1 %v7357_v9  ;;  %v7142_v8 = vcombine.low %v138_v58, %v142_v59  ;;  %v7533_v9 = vcombine.high %v529_v2, %v533_v3  ;;  %v545_v21 = vld [vmem:[#allocation3 + $0xcd0] sm:$0xff]  ;;  %v190_v58 = vld [vmem:[#allocation3 + $0x1b8] sm:$0xff] }
 0x1ff   :  { %4187 = vmatprep.subr.bf16.mxu0 %v7485_v10  ;;  %v7151_v10 = vcombine.high %v146_v5, %v150_v6  ;;  %v549_v22 = vld [vmem:[#allocation3 + $0xcf0] sm:$0xff] }
 0x200   :  { %v553_v1 = vld [vmem:[#allocation3 + $0xd10] sm:$0xff] }
 0x201   :  { %4147 = vmatpush1.bf16.msra.mxu1 %v7356_v16  ;;  %v7532_v16 = vcombine.low %v529_v2, %v533_v3  ;;  %v557_v37 = vld [vmem:[#allocation3 + $0xd30] sm:$0xff] }
 0x202   :  { %4188 = vmatpush1.bf16.msra.mxu0 %v7484_v17  ;;  %4148 = vmatprep.subr.bf16.mxu1 %v7365_v18  ;;  %v7150_v17 = vcombine.low %v146_v5, %v150_v6  ;;  %v7541_v18 = vcombine.high %v537_v11, %v541_v13  ;;  %v565_v42 = vld [vmem:[#allocation3 + $0xd70] sm:$0xff]  ;;  %v7556_v50 = vcombine.low %v553_v1, %v557_v37 }
 0x203   :  { %4189 = vmatprep.subr.bf16.mxu0 %v7493_v20  ;;  %v7159_v20 = vcombine.high %v154_v14, %v158_v15  ;;  %v573_v56 = vld [vmem:[#allocation3 + $0xdb0] sm:$0xff] }
 0x204   :  { %v577_v2 = vld [vmem:[#allocation3 + $0xdd0] sm:$0xff] }
 0x205   :  { %4149 = vmatpush1.bf16.msra.mxu1 %v7364_v30  ;;  %v7540_v30 = vcombine.low %v537_v11, %v541_v13  ;;  %v581_v3 = vld [vmem:[#allocation3 + $0xdf0] sm:$0xff] }
 0x206   :  { %4190 = vmatpush1.bf16.msra.mxu0 %v7492_v31  ;;  %4150 = vmatprep.subr.bf16.mxu1 %v7373_v29  ;;  %v7158_v31 = vcombine.low %v154_v14, %v158_v15  ;;  %v7549_v29 = vcombine.high %v545_v21, %v549_v22 }
 0x207   :  { %4191 = vmatprep.subr.bf16.mxu0 %v7501_v36  ;;  %v7167_v36 = vcombine.high %v162_v27, %v166_v28 }
 0x209   :  { %4151 = vmatpush1.bf16.msra.mxu1 %v7372_v41  ;;  %v7548_v41 = vcombine.low %v545_v21, %v549_v22  ;;  %v589_v22 = vld [vmem:[#allocation3 + $0xe30] sm:$0xff] }
 0x20a   :  { %4192 = vmatpush1.bf16.msra.mxu0 %v7500_v12  ;;  %4152 = vmatprep.subr.bf16.mxu1 %v7381_v43  ;;  %v7166_v12 = vcombine.low %v162_v27, %v166_v28  ;;  %v7557_v43 = vcombine.high %v553_v1, %v557_v37  ;;  %v206_v28 = vld [vmem:[#allocation3 + $0x238] sm:$0xff]  ;;  %v597_v1 = vld [vmem:[#allocation3 + $0xe70] sm:$0xff] }
 0x20b   :  { %4193 = vmatprep.subr.bf16.mxu0 %v7509_v44  ;;  %v561_v44 = vld [vmem:[#allocation3 + $0xd50] sm:$0xff]  ;;  %v210_v37 = vld [vmem:[#allocation3 + $0x258] sm:$0xff] }
 0x20c   :  { %v7564_v59 = vcombine.low %v561_v44, %v565_v42 }
 0x20d   :  { %4153 = vmatpush1.bf16.msra.mxu1 %v7380_v45  ;;  %v7174_v45 = vcombine.low %v170_v33, %v174_v39 }
 0x20e   :  { %4194 = vmatpush1.bf16.msra.mxu0 %v7508_v51  ;;  %4154 = vmatprep.subr.bf16.mxu1 %v7389_v53  ;;  %v7565_v51 = vcombine.high %v561_v44, %v565_v42  ;;  %v7183_v53 = vcombine.high %v178_v46, %v182_v48  ;;  %v605_v44 = vld [vmem:[#allocation3 + $0xeb0] sm:$0xff]  ;;  %v218_v42 = vld [vmem:[#allocation3 + $0x298] sm:$0xff] }
 0x20f   :  { %4195 = vmatprep.subr.bf16.mxu0 %v7517_v54  ;;  %v569_v54 = vld [vmem:[#allocation3 + $0xd90] sm:$0xff] }
 0x210   :  { %v7572_v15 = vcombine.low %v569_v54, %v573_v56 }
 0x211   :  { %4155 = vmatpush1.bf16.msra.mxu1 %v7388_v60  ;;  %v7182_v60 = vcombine.low %v178_v46, %v182_v48  ;;  %v222_v46 = vld [vmem:[#allocation3 + $0x2b8] sm:$0xff] }
 0x212   :  { %4196 = vmatpush1.bf16.msra.mxu0 %v7516_v61  ;;  %4206 = vmatprep.subr.bf16.mxu1 %v7525_v62  ;;  %v7573_v61 = vcombine.high %v569_v54, %v573_v56  ;;  %v613_v54 = vld [vmem:[#allocation3 + $0xef0] sm:$0xff]  ;;  %v226_v56 = vld [vmem:[#allocation3 + $0x2d8] sm:$0xff] }
 0x213   :  { %4247 = vmatprep.subr.bf16.mxu0 %v7143_v0  ;;  %v7191_v0 = vcombine.high %v186_v57, %v190_v58 }
 0x214   :  { %4157 = vmatmul.mubr.bf16.vlgmr.msra.gmra.mrb[28].mxu1 %v9082_v38 }
 0x215   :  { %4198 = vmatmul.mubr.bf16.vlgmr.msra.gmra.mrb[24].mxu0 %v9084_v40  ;;  %4207 = vmatpush1.bf16.msra.mxu1 %v7524_v7 }
 0x216   :  { %4248 = vmatpush1.bf16.msra.mxu0 %v7142_v8  ;;  %4208 = vmatprep.subr.bf16.mxu1 %v7533_v9  ;;  %v194_v8 = vld [vmem:[#allocation3 + $0x1d8] sm:$0xff] }
 0x217   :  { %4249 = vmatprep.subr.bf16.mxu0 %v7151_v10  ;;  %4238 = vmatprep.mubr.bf16.mxu1 %v9086_v47  ;;  %v198_v9 = vld [vmem:[#allocation3 + $0x1f8] sm:$0xff] }
 0x218   :  { %4279 = vmatprep.mubr.bf16.mxu0 %v8969_v24  ;;  %v7175_v24 = vcombine.high %v170_v33, %v174_v39  ;;  %v7199_v21 = vcombine.high %v194_v8, %v198_v9  ;;  %v214_v33 = vld [vmem:[#allocation3 + $0x278] sm:$0xff] }
 0x219   :  { %4209 = vmatpush1.bf16.msra.mxu1 %v7532_v16 }
 0x21a   :  { %4250 = vmatpush1.bf16.msra.mxu0 %v7150_v17  ;;  %4210 = vmatprep.subr.bf16.mxu1 %v7541_v18  ;;  %v7190_v17 = vcombine.low %v186_v57, %v190_v58  ;;  %v7581_v18 = vcombine.high %v577_v2, %v581_v3  ;;  %v230_v57 = vld [vmem:[#allocation3 + $0x2f8] sm:$0xff] }
 0x21b   :  { %4251 = vmatprep.subr.bf16.mxu0 %v7159_v20 }
 0x21d   :  { %4211 = vmatpush1.bf16.msra.mxu1 %v7540_v30  ;;  %v7580_v30 = vcombine.low %v577_v2, %v581_v3  ;;  %v234_v2 = vld [vmem:[#allocation3 + $0x318] sm:$0xff] }
 0x21e   :  { %4252 = vmatpush1.bf16.msra.mxu0 %v7158_v31  ;;  %4212 = vmatprep.subr.bf16.mxu1 %v7549_v29  ;;  %v7198_v31 = vcombine.low %v194_v8, %v198_v9  ;;  %v238_v3 = vld [vmem:[#allocation3 + $0x338] sm:$0xff] }
 0x21f   :  { %4253 = vmatprep.subr.bf16.mxu0 %v7167_v36  ;;  %v593_v36 = vld [vmem:[#allocation3 + $0xe50] sm:$0xff]  ;;  %v7239_v9 = vcombine.high %v234_v2, %v238_v3 }
 0x220   :  { %v7596_v48 = vcombine.low %v593_v36, %v597_v1 }
 0x221   :  { %4213 = vmatpush1.bf16.msra.mxu1 %v7548_v41 }
 0x222   :  { %4254 = vmatpush1.bf16.msra.mxu0 %v7166_v12  ;;  %4214 = vmatprep.subr.bf16.mxu1 %v7557_v43  ;;  %v7597_v12 = vcombine.high %v593_v36, %v597_v1  ;;  %v7215_v43 = vcombine.high %v210_v37, %v214_v33  ;;  %v645_v36 = vld [vmem:[#allocation3 + $0xff0] sm:$0xff]  ;;  %v258_v1 = vld [vmem:[#allocation3 + $0x3d8] sm:$0xff] }
 0x223   :  { %4255 = vmatprep.subr.bf16.mxu0 %v7175_v24  ;;  %v601_v24 = vld [vmem:[#allocation3 + $0xe90] sm:$0xff] }
 0x224   :  { %v7604_v58 = vcombine.low %v601_v24, %v605_v44 }
 0x225   :  { %4215 = vmatpush1.bf16.msra.mxu1 %v7556_v50  ;;  %v7214_v50 = vcombine.low %v210_v37, %v214_v33  ;;  %v262_v37 = vld [vmem:[#allocation3 + $0x3f8] sm:$0xff] }
 0x226   :  { %4256 = vmatpush1.bf16.msra.mxu0 %v7174_v45  ;;  %4216 = vmatprep.subr.bf16.mxu1 %v7565_v51  ;;  %v7605_v45 = vcombine.high %v601_v24, %v605_v44  ;;  %v7223_v51 = vcombine.high %v218_v42, %v222_v46  ;;  %v270_v24 = vld [vmem:[#allocation3 + $0x438] sm:$0xff] }
 0x227   :  { %v3912_v62 = vpop.f32.mrb[16].mxu1  ;;  %4257 = vmatprep.subr.bf16.mxu0 %v7183_v53  ;;  %v609_v53 = vld [vmem:[#allocation3 + $0xed0] sm:$0xff]  ;;  %v394_v44 = vld [vmem:[#allocation3 + $0x818] sm:$0xff] }
 0x228   :  { %v9142_v5 = vadd.f32 %v3912_v62, %v9133_v25  ;;  %v3953_v6 = vpop.f32.mrb[12].mxu0  ;;  %v3914_v7 = vpop.f32.mrb[17].mxu1  ;;  %v617_v62 = vld [vmem:[#allocation3 + $0xf10] sm:$0xff] }
 0x229   :  { %v9145_v10 = vadd.f32 %v3953_v6, %v9109_v63  ;;  %v9148_v11 = vadd.f32 %v3914_v7, %v9135_v32  ;;  %v3955_v13 = vpop.f32.mrb[13].mxu0  ;;  %v3916_v14 = vpop.f32.mrb[18].mxu1  ;;  %4217 = vmatpush1.bf16.msra.mxu1 %v7564_v59  ;;  %v585_v63 = vld [vmem:[#allocation3 + $0xe10] sm:$0xff]  ;;  %v202_v32 = vld [vmem:[#allocation3 + $0x218] sm:$0xff]  ;;  %v7222_v59 = vcombine.low %v218_v42, %v222_v46  ;;  %v7612_v6 = vcombine.low %v609_v53, %v613_v54 }
 0x22a   :  { %v9151_v16 = vadd.f32 %v3955_v13, %v9111_v4  ;;  %4258 = vmatpush1.bf16.msra.mxu0 %v7182_v60  ;;  %v3917_v25 = vpop.f32.mrb[19].mxu1  ;;  %4218 = vmatprep.subr.bf16.mxu1 %v7573_v61  ;;  %v3957_v20 = vpop.f32.mrb[14].mxu0  ;;  %v7589_v4 = vcombine.high %v585_v63, %v589_v22  ;;  %v7207_v29 = vcombine.high %v202_v32, %v206_v28  ;;  %v625_v13 = vld [vmem:[#allocation3 + $0xf50] sm:$0xff]  ;;  %v398_v42 = vld [vmem:[#allocation3 + $0x838] sm:$0xff] }
 0x22b   :  { %4259 = vmatprep.subr.bf16.mxu0 %v7191_v0  ;;  %v3958_v27 = vpop.f32.mrb[15].mxu0  ;;  %v7588_v39 = vcombine.low %v585_v63, %v589_v22  ;;  %v7206_v41 = vcombine.low %v202_v32, %v206_v28  ;;  %v7613_v60 = vcombine.high %v609_v53, %v613_v54  ;;  %v7231_v61 = vcombine.high %v226_v56, %v230_v57  ;;  %v621_v0 = vld [vmem:[#allocation3 + $0xf30] sm:$0xff]  ;;  %v246_v25 = vld [vmem:[#allocation3 + $0x378] sm:$0xff] }
 0x22c   :  { %v7230_v7 = vcombine.low %v226_v56, %v230_v57  ;;  %v7621_v8 = vcombine.high %v617_v62, %v621_v0  ;;  %v629_v14 = vld [vmem:[#allocation3 + $0xf70] sm:$0xff]  ;;  %v250_v27 = vld [vmem:[#allocation3 + $0x398] sm:$0xff] }
 0x22d   :  { %4219 = vmatpush1.bf16.msra.mxu1 %v7572_v15  ;;  %v242_v15 = vld [vmem:[#allocation3 + $0x358] sm:$0xff]  ;;  %v7629_v20 = vcombine.high %v625_v13, %v629_v14  ;;  %v633_v63 = vld [vmem:[#allocation3 + $0xf90] sm:$0xff]  ;;  %v7628_v28 = vcombine.low %v625_v13, %v629_v14 }
 0x22e   :  { %4260 = vmatpush1.bf16.msra.mxu0 %v7190_v17  ;;  %4220 = vmatprep.subr.bf16.mxu1 %v7581_v18  ;;  %v7620_v17 = vcombine.low %v617_v62, %v621_v0  ;;  %v7238_v18 = vcombine.low %v234_v2, %v238_v3  ;;  %v637_v22 = vld [vmem:[#allocation3 + $0xfb0] sm:$0xff]  ;;  %v254_v32 = vld [vmem:[#allocation3 + $0x3b8] sm:$0xff] }
 0x22f   :  { %4261 = vmatprep.subr.bf16.mxu0 %v7199_v21  ;;  %v7247_v21 = vcombine.high %v242_v15, %v246_v25  ;;  %v7636_v33 = vcombine.low %v633_v63, %v637_v22  ;;  %v278_v53 = vld [vmem:[#allocation3 + $0x478] sm:$0xff] }
 0x230   :  { %v402_v54 = vld [vmem:[#allocation3 + $0x858] sm:$0xff] }
 0x231   :  { %4221 = vmatpush1.bf16.msra.mxu1 %v7580_v30  ;;  %v7246_v30 = vcombine.low %v242_v15, %v246_v25  ;;  %v406_v56 = vld [vmem:[#allocation3 + $0x878] sm:$0xff] }
 0x232   :  { %4262 = vmatpush1.bf16.msra.mxu0 %v7198_v31  ;;  %4222 = vmatprep.subr.bf16.mxu1 %v7589_v4  ;;  %v7637_v31 = vcombine.high %v633_v63, %v637_v22  ;;  %v7255_v4 = vcombine.high %v250_v27, %v254_v32  ;;  %v286_v62 = vld [vmem:[#allocation3 + $0x4b8] sm:$0xff] }
 0x233   :  { %4263 = vmatprep.subr.bf16.mxu0 %v7207_v29  ;;  %v641_v29 = vld [vmem:[#allocation3 + $0xfd0] sm:$0xff]  ;;  %v410_v0 = vld [vmem:[#allocation3 + $0x898] sm:$0xff] }
 0x234   :  { %v7644_v46 = vcombine.low %v641_v29, %v645_v36  ;;  %v414_v2 = vld [vmem:[#allocation3 + $0x8b8] sm:$0xff] }
 0x235   :  { %4223 = vmatpush1.bf16.msra.mxu1 %v7588_v39  ;;  %v7254_v39 = vcombine.low %v250_v27, %v254_v32  ;;  %v294_v13 = vld [vmem:[#allocation3 + $0x4f8] sm:$0xff] }
 0x236   :  { %4264 = vmatpush1.bf16.msra.mxu0 %v7206_v41  ;;  %4224 = vmatprep.subr.bf16.mxu1 %v7597_v12  ;;  %v7645_v41 = vcombine.high %v641_v29, %v645_v36  ;;  %v7263_v12 = vcombine.high %v258_v1, %v262_v37  ;;  %v418_v14 = vld [vmem:[#allocation3 + $0x8d8] sm:$0xff] }
 0x237   :  { %4265 = vmatprep.subr.bf16.mxu0 %v7215_v43  ;;  %v266_v43 = vld [vmem:[#allocation3 + $0x418] sm:$0xff] }
 0x238   :  { %v7270_v57 = vcombine.low %v266_v43, %v270_v24  ;;  %v422_v15 = vld [vmem:[#allocation3 + $0x8f8] sm:$0xff] }
 0x239   :  { %4225 = vmatpush1.bf16.msra.mxu1 %v7596_v48  ;;  %v7262_v48 = vcombine.low %v258_v1, %v262_v37  ;;  %v426_v63 = vld [vmem:[#allocation3 + $0x918] sm:$0xff] }
 0x23a   :  { %4266 = vmatpush1.bf16.msra.mxu0 %v7214_v50  ;;  %4226 = vmatprep.subr.bf16.mxu1 %v7605_v45  ;;  %v7271_v50 = vcombine.high %v266_v43, %v270_v24  ;;  %v7399_v45 = vcombine.high %v394_v44, %v398_v42  ;;  %v430_v22 = vld [vmem:[#allocation3 + $0x938] sm:$0xff] }
 0x23b   :  { %4267 = vmatprep.subr.bf16.mxu0 %v7223_v51  ;;  %v274_v51 = vld [vmem:[#allocation3 + $0x458] sm:$0xff]  ;;  %v7430_v36 = vcombine.low %v426_v63, %v430_v22 }
 0x23c   :  { %v7278_v3 = vcombine.low %v274_v51, %v278_v53 }
 0x23d   :  { %4227 = vmatpush1.bf16.msra.mxu1 %v7604_v58  ;;  %v7398_v58 = vcombine.low %v394_v44, %v398_v42 }
 0x23e   :  { %4268 = vmatpush1.bf16.msra.mxu0 %v7222_v59  ;;  %4228 = vmatprep.subr.bf16.mxu1 %v7613_v60  ;;  %v7279_v59 = vcombine.high %v274_v51, %v278_v53  ;;  %v7407_v60 = vcombine.high %v402_v54, %v406_v56 }
 0x23f   :  { %4269 = vmatprep.subr.bf16.mxu0 %v7231_v61  ;;  %v282_v61 = vld [vmem:[#allocation3 + $0x498] sm:$0xff] }
 0x240   :  { %v7286_v25 = vcombine.low %v282_v61, %v286_v62 }
 0x241   :  { %4229 = vmatpush1.bf16.msra.mxu1 %v7612_v6  ;;  %v7406_v6 = vcombine.low %v402_v54, %v406_v56  ;;  %v450_v54 = vld [vmem:[#allocation3 + $0x9d8] sm:$0xff] }
 0x242   :  { %4270 = vmatpush1.bf16.msra.mxu0 %v7230_v7  ;;  %4230 = vmatprep.subr.bf16.mxu1 %v7621_v8  ;;  %v7287_v7 = vcombine.high %v282_v61, %v286_v62  ;;  %v7415_v8 = vcombine.high %v410_v0, %v414_v2  ;;  %v454_v56 = vld [vmem:[#allocation3 + $0x9f8] sm:$0xff] }
 0x243   :  { %4271 = vmatprep.subr.bf16.mxu0 %v7239_v9  ;;  %v290_v9 = vld [vmem:[#allocation3 + $0x4d8] sm:$0xff] }
 0x244   :  { %v7294_v27 = vcombine.low %v290_v9, %v294_v13 }
 0x245   :  { %4231 = vmatpush1.bf16.msra.mxu1 %v7620_v17  ;;  %v7295_v17 = vcombine.high %v290_v9, %v294_v13  ;;  %v462_v13 = vld [vmem:[#allocation3 + $0xa38] sm:$0xff] }
 0x246   :  { %4272 = vmatpush1.bf16.msra.mxu0 %v7238_v18  ;;  %4232 = vmatprep.subr.bf16.mxu1 %v7629_v20  ;;  %v7423_v18 = vcombine.high %v418_v14, %v422_v15  ;;  %v298_v20 = vld [vmem:[#allocation3 + $0x518] sm:$0xff] }
 0x247   :  { %4273 = vmatprep.subr.bf16.mxu0 %v7247_v21  ;;  %v302_v21 = vld [vmem:[#allocation3 + $0x538] sm:$0xff] }
 0x248   :  { %v7303_v32 = vcombine.high %v298_v20, %v302_v21  ;;  %v7302_v29 = vcombine.low %v298_v20, %v302_v21  ;;  %v466_v20 = vld [vmem:[#allocation3 + $0xa58] sm:$0xff] }
 0x249   :  { %4233 = vmatpush1.bf16.msra.mxu1 %v7628_v28  ;;  %v306_v28 = vld [vmem:[#allocation3 + $0x558] sm:$0xff] }
 0x24a   :  { %4274 = vmatpush1.bf16.msra.mxu0 %v7246_v30  ;;  %4234 = vmatprep.subr.bf16.mxu1 %v7637_v31  ;;  %v310_v30 = vld [vmem:[#allocation3 + $0x578] sm:$0xff] }
 0x24b   :  { %4275 = vmatprep.subr.bf16.mxu0 %v7255_v4  ;;  %v434_v31 = vld [vmem:[#allocation3 + $0x958] sm:$0xff]  ;;  %v7311_v1 = vcombine.high %v306_v28, %v310_v30  ;;  %v7310_v43 = vcombine.low %v306_v28, %v310_v30 }
 0x24c   :  { %v438_v4 = vld [vmem:[#allocation3 + $0x978] sm:$0xff] }
 0x24d   :  { %4235 = vmatpush1.bf16.msra.mxu1 %v7636_v33  ;;  %v7439_v37 = vcombine.high %v434_v31, %v438_v4  ;;  %v314_v33 = vld [vmem:[#allocation3 + $0x598] sm:$0xff]  ;;  %v7438_v24 = vcombine.low %v434_v31, %v438_v4 }
 0x24e   :  { %4276 = vmatpush1.bf16.msra.mxu0 %v7254_v39  ;;  %4236 = vmatprep.subr.bf16.mxu1 %v7645_v41  ;;  %v318_v39 = vld [vmem:[#allocation3 + $0x5b8] sm:$0xff] }
 0x24f   :  { %4277 = vmatprep.subr.bf16.mxu0 %v7263_v12  ;;  %v442_v41 = vld [vmem:[#allocation3 + $0x998] sm:$0xff]  ;;  %v7319_v44 = vcombine.high %v314_v33, %v318_v39 }
 0x250   :  { %v446_v12 = vld [vmem:[#allocation3 + $0x9b8] sm:$0xff] }
 0x251   :  { %4237 = vmatpush1.bf16.msra.mxu1 %v7644_v46  ;;  %v7447_v46 = vcombine.high %v442_v41, %v446_v12  ;;  %v470_v21 = vld [vmem:[#allocation3 + $0xa78] sm:$0xff] }
 0x252   :  { %4278 = vmatpush1.bf16.msra.mxu0 %v7262_v48  ;;  %4288 = vmatprep.subr.bf16.mxu1 %v7271_v50  ;;  %v322_v48 = vld [vmem:[#allocation3 + $0x5d8] sm:$0xff]  ;;  %v7470_v4 = vcombine.low %v466_v20, %v470_v21 }
 0x253   :  { %4329 = vmatprep.subr.bf16.mxu0 %v7399_v45  ;;  %v326_v50 = vld [vmem:[#allocation3 + $0x5f8] sm:$0xff] }
 0x254   :  { %4239 = vmatmul.mubr.bf16.vlgmr.msra.gmra.mrb[32].mxu1 %v9095_v55  ;;  %v474_v28 = vld [vmem:[#allocation3 + $0xa98] sm:$0xff] }
 0x255   :  { %4280 = vmatmul.mubr.bf16.vlgmr.msra.gmra.mrb[28].mxu0 %v9060_v23  ;;  %4289 = vmatpush1.bf16.msra.mxu1 %v7270_v57  ;;  %v7414_v23 = vcombine.low %v410_v0, %v414_v2  ;;  %v7446_v0 = vcombine.low %v442_v41, %v446_v12  ;;  %v7327_v2 = vcombine.high %v322_v48, %v326_v50  ;;  %v478_v30 = vld [vmem:[#allocation3 + $0xab8] sm:$0xff]  ;;  %v4413_v41 = vlaneseq }
 0x256   :  { %4330 = vmatpush1.bf16.msra.mxu0 %v7398_v58  ;;  %4290 = vmatprep.subr.bf16.mxu1 %v7279_v59 }
 0x257   :  { %4331 = vmatprep.subr.bf16.mxu0 %v7407_v60  ;;  %4320 = vmatprep.mubr.bf16.mxu1 %v9065_v34  ;;  %v7422_v34 = vcombine.low %v418_v14, %v422_v15  ;;  %v7318_v60 = vcombine.low %v314_v33, %v318_v39  ;;  %v7326_v14 = vcombine.low %v322_v48, %v326_v50  ;;  %v482_v33 = vld [vmem:[#allocation3 + $0xad8] sm:$0xff] }
 0x258   :  { %4361 = vmatprep.mubr.bf16.mxu0 %v9068_v35  ;;  %v7431_v35 = vcombine.high %v426_v63, %v430_v22  ;;  %v7454_v15 = vcombine.low %v450_v54, %v454_v56  ;;  %v486_v39 = vld [vmem:[#allocation3 + $0xaf8] sm:$0xff] }
 0x259   :  { %4291 = vmatpush1.bf16.msra.mxu1 %v7278_v3  ;;  %v490_v48 = vld [vmem:[#allocation3 + $0xb18] sm:$0xff] }
 0x25a   :  { %4332 = vmatpush1.bf16.msra.mxu0 %v7406_v6  ;;  %4292 = vmatprep.subr.bf16.mxu1 %v7287_v7  ;;  %v330_v7 = vld [vmem:[#allocation3 + $0x618] sm:$0xff] }
 0x25b   :  { %4333 = vmatprep.subr.bf16.mxu0 %v7415_v8  ;;  %v334_v8 = vld [vmem:[#allocation3 + $0x638] sm:$0xff] }
 0x25c   :  { %v7334_v63 = vcombine.low %v330_v7, %v334_v8  ;;  %v494_v50 = vld [vmem:[#allocation3 + $0xb38] sm:$0xff] }
 0x25d   :  { %4293 = vmatpush1.bf16.msra.mxu1 %v7286_v25  ;;  %v7335_v25 = vcombine.high %v330_v7, %v334_v8  ;;  %v378_v8 = vld [vmem:[#allocation3 + $0x798] sm:$0xff] }
 0x25e   :  { %4334 = vmatpush1.bf16.msra.mxu0 %v7414_v23  ;;  %4294 = vmatprep.subr.bf16.mxu1 %v7295_v17  ;;  %v338_v17 = vld [vmem:[#allocation3 + $0x658] sm:$0xff] }
 0x25f   :  { %4335 = vmatprep.subr.bf16.mxu0 %v7423_v18  ;;  %v342_v18 = vld [vmem:[#allocation3 + $0x678] sm:$0xff] }
 0x260   :  { %v7342_v31 = vcombine.low %v338_v17, %v342_v18 }
 0x261   :  { %4295 = vmatpush1.bf16.msra.mxu1 %v7294_v27  ;;  %v7343_v27 = vcombine.high %v338_v17, %v342_v18  ;;  %v386_v18 = vld [vmem:[#allocation3 + $0x7d8] sm:$0xff] }
 0x262   :  { %4336 = vmatpush1.bf16.msra.mxu0 %v7422_v34  ;;  %4296 = vmatprep.subr.bf16.mxu1 %v7303_v32  ;;  %v7471_v34 = vcombine.high %v466_v20, %v470_v21  ;;  %v346_v32 = vld [vmem:[#allocation3 + $0x698] sm:$0xff] }
 0x263   :  { %4337 = vmatprep.subr.bf16.mxu0 %v7431_v35  ;;  %v350_v35 = vld [vmem:[#allocation3 + $0x6b8] sm:$0xff] }
 0x264   :  { %v7350_v12 = vcombine.low %v346_v32, %v350_v35  ;;  %v390_v20 = vld [vmem:[#allocation3 + $0x7f8] sm:$0xff] }
 0x265   :  { %4297 = vmatpush1.bf16.msra.mxu1 %v7302_v29  ;;  %v7351_v29 = vcombine.high %v346_v32, %v350_v35  ;;  %v514_v21 = vld [vmem:[#allocation3 + $0xbd8] sm:$0xff]  ;;  %v7391_v32 = vcombine.high %v386_v18, %v390_v20 }
 0x266   :  { %4338 = vmatpush1.bf16.msra.mxu0 %v7430_v36  ;;  %4298 = vmatprep.subr.bf16.mxu1 %v7311_v1  ;;  %v7479_v36 = vcombine.high %v474_v28, %v478_v30  ;;  %v354_v1 = vld [vmem:[#allocation3 + $0x6d8] sm:$0xff] }
 0x267   :  { %v3994_v42 = vpop.f32.mrb[20].mxu1  ;;  %4339 = vmatprep.subr.bf16.mxu0 %v7439_v37  ;;  %v358_v37 = vld [vmem:[#allocation3 + $0x6f8] sm:$0xff] }
 0x268   :  { %v3995_v45 = vadd.f32 %v3994_v42, %v9145_v10  ;;  %v3996_v51 = vpop.f32.mrb[21].mxu1  ;;  %v4035_v53 = vpop.f32.mrb[16].mxu0  ;;  %v7455_v10 = vcombine.high %v450_v54, %v454_v56  ;;  %v362_v42 = vld [vmem:[#allocation3 + $0x718] sm:$0xff]  ;;  %v7495_v56 = vcombine.high %v490_v48, %v494_v50 }
 0x269   :  { %v3997_v57 = vadd.f32 %v3996_v51, %v9151_v16  ;;  %v3998_v58 = vpop.f32.mrb[22].mxu1  ;;  %4299 = vmatpush1.bf16.msra.mxu1 %v7310_v43  ;;  %v4037_v59 = vpop.f32.mrb[17].mxu0  ;;  %v458_v16 = vld [vmem:[#allocation3 + $0xa18] sm:$0xff]  ;;  %v7478_v43 = vcombine.low %v474_v28, %v478_v30  ;;  %v7358_v51 = vcombine.low %v354_v1, %v358_v37 }
 0x26a   :  { %v9159_v61 = vadd.f32 %v4035_v53, %v3995_v45  ;;  %4340 = vmatpush1.bf16.msra.mxu0 %v7438_v24  ;;  %v3999_v62 = vpop.f32.mrb[23].mxu1  ;;  %4300 = vmatprep.subr.bf16.mxu1 %v7319_v44  ;;  %v4039_v3 = vpop.f32.mrb[18].mxu0  ;;  %v7463_v23 = vcombine.high %v458_v16, %v462_v13  ;;  %v7462_v22 = vcombine.low %v458_v16, %v462_v13  ;;  %v9163_v45 = vshrl.u32 %v4413_v41, 7  ;;  %v374_v58 = vld [vmem:[#allocation3 + $0x778] sm:$0xff] }
 0x26b   :  { %v9161_v6 = vadd.f32 %v4037_v59, %v3997_v57  ;;  %4341 = vmatprep.subr.bf16.mxu0 %v7447_v46  ;;  %v4040_v9 = vpop.f32.mrb[19].mxu0  ;;  %v7359_v24 = vcombine.high %v354_v1, %v358_v37  ;;  %v7487_v44 = vcombine.high %v482_v33, %v486_v39  ;;  %v366_v46 = vld [vmem:[#allocation3 + $0x738] sm:$0xff]  ;;  %v7486_v53 = vcombine.low %v482_v33, %v486_v39 }
 0x26c   :  { %v7367_v54 = vcombine.high %v362_v42, %v366_v46  ;;  %v370_v57 = vld [vmem:[#allocation3 + $0x758] sm:$0xff]  ;;  %v9166_v62 = vsub.s32 1, %v9163_v45  ;;  %v7494_v3 = vcombine.low %v490_v48, %v494_v50 }
 0x26d   :  { %4301 = vmatpush1.bf16.msra.mxu1 %v7318_v60  ;;  %v498_v59 = vld [vmem:[#allocation3 + $0xb58] sm:$0xff] }
 0x26e   :  { %4342 = vmatpush1.bf16.msra.mxu0 %v7446_v0  ;;  %4302 = vmatprep.subr.bf16.mxu1 %v7327_v2  ;;  %v502_v60 = vld [vmem:[#allocation3 + $0xb78] sm:$0xff]  ;;  %v7366_v0 = vcombine.low %v362_v42, %v366_v46  ;;  %v9168_v2 = vld [vmem:[#allocation5] sm:$0xff] }
 0x26f   :  { %4343 = vmatprep.subr.bf16.mxu0 %v7455_v10  ;;  %v7375_v10 = vcombine.high %v370_v57, %v374_v58  ;;  %v7503_v7 = vcombine.high %v498_v59, %v502_v60  ;;  %v382_v9 = vld [vmem:[#allocation3 + $0x7b8] sm:$0xff] }
 0x270   :  { %v506_v16 = vld [vmem:[#allocation3 + $0xb98] sm:$0xff] }
 0x271   :  { %4303 = vmatpush1.bf16.msra.mxu1 %v7326_v14  ;;  %v510_v13 = vld [vmem:[#allocation3 + $0xbb8] sm:$0xff]  ;;  %v4420_v14 = vrot.slane %v9168_v2, %v9166_v62 }
 0x272   :  { %4344 = vmatpush1.bf16.msra.mxu0 %v7454_v15  ;;  %4304 = vmatprep.subr.bf16.mxu1 %v7335_v25  ;;  %v7374_v15 = vcombine.low %v370_v57, %v374_v58  ;;  %v7502_v25 = vcombine.low %v498_v59, %v502_v60  ;;  %v7511_v17 = vcombine.high %v506_v16, %v510_v13  ;;  %v522_v28 = vld [vmem:[#allocation3 + $0xc18] sm:$0xff] }
 0x273   :  { %4345 = vmatprep.subr.bf16.mxu0 %v7463_v23  ;;  %v7383_v23 = vcombine.high %v378_v8, %v382_v9  ;;  %v526_v30 = vld [vmem:[#allocation3 + $0xc38] sm:$0xff] }
 0x274   :  { %v530_v1 = vld [vmem:[#allocation3 + $0xc58] sm:$0xff]  ;;  %v7526_v33 = vcombine.low %v522_v28, %v526_v30 }
 0x275   :  { %4305 = vmatpush1.bf16.msra.mxu1 %v7334_v63  ;;  %v518_v63 = vld [vmem:[#allocation3 + $0xbf8] sm:$0xff] }
 0x276   :  { %4346 = vmatpush1.bf16.msra.mxu0 %v7462_v22  ;;  %4306 = vmatprep.subr.bf16.mxu1 %v7343_v27  ;;  %v4454_v22 = vadd.f32 %v4420_v14, %v9148_v11  ;;  %v7382_v27 = vcombine.low %v378_v8, %v382_v9  ;;  %v7519_v35 = vcombine.high %v514_v21, %v518_v63  ;;  %v8057_v11 = vld [vmem:[#allocation7 + $0x4] ss:$16 sps:$4 sm:$0xff]   ;;  %v8055_v41 = vld [vmem:[#allocation7] ss:$16 sps:$4 sm:$0xff]  }
 0x277   :  { %4347 = vmatprep.subr.bf16.mxu0 %v7471_v34  ;;  %v7510_v34 = vcombine.low %v506_v16, %v510_v13  ;;  %v534_v37 = vld [vmem:[#allocation3 + $0xc78] sm:$0xff] }
 0x278   :  { %vm4462_vm0 = vcmp.ge.f32.partialorder %v4454_v22, 0.0  ;;  %v7534_v46 = vcombine.low %v530_v1, %v534_v37  ;;  %v8058_v48 = vld [vmem:[#allocation7 + $0x20] ss:$16 sps:$4 sm:$0xff]   ;;  %v8066_v57 = vld [vmem:[#allocation7 + $0x64] ss:$16 sps:$4 sm:$0xff]  }
 0x279   :  { %4307 = vmatpush1.bf16.msra.mxu1 %v7342_v31  ;;  %v4470_v31 = vmul.f32 0.2, %v4454_v22  ;;  %v554_v58 = vld [vmem:[#allocation3 + $0xd18] sm:$0xff] }
 0x27a   :  { %4348 = vmatpush1.bf16.msra.mxu0 %v7470_v4  ;;  %4308 = vmatprep.subr.bf16.mxu1 %v7351_v29  ;;  %v7390_v4 = vcombine.low %v386_v18, %v390_v20  ;;  %v7518_v29 = vcombine.low %v514_v21, %v518_v63  ;;  %v558_v59 = vld [vmem:[#allocation3 + $0xd38] sm:$0xff] }
 0x27b   :  { %4349 = vmatprep.subr.bf16.mxu0 %v7479_v36  ;;  %v7527_v36 = vcombine.high %v522_v28, %v526_v30  ;;  %v4478_v39 = vsel %vm4462_vm0, %v4454_v22, %v4470_v31  ;;  %v7558_v8 = vcombine.low %v554_v58, %v558_v59  ;;  %v8067_v9 = vld [vmem:[#allocation7 + $0x80] ss:$16 sps:$4 sm:$0xff]   ;;  %v8072_v13 = vld [vmem:[#allocation7 + $0xa4] ss:$16 sps:$4 sm:$0xff]  }
 0x27c   :  { %v9174_v42 = vpack.c.bf16 %v4478_v39, %v4478_v39  ;;  %v570_v14 = vld [vmem:[#allocation3 + $0xd98] sm:$0xff] }
 0x27d   :  { %4309 = vmatpush1.bf16.msra.mxu1 %v7350_v12  ;;  %v7535_v12 = vcombine.high %v530_v1, %v534_v37  ;;  %v8075_v20 = vld [vmem:[#allocation7 + $0xc4] ss:$16 sps:$4 sm:$0xff]   ;;  %v8076_v39 = vld [vmem:[#allocation7 + $0xe0] ss:$16 sps:$4 sm:$0xff]  }
 0x27e   :  { %4350 = vmatpush1.bf16.msra.mxu0 %v7478_v43  ;;  %4310 = vmatprep.subr.bf16.mxu1 %v7359_v24  ;;  %v8060_v43 = vld [vmem:[#allocation7 + $0x24] ss:$16 sps:$4 sm:$0xff]  }
 0x27f   :  { %4351 = vmatprep.subr.bf16.mxu0 %v7487_v44  ;;  %v538_v24 = vld [vmem:[#allocation3 + $0xc98] sm:$0xff] }
 0x280   :  { %v542_v44 = vld [vmem:[#allocation3 + $0xcb8] sm:$0xff] }
 0x281   :  { %4311 = vmatpush1.bf16.msra.mxu1 %v7358_v51  ;;  %v7543_v50 = vcombine.high %v538_v24, %v542_v44  ;;  %v8063_v51 = vld [vmem:[#allocation7 + $0x44] ss:$16 sps:$4 sm:$0xff]  }
 0x282   :  { %4352 = vmatpush1.bf16.msra.mxu0 %v7486_v53  ;;  %4312 = vmatprep.subr.bf16.mxu1 %v7367_v54  ;;  %v546_v53 = vld [vmem:[#allocation3 + $0xcd8] sm:$0xff] }
 0x283   :  { %4353 = vmatprep.subr.bf16.mxu0 %v7495_v56  ;;  %v550_v54 = vld [vmem:[#allocation3 + $0xcf8] sm:$0xff] }
 0x284   :  { %v8061_v56 = vld [vmem:[#allocation7 + $0x40] ss:$16 sps:$4 sm:$0xff]   ;;  %v7550_v60 = vcombine.low %v546_v53, %v550_v54  ;;  %v8078_v1 = vld [vmem:[#allocation7 + $0xe4] ss:$16 sps:$4 sm:$0xff]  }
 0x285   :  { %4313 = vmatpush1.bf16.msra.mxu1 %v7366_v0  ;;  %v8064_v0 = vld [vmem:[#allocation7 + $0x60] ss:$16 sps:$4 sm:$0xff]  }
 0x286   :  { %4354 = vmatpush1.bf16.msra.mxu0 %v7494_v3  ;;  %4314 = vmatprep.subr.bf16.mxu1 %v7375_v10  ;;  %v7559_v3 = vcombine.high %v554_v58, %v558_v59  ;;  %v8069_v10 = vld [vmem:[#allocation7 + $0x84] ss:$16 sps:$4 sm:$0xff]   ;;  %v8085_v59 = vld [vmem:[#allocation7 + $0x140] ss:$16 sps:$4 sm:$0xff]  }
 0x287   :  { %4355 = vmatprep.subr.bf16.mxu0 %v7503_v7  ;;  %v562_v7 = vld [vmem:[#allocation3 + $0xd58] sm:$0xff] }
 0x288   :  { %v578_v21 = vld [vmem:[#allocation3 + $0xdd8] sm:$0xff] }
 0x289   :  { %4315 = vmatpush1.bf16.msra.mxu1 %v7374_v15  ;;  %v574_v15 = vld [vmem:[#allocation3 + $0xdb8] sm:$0xff] }
 0x28a   :  { %4356 = vmatpush1.bf16.msra.mxu0 %v7502_v25  ;;  %4316 = vmatprep.subr.bf16.mxu1 %v7383_v23  ;;  %v8070_v23 = vld [vmem:[#allocation7 + $0xa0] ss:$16 sps:$4 sm:$0xff]   ;;  %v7574_v31 = vcombine.low %v570_v14, %v574_v15 }
 0x28b   :  { %4357 = vmatprep.subr.bf16.mxu0 %v7511_v17  ;;  %v7575_v17 = vcombine.high %v570_v14, %v574_v15  ;;  %v582_v63 = vld [vmem:[#allocation3 + $0xdf8] sm:$0xff]  ;;  %v9192_v14 = vsub.s32 0, %v9163_v45  ;;  %v4427_v15 = vsub.s32 3, %v9163_v45 }
 0x28c   :  { %v590_v37 = vld [vmem:[#allocation3 + $0xe38] sm:$0xff] }
 0x28d   :  { %4317 = vmatpush1.bf16.msra.mxu1 %v7382_v27 }
 0x28e   :  { %4358 = vmatpush1.bf16.msra.mxu0 %v7510_v34  ;;  %4318 = vmatprep.subr.bf16.mxu1 %v7391_v32 }
 0x28f   :  { %4359 = vmatprep.subr.bf16.mxu0 %v7519_v35 }
 0x291   :  { %4319 = vmatpush1.bf16.msra.mxu1 %v7390_v4 }
 0x292   :  { %4360 = vmatpush1.bf16.msra.mxu0 %v7518_v29  ;;  %4370 = vmatprep.subr.bf16.mxu1 %v7527_v36  ;;  %v7583_v36 = vcombine.high %v578_v21, %v582_v63 }
 0x293   :  { %6051 = vmatprep.subr.bf16.mxu0 %v8057_v11 }
 0x294   :  { %4321 = vmatmul.mubr.bf16.vlgmr.msra.gmra.mrb[36].mxu1 %v9082_v38  ;;  %v7542_v38 = vcombine.low %v538_v24, %v542_v44  ;;  %v8079_v44 = vld [vmem:[#allocation7 + $0x100] ss:$16 sps:$4 sm:$0xff]  }
 0x295   :  { %4362 = vmatmul.mubr.bf16.vlgmr.msra.gmra.mrb[32].mxu0 %v9084_v40  ;;  %4371 = vmatpush1.bf16.msra.mxu1 %v7526_v33  ;;  %v7551_v40 = vcombine.high %v546_v53, %v550_v54  ;;  %v8082_v54 = vld [vmem:[#allocation7 + $0x120] ss:$16 sps:$4 sm:$0xff]  }
 0x296   :  { %6052 = vmatpush1.bf16.msra.mxu0 %v8055_v41  ;;  %6083 = vmatprep.mubr.bf16.mxu0 %v9174_v42 }
 0x297   :  { %4372 = vmatprep.subr.bf16.mxu1 %v7535_v12  ;;  %6053 = vmatprep.subr.bf16.mxu0 %v8060_v43  ;;  %v594_v12 = vld [vmem:[#allocation3 + $0xe58] sm:$0xff] }
 0x298   :  { %4402 = vmatprep.mubr.bf16.mxu1 %v9086_v47  ;;  %v566_v47 = vld [vmem:[#allocation3 + $0xd78] sm:$0xff] }
 0x299   :  { %4373 = vmatpush1.bf16.msra.mxu1 %v7534_v46  ;;  %v7567_v16 = vcombine.high %v562_v7, %v566_v47  ;;  %v7566_v25 = vcombine.low %v562_v7, %v566_v47  ;;  %v598_v43 = vld [vmem:[#allocation3 + $0xe78] sm:$0xff] }
 0x29a   :  { %6054 = vmatpush1.bf16.msra.mxu0 %v8058_v48  ;;  %4374 = vmatprep.subr.bf16.mxu1 %v7543_v50  ;;  %v7599_v46 = vcombine.high %v594_v12, %v598_v43  ;;  %v8084_v48 = vld [vmem:[#allocation7 + $0x124] ss:$16 sps:$4 sm:$0xff]   ;;  %v7598_v53 = vcombine.low %v594_v12, %v598_v43  ;;  %v8088_v47 = vld [vmem:[#allocation7 + $0x160] ss:$16 sps:$4 sm:$0xff]   ;;  %v8108_v12 = vld [vmem:[#allocation7 + $0xc] ss:$16 sps:$4 sm:$0xff]  }
 0x29b   :  { %6055 = vmatprep.subr.bf16.mxu0 %v8063_v51  ;;  %v602_v50 = vld [vmem:[#allocation3 + $0xe98] sm:$0xff]  ;;  %v8106_v43 = vld [vmem:[#allocation7 + $0x8] ss:$16 sps:$4 sm:$0xff]  }
 0x29c   :  { %v606_v51 = vld [vmem:[#allocation3 + $0xeb8] sm:$0xff] }
 0x29d   :  { %4375 = vmatpush1.bf16.msra.mxu1 %v7542_v38  ;;  %v7607_v38 = vcombine.high %v602_v50, %v606_v51  ;;  %v7606_v58 = vcombine.low %v602_v50, %v606_v51  ;;  %v8114_v51 = vld [vmem:[#allocation7 + $0x2c] ss:$16 sps:$4 sm:$0xff]  }
 0x29e   :  { %6056 = vmatpush1.bf16.msra.mxu0 %v8061_v56  ;;  %4376 = vmatprep.subr.bf16.mxu1 %v7551_v40  ;;  %v8087_v56 = vld [vmem:[#allocation7 + $0x144] ss:$16 sps:$4 sm:$0xff]  }
 0x29f   :  { %6057 = vmatprep.subr.bf16.mxu0 %v8066_v57  ;;  %v610_v40 = vld [vmem:[#allocation3 + $0xed8] sm:$0xff] }
 0x2a0   :  { %v614_v57 = vld [vmem:[#allocation3 + $0xef8] sm:$0xff] }
 0x2a1   :  { %4377 = vmatpush1.bf16.msra.mxu1 %v7550_v60  ;;  %v7615_v60 = vcombine.high %v610_v40, %v614_v57  ;;  %v7614_v7 = vcombine.low %v610_v40, %v614_v57  ;;  %v8118_v40 = vld [vmem:[#allocation7 + $0x48] ss:$16 sps:$4 sm:$0xff]   ;;  %v8126_v57 = vld [vmem:[#allocation7 + $0x6c] ss:$16 sps:$4 sm:$0xff]  }
 0x2a2   :  { %6058 = vmatpush1.bf16.msra.mxu0 %v8064_v0  ;;  %4378 = vmatprep.subr.bf16.mxu1 %v7559_v3  ;;  %v8090_v0 = vld [vmem:[#allocation7 + $0x164] ss:$16 sps:$4 sm:$0xff]  }
 0x2a3   :  { %6059 = vmatprep.subr.bf16.mxu0 %v8069_v10  ;;  %v618_v3 = vld [vmem:[#allocation3 + $0xf18] sm:$0xff] }
 0x2a4   :  { %v622_v10 = vld [vmem:[#allocation3 + $0xf38] sm:$0xff] }
 0x2a5   :  { %4379 = vmatpush1.bf16.msra.mxu1 %v7558_v8  ;;  %v7623_v8 = vcombine.high %v618_v3, %v622_v10 }
 0x2a6   :  { %6060 = vmatpush1.bf16.msra.mxu0 %v8067_v9  ;;  %4380 = vmatprep.subr.bf16.mxu1 %v7567_v16  ;;  %v8093_v9 = vld [vmem:[#allocation7 + $0x184] ss:$16 sps:$4 sm:$0xff]  }
 0x2a7   :  { %v4076_v18 = vpop.f32.mrb[24].mxu1  ;;  %6061 = vmatprep.subr.bf16.mxu0 %v8072_v13  ;;  %v626_v16 = vld [vmem:[#allocation3 + $0xf58] sm:$0xff] }
 0x2a8   :  { %v9180_v22 = vadd.f32 %v4076_v18, %v9159_v61  ;;  %v4117_v27 = vpop.f32.mrb[20].mxu0  ;;  %v4078_v34 = vpop.f32.mrb[25].mxu1  ;;  %v8073_v61 = vld [vmem:[#allocation7 + $0xc0] ss:$16 sps:$4 sm:$0xff]   ;;  %v8096_v18 = vld [vmem:[#allocation7 + $0x1a4] ss:$16 sps:$4 sm:$0xff]  }
 0x2a9   :  { %v9183_v32 = vadd.f32 %v4117_v27, %v9105_v49  ;;  %v9186_v35 = vadd.f32 %v4078_v34, %v9161_v6  ;;  %v4119_v28 = vpop.f32.mrb[21].mxu0  ;;  %v4080_v30 = vpop.f32.mrb[26].mxu1  ;;  %4381 = vmatpush1.bf16.msra.mxu1 %v7566_v25  ;;  %v586_v49 = vld [vmem:[#allocation3 + $0xe18] sm:$0xff]  ;;  %v7582_v6 = vcombine.low %v578_v21, %v582_v63  ;;  %v7622_v25 = vcombine.low %v618_v3, %v622_v10 }
 0x2aa   :  { %v9189_v4 = vadd.f32 %v4119_v28, %v9107_v52  ;;  %6062 = vmatpush1.bf16.msra.mxu0 %v8070_v23  ;;  %v4081_v29 = vpop.f32.mrb[27].mxu1  ;;  %4382 = vmatprep.subr.bf16.mxu1 %v7575_v17  ;;  %v4121_v11 = vpop.f32.mrb[22].mxu0  ;;  %v7591_v41 = vcombine.high %v586_v49, %v590_v37  ;;  %v8081_v52 = vld [vmem:[#allocation7 + $0x104] ss:$16 sps:$4 sm:$0xff]   ;;  %v7590_v24 = vcombine.low %v586_v49, %v590_v37  ;;  %v8091_v23 = vld [vmem:[#allocation7 + $0x180] ss:$16 sps:$4 sm:$0xff]  }
 0x2ab   :  { %6063 = vmatprep.subr.bf16.mxu0 %v8075_v20  ;;  %v4122_v33 = vpop.f32.mrb[23].mxu0  ;;  %v630_v13 = vld [vmem:[#allocation3 + $0xf78] sm:$0xff]  ;;  %v4416_v63 = vrot.slane %v9168_v2, %v9192_v14  ;;  %v4428_v27 = vrot.slane %v9168_v2, %v4427_v15 }
 0x2ac   :  { %v7631_v17 = vcombine.high %v626_v16, %v630_v13  ;;  %v634_v20 = vld [vmem:[#allocation3 + $0xf98] sm:$0xff]  ;;  %v7630_v34 = vcombine.low %v626_v16, %v630_v13  ;;  %v8144_v16 = vld [vmem:[#allocation7 + $0xcc] ss:$16 sps:$4 sm:$0xff]  }
 0x2ad   :  { %4383 = vmatpush1.bf16.msra.mxu1 %v7574_v31  ;;  %v638_v21 = vld [vmem:[#allocation3 + $0xfb8] sm:$0xff]  ;;  %v4456_v11 = vadd.f32 %v4428_v27, %v9186_v35  ;;  %v8142_v27 = vld [vmem:[#allocation7 + $0xc8] ss:$16 sps:$4 sm:$0xff]  }
 0x2ae   :  { %6064 = vmatpush1.bf16.msra.mxu0 %v8073_v61  ;;  %4384 = vmatprep.subr.bf16.mxu1 %v7583_v36  ;;  %v8094_v28 = vld [vmem:[#allocation7 + $0x1a0] ss:$16 sps:$4 sm:$0xff]   ;;  %v7639_v30 = vcombine.high %v634_v20, %v638_v21  ;;  %v8099_v31 = vld [vmem:[#allocation7 + $0x1c4] ss:$16 sps:$4 sm:$0xff]   ;;  %v4453_v36 = vadd.f32 %v4416_v63, %v9142_v5 }
 0x2af   :  { %6065 = vmatprep.subr.bf16.mxu0 %v8078_v1  ;;  %v642_v29 = vld [vmem:[#allocation3 + $0xfd8] sm:$0xff]  ;;  %v7638_v1 = vcombine.low %v634_v20, %v638_v21  ;;  %vm4464_vm2 = vcmp.ge.f32.partialorder %v4456_v11, 0.0 }
 0x2b0   :  { %v646_v61 = vld [vmem:[#allocation3 + $0xff8] sm:$0xff]  ;;  %vm4461_vm1 = vcmp.ge.f32.partialorder %v4453_v36, 0.0 }
 0x2b1   :  { %4385 = vmatpush1.bf16.msra.mxu1 %v7582_v6  ;;  %v8097_v49 = vld [vmem:[#allocation7 + $0x1c0] ss:$16 sps:$4 sm:$0xff]   ;;  %v7647_v37 = vcombine.high %v642_v29, %v646_v61  ;;  %v8102_v33 = vld [vmem:[#allocation7 + $0x1e4] ss:$16 sps:$4 sm:$0xff]   ;;  %v4469_v6 = vmul.f32 0.2, %v4453_v36 }
 0x2b2   :  { %6066 = vmatpush1.bf16.msra.mxu0 %v8076_v39  ;;  %4386 = vmatprep.subr.bf16.mxu1 %v7591_v41  ;;  %v4472_v39 = vmul.f32 0.2, %v4456_v11  ;;  %v7646_v41 = vcombine.low %v642_v29, %v646_v61  ;;  %v8105_v5 = vld [vmem:[#allocation7 + $0x204] ss:$16 sps:$4 sm:$0xff]   ;;  %v8127_v10 = vld [vmem:[#allocation7 + $0x280] ss:$16 sps:$4 sm:$0xff]  }
 0x2b3   :  { %6067 = vmatprep.subr.bf16.mxu0 %v8081_v52  ;;  %v8100_v52 = vld [vmem:[#allocation7 + $0x1e0] ss:$16 sps:$4 sm:$0xff]   ;;  %v4477_v35 = vsel %vm4461_vm1, %v4453_v36, %v4469_v6  ;;  %v8129_v3 = vld [vmem:[#allocation7 + $0x284] ss:$16 sps:$4 sm:$0xff]   ;;  %v8162_v6 = vld [vmem:[#allocation7 + $0x12c] ss:$16 sps:$4 sm:$0xff]  }
 0x2b5   :  { %4387 = vmatpush1.bf16.msra.mxu1 %v7590_v24  ;;  %v4480_v24 = vsel %vm4464_vm2, %v4456_v11, %v4472_v39  ;;  %v8148_v11 = vld [vmem:[#allocation7 + $0xe8] ss:$16 sps:$4 sm:$0xff]   ;;  %v8159_v39 = vld [vmem:[#allocation7 + $0x324] ss:$16 sps:$4 sm:$0xff]  }
 0x2b6   :  { %6068 = vmatpush1.bf16.msra.mxu0 %v8079_v44  ;;  %4388 = vmatprep.subr.bf16.mxu1 %v7599_v46  ;;  %v8103_v44 = vld [vmem:[#allocation7 + $0x200] ss:$16 sps:$4 sm:$0xff]   ;;  %v9202_v46 = vpack.c.bf16 %v4477_v35, %v4477_v35  ;;  %v9205_v50 = vpack.c.bf16 %v4480_v24, %v4480_v24  ;;  %v8166_v35 = vld [vmem:[#allocation7 + $0x148] ss:$16 sps:$4 sm:$0xff]   ;;  %v8174_v24 = vld [vmem:[#allocation7 + $0x16c] ss:$16 sps:$4 sm:$0xff]  }
 0x2b7   :  { %6069 = vmatprep.subr.bf16.mxu0 %v8084_v48  ;;  %v8111_v48 = vld [vmem:[#allocation7 + $0x224] ss:$16 sps:$4 sm:$0xff]  }
 0x2b9   :  { %4389 = vmatpush1.bf16.msra.mxu1 %v7598_v53  ;;  %v8112_v53 = vld [vmem:[#allocation7 + $0x28] ss:$16 sps:$4 sm:$0xff]  }
 0x2ba   :  { %6070 = vmatpush1.bf16.msra.mxu0 %v8082_v54  ;;  %4390 = vmatprep.subr.bf16.mxu1 %v7607_v38  ;;  %v8109_v54 = vld [vmem:[#allocation7 + $0x220] ss:$16 sps:$4 sm:$0xff]   ;;  %v8120_v38 = vld [vmem:[#allocation7 + $0x4c] ss:$16 sps:$4 sm:$0xff]  }
 0x2bb   :  { %6071 = vmatprep.subr.bf16.mxu0 %v8087_v56  ;;  %v8117_v56 = vld [vmem:[#allocation7 + $0x244] ss:$16 sps:$4 sm:$0xff]  }
 0x2bd   :  { %4391 = vmatpush1.bf16.msra.mxu1 %v7606_v58  ;;  %v8123_v58 = vld [vmem:[#allocation7 + $0x264] ss:$16 sps:$4 sm:$0xff]  }
 0x2be   :  { %6072 = vmatpush1.bf16.msra.mxu0 %v8085_v59  ;;  %4392 = vmatprep.subr.bf16.mxu1 %v7615_v60  ;;  %v8124_v59 = vld [vmem:[#allocation7 + $0x68] ss:$16 sps:$4 sm:$0xff]   ;;  %v8121_v60 = vld [vmem:[#allocation7 + $0x260] ss:$16 sps:$4 sm:$0xff]  }
 0x2bf   :  { %6073 = vmatprep.subr.bf16.mxu0 %v8090_v0  ;;  %v8132_v0 = vld [vmem:[#allocation7 + $0x8c] ss:$16 sps:$4 sm:$0xff]  }
 0x2c1   :  { %4393 = vmatpush1.bf16.msra.mxu1 %v7614_v7  ;;  %v8138_v7 = vld [vmem:[#allocation7 + $0xac] ss:$16 sps:$4 sm:$0xff]  }
 0x2c2   :  { %6074 = vmatpush1.bf16.msra.mxu0 %v8088_v47  ;;  %4394 = vmatprep.subr.bf16.mxu1 %v7623_v8  ;;  %v8135_v47 = vld [vmem:[#allocation7 + $0x2a4] ss:$16 sps:$4 sm:$0xff]   ;;  %v8136_v8 = vld [vmem:[#allocation7 + $0xa8] ss:$16 sps:$4 sm:$0xff]  }
 0x2c3   :  { %6075 = vmatprep.subr.bf16.mxu0 %v8093_v9  ;;  %v8133_v9 = vld [vmem:[#allocation7 + $0x2a0] ss:$16 sps:$4 sm:$0xff]  }
 0x2c5   :  { %4395 = vmatpush1.bf16.msra.mxu1 %v7622_v25  ;;  %v8141_v25 = vld [vmem:[#allocation7 + $0x2c4] ss:$16 sps:$4 sm:$0xff]  }
 0x2c6   :  { %6076 = vmatpush1.bf16.msra.mxu0 %v8091_v23  ;;  %4396 = vmatprep.subr.bf16.mxu1 %v7631_v17 }
 0x2c7   :  { %6077 = vmatprep.subr.bf16.mxu0 %v8096_v18 }
 0x2c9   :  { %4397 = vmatpush1.bf16.msra.mxu1 %v7630_v34 }
 0x2ca   :  { %6078 = vmatpush1.bf16.msra.mxu0 %v8094_v28  ;;  %4398 = vmatprep.subr.bf16.mxu1 %v7639_v30  ;;  %v8139_v30 = vld [vmem:[#allocation7 + $0x2c0] ss:$16 sps:$4 sm:$0xff]  }
 0x2cb   :  { %6079 = vmatprep.subr.bf16.mxu0 %v8099_v31  ;;  %v8150_v31 = vld [vmem:[#allocation7 + $0xec] ss:$16 sps:$4 sm:$0xff]  }
 0x2cd   :  { %4399 = vmatpush1.bf16.msra.mxu1 %v7638_v1  ;;  %v8156_v1 = vld [vmem:[#allocation7 + $0x10c] ss:$16 sps:$4 sm:$0xff]  }
 0x2ce   :  { %6080 = vmatpush1.bf16.msra.mxu0 %v8097_v49  ;;  %4400 = vmatprep.subr.bf16.mxu1 %v7647_v37  ;;  %v8153_v49 = vld [vmem:[#allocation7 + $0x304] ss:$16 sps:$4 sm:$0xff]   ;;  %v8154_v37 = vld [vmem:[#allocation7 + $0x108] ss:$16 sps:$4 sm:$0xff]  }
 0x2cf   :  { %6081 = vmatprep.subr.bf16.mxu0 %v8102_v33  ;;  %v8151_v33 = vld [vmem:[#allocation7 + $0x300] ss:$16 sps:$4 sm:$0xff]  }
 0x2d1   :  { %4401 = vmatpush1.bf16.msra.mxu1 %v7646_v41  ;;  %v8160_v41 = vld [vmem:[#allocation7 + $0x128] ss:$16 sps:$4 sm:$0xff]  }
 0x2d2   :  { %6082 = vmatpush1.bf16.msra.mxu0 %v8100_v52  ;;  %6215 = vmatprep.subr.bf16.mxu1 %v8108_v12  ;;  %v8157_v52 = vld [vmem:[#allocation7 + $0x320] ss:$16 sps:$4 sm:$0xff]   ;;  %v8168_v12 = vld [vmem:[#allocation7 + $0x14c] ss:$16 sps:$4 sm:$0xff]  }
 0x2d3   :  { %6092 = vmatprep.subr.bf16.mxu0 %v8105_v5  ;;  %v8165_v5 = vld [vmem:[#allocation7 + $0x344] ss:$16 sps:$4 sm:$0xff]  }
 0x2d4   :  { %4403 = vmatmul.mubr.bf16.vlgmr.msra.gmra.mrb[40].mxu1 %v9095_v55  ;;  %v8115_v55 = vld [vmem:[#allocation7 + $0x240] ss:$16 sps:$4 sm:$0xff]  }
 0x2d5   :  { %6084 = vmatmul.mubr.bf16.vlgmr.msra.gmra.mrb[36].mxu0 %v9202_v46  ;;  %6216 = vmatpush1.bf16.msra.mxu1 %v8106_v43  ;;  %v8163_v43 = vld [vmem:[#allocation7 + $0x340] ss:$16 sps:$4 sm:$0xff]  }
 0x2d6   :  { %6093 = vmatpush1.bf16.msra.mxu0 %v8103_v44  ;;  %6124 = vmatprep.mubr.bf16.mxu0 %v9205_v50  ;;  %v8171_v44 = vld [vmem:[#allocation7 + $0x364] ss:$16 sps:$4 sm:$0xff]  }
 0x2d7   :  { %6247 = vmatprep.mubr.bf16.mxu1 %v9174_v42  ;;  %6094 = vmatprep.subr.bf16.mxu0 %v8111_v48  ;;  %v8130_v42 = vld [vmem:[#allocation7 + $0x88] ss:$16 sps:$4 sm:$0xff]  }
 0x2d8   :  { %6217 = vmatprep.subr.bf16.mxu1 %v8114_v51  ;;  %v8172_v48 = vld [vmem:[#allocation7 + $0x168] ss:$16 sps:$4 sm:$0xff]   ;;  %v8169_v51 = vld [vmem:[#allocation7 + $0x360] ss:$16 sps:$4 sm:$0xff]  }
 0x2d9   :  { %6218 = vmatpush1.bf16.msra.mxu1 %v8112_v53  ;;  %v8180_v53 = vld [vmem:[#allocation7 + $0x18c] ss:$16 sps:$4 sm:$0xff]  }
 0x2da   :  { %6095 = vmatpush1.bf16.msra.mxu0 %v8109_v54  ;;  %6219 = vmatprep.subr.bf16.mxu1 %v8120_v38  ;;  %v8177_v54 = vld [vmem:[#allocation7 + $0x384] ss:$16 sps:$4 sm:$0xff]   ;;  %v4423_v38 = vsub.s32 2, %v9163_v45 }
 0x2db   :  { %6096 = vmatprep.subr.bf16.mxu0 %v8117_v56  ;;  %v8178_v56 = vld [vmem:[#allocation7 + $0x188] ss:$16 sps:$4 sm:$0xff]  }
 0x2dd   :  { %6220 = vmatpush1.bf16.msra.mxu1 %v8118_v40  ;;  %v8175_v40 = vld [vmem:[#allocation7 + $0x380] ss:$16 sps:$4 sm:$0xff]  }
 0x2de   :  { %6097 = vmatpush1.bf16.msra.mxu0 %v8115_v55  ;;  %6221 = vmatprep.subr.bf16.mxu1 %v8126_v57  ;;  %v8186_v55 = vld [vmem:[#allocation7 + $0x1ac] ss:$16 sps:$4 sm:$0xff]   ;;  %v8183_v57 = vld [vmem:[#allocation7 + $0x3a4] ss:$16 sps:$4 sm:$0xff]  }
 0x2df   :  { %6098 = vmatprep.subr.bf16.mxu0 %v8123_v58  ;;  %v4424_v58 = vrot.slane %v9168_v2, %v4423_v38 }
 0x2e1   :  { %6222 = vmatpush1.bf16.msra.mxu1 %v8124_v59  ;;  %v8184_v59 = vld [vmem:[#allocation7 + $0x1a8] ss:$16 sps:$4 sm:$0xff]  }
 0x2e2   :  { %6099 = vmatpush1.bf16.msra.mxu0 %v8121_v60  ;;  %6223 = vmatprep.subr.bf16.mxu1 %v8132_v0  ;;  %v8181_v60 = vld [vmem:[#allocation7 + $0x3a0] ss:$16 sps:$4 sm:$0xff]   ;;  %v8192_v0 = vld [vmem:[#allocation7 + $0x1cc] ss:$16 sps:$4 sm:$0xff]  }
 0x2e3   :  { %6100 = vmatprep.subr.bf16.mxu0 %v8129_v3  ;;  %v8189_v3 = vld [vmem:[#allocation7 + $0x3c4] ss:$16 sps:$4 sm:$0xff]  }
 0x2e5   :  { %6224 = vmatpush1.bf16.msra.mxu1 %v8130_v42  ;;  %v4455_v42 = vadd.f32 %v4424_v58, %v9180_v22  ;;  %v8202_v22 = vld [vmem:[#allocation7 + $0x208] ss:$16 sps:$4 sm:$0xff]  }
 0x2e6   :  { %6101 = vmatpush1.bf16.msra.mxu0 %v8127_v10  ;;  %6225 = vmatprep.subr.bf16.mxu1 %v8138_v7  ;;  %v8190_v10 = vld [vmem:[#allocation7 + $0x1c8] ss:$16 sps:$4 sm:$0xff]   ;;  %v8187_v7 = vld [vmem:[#allocation7 + $0x3c0] ss:$16 sps:$4 sm:$0xff]  }
 0x2e7   :  { %v4158_v13 = vpop.f32.mrb[28].mxu1  ;;  %6102 = vmatprep.subr.bf16.mxu0 %v8135_v47  ;;  %v8198_v47 = vld [vmem:[#allocation7 + $0x1ec] ss:$16 sps:$4 sm:$0xff]   ;;  %vm4463_vm3 = vcmp.ge.f32.partialorder %v4455_v42, 0.0 }
 0x2e8   :  { %v4159_v23 = vadd.f32 %v4158_v13, %v9183_v32  ;;  %v4160_v17 = vpop.f32.mrb[29].mxu1  ;;  %v4199_v18 = vpop.f32.mrb[24].mxu0  ;;  %v8147_v32 = vld [vmem:[#allocation7 + $0x2e4] ss:$16 sps:$4 sm:$0xff]   ;;  %v8193_v13 = vld [vmem:[#allocation7 + $0x3e0] ss:$16 sps:$4 sm:$0xff]  }
 0x2e9   :  { %v4161_v20 = vadd.f32 %v4160_v17, %v9189_v4  ;;  %v4162_v21 = vpop.f32.mrb[30].mxu1  ;;  %6226 = vmatpush1.bf16.msra.mxu1 %v8136_v8  ;;  %v4201_v63 = vpop.f32.mrb[25].mxu0  ;;  %v8145_v4 = vld [vmem:[#allocation7 + $0x2e0] ss:$16 sps:$4 sm:$0xff]   ;;  %v8195_v8 = vld [vmem:[#allocation7 + $0x3e4] ss:$16 sps:$4 sm:$0xff]  }
 0x2ea   :  { %v9212_v34 = vadd.f32 %v4199_v18, %v4159_v23  ;;  %6103 = vmatpush1.bf16.msra.mxu0 %v8133_v9  ;;  %v4163_v28 = vpop.f32.mrb[31].mxu1  ;;  %6227 = vmatprep.subr.bf16.mxu1 %v8144_v16  ;;  %v4203_v29 = vpop.f32.mrb[26].mxu0  ;;  %v4471_v9 = vmul.f32 0.2, %v4455_v42  ;;  %v8196_v16 = vld [vmem:[#allocation7 + $0x1e8] ss:$16 sps:$4 sm:$0xff]  }
 0x2eb   :  { %v9214_v61 = vadd.f32 %v4201_v63, %v4161_v20  ;;  %6104 = vmatprep.subr.bf16.mxu0 %v8141_v25  ;;  %v4204_v36 = vpop.f32.mrb[27].mxu0  ;;  %v8204_v25 = vld [vmem:[#allocation7 + $0x20c] ss:$16 sps:$4 sm:$0xff]   ;;  %v8201_v23 = vld [vmem:[#allocation7 + $0x404] ss:$16 sps:$4 sm:$0xff]  }
 0x2ec   :  { %v4479_v17 = vsel %vm4463_vm3, %v4455_v42, %v4471_v9  ;;  %v8199_v18 = vld [vmem:[#allocation7 + $0x400] ss:$16 sps:$4 sm:$0xff]   ;;  %v8207_v21 = vld [vmem:[#allocation7 + $0x424] ss:$16 sps:$4 sm:$0xff]   ;;  %v8210_v63 = vld [vmem:[#allocation7 + $0x22c] ss:$16 sps:$4 sm:$0xff]  }
 0x2ed   :  { %6228 = vmatpush1.bf16.msra.mxu1 %v8142_v27  ;;  %v9221_v20 = vpack.c.bf16 %v4479_v17, %v4479_v17  ;;  %v8208_v27 = vld [vmem:[#allocation7 + $0x228] ss:$16 sps:$4 sm:$0xff]   ;;  %v8205_v28 = vld [vmem:[#allocation7 + $0x420] ss:$16 sps:$4 sm:$0xff]   ;;  %v8222_v36 = vld [vmem:[#allocation7 + $0x26c] ss:$16 sps:$4 sm:$0xff]  }
 0x2ee   :  { %6105 = vmatpush1.bf16.msra.mxu0 %v8139_v30  ;;  %6229 = vmatprep.subr.bf16.mxu1 %v8150_v31  ;;  %v8216_v30 = vld [vmem:[#allocation7 + $0x24c] ss:$16 sps:$4 sm:$0xff]   ;;  %v8213_v31 = vld [vmem:[#allocation7 + $0x444] ss:$16 sps:$4 sm:$0xff]   ;;  %v8214_v29 = vld [vmem:[#allocation7 + $0x248] ss:$16 sps:$4 sm:$0xff]  }
 0x2ef   :  { %6106 = vmatprep.subr.bf16.mxu0 %v8147_v32  ;;  %v8211_v32 = vld [vmem:[#allocation7 + $0x440] ss:$16 sps:$4 sm:$0xff]   ;;  %v8249_v42 = vld [vmem:[#allocation7 + $0x504] ss:$16 sps:$4 sm:$0xff]   ;;  %v8258_v9 = vld [vmem:[#allocation7 + $0x32c] ss:$16 sps:$4 sm:$0xff]  }
 0x2f0   :  { %v8261_v17 = vld [vmem:[#allocation7 + $0x544] ss:$16 sps:$4 sm:$0xff]  }
 0x2f1   :  { %6230 = vmatpush1.bf16.msra.mxu1 %v8148_v11  ;;  %v8220_v11 = vld [vmem:[#allocation7 + $0x268] ss:$16 sps:$4 sm:$0xff]  }
 0x2f2   :  { %6107 = vmatpush1.bf16.msra.mxu0 %v8145_v4  ;;  %6231 = vmatprep.subr.bf16.mxu1 %v8156_v1  ;;  %v8217_v4 = vld [vmem:[#allocation7 + $0x460] ss:$16 sps:$4 sm:$0xff]   ;;  %v8228_v1 = vld [vmem:[#allocation7 + $0x28c] ss:$16 sps:$4 sm:$0xff]  }
 0x2f3   :  { %6108 = vmatprep.subr.bf16.mxu0 %v8153_v49  ;;  %v8226_v49 = vld [vmem:[#allocation7 + $0x288] ss:$16 sps:$4 sm:$0xff]  }
 0x2f5   :  { %6232 = vmatpush1.bf16.msra.mxu1 %v8154_v37  ;;  %v8223_v37 = vld [vmem:[#allocation7 + $0x480] ss:$16 sps:$4 sm:$0xff]  }
 0x2f6   :  { %6109 = vmatpush1.bf16.msra.mxu0 %v8151_v33  ;;  %6233 = vmatprep.subr.bf16.mxu1 %v8162_v6  ;;  %v8234_v33 = vld [vmem:[#allocation7 + $0x2ac] ss:$16 sps:$4 sm:$0xff]   ;;  %v4435_v6 = vsub.s32 5, %v9163_v45 }
 0x2f7   :  { %6110 = vmatprep.subr.bf16.mxu0 %v8159_v39  ;;  %v8231_v39 = vld [vmem:[#allocation7 + $0x4a4] ss:$16 sps:$4 sm:$0xff]  }
 0x2f9   :  { %6234 = vmatpush1.bf16.msra.mxu1 %v8160_v41  ;;  %v8232_v41 = vld [vmem:[#allocation7 + $0x2a8] ss:$16 sps:$4 sm:$0xff]  }
 0x2fa   :  { %6111 = vmatpush1.bf16.msra.mxu0 %v8157_v52  ;;  %6235 = vmatprep.subr.bf16.mxu1 %v8168_v12  ;;  %v8229_v52 = vld [vmem:[#allocation7 + $0x4a0] ss:$16 sps:$4 sm:$0xff]   ;;  %v8240_v12 = vld [vmem:[#allocation7 + $0x2cc] ss:$16 sps:$4 sm:$0xff]  }
 0x2fb   :  { %6112 = vmatprep.subr.bf16.mxu0 %v8165_v5 }
 0x2fd   :  { %6236 = vmatpush1.bf16.msra.mxu1 %v8166_v35  ;;  %v4436_v35 = vrot.slane %v9168_v2, %v4435_v6 }
 0x2fe   :  { %6113 = vmatpush1.bf16.msra.mxu0 %v8163_v43  ;;  %6237 = vmatprep.subr.bf16.mxu1 %v8174_v24  ;;  %v8237_v43 = vld [vmem:[#allocation7 + $0x4c4] ss:$16 sps:$4 sm:$0xff]  }
 0x2ff   :  { %6114 = vmatprep.subr.bf16.mxu0 %v8171_v44 }
 0x301   :  { %6238 = vmatpush1.bf16.msra.mxu1 %v8172_v48 }
 0x302   :  { %6115 = vmatpush1.bf16.msra.mxu0 %v8169_v51  ;;  %6239 = vmatprep.subr.bf16.mxu1 %v8180_v53 }
 0x303   :  { %6116 = vmatprep.subr.bf16.mxu0 %v8177_v54 }
 0x305   :  { %6240 = vmatpush1.bf16.msra.mxu1 %v8178_v56 }
 0x306   :  { %6117 = vmatpush1.bf16.msra.mxu0 %v8175_v40  ;;  %6241 = vmatprep.subr.bf16.mxu1 %v8186_v55  ;;  %v8238_v40 = vld [vmem:[#allocation7 + $0x2c8] ss:$16 sps:$4 sm:$0xff]  }
 0x307   :  { %6118 = vmatprep.subr.bf16.mxu0 %v8183_v57  ;;  %v8235_v57 = vld [vmem:[#allocation7 + $0x4c0] ss:$16 sps:$4 sm:$0xff]  }
 0x309   :  { %6242 = vmatpush1.bf16.msra.mxu1 %v8184_v59 }
 0x30a   :  { %6119 = vmatpush1.bf16.msra.mxu0 %v8181_v60  ;;  %6243 = vmatprep.subr.bf16.mxu1 %v8192_v0  ;;  %v8243_v60 = vld [vmem:[#allocation7 + $0x4e4] ss:$16 sps:$4 sm:$0xff]  }
 0x30b   :  { %6120 = vmatprep.subr.bf16.mxu0 %v8189_v3  ;;  %v8241_v3 = vld [vmem:[#allocation7 + $0x4e0] ss:$16 sps:$4 sm:$0xff]  }
 0x30d   :  { %6244 = vmatpush1.bf16.msra.mxu1 %v8190_v10  ;;  %v8252_v10 = vld [vmem:[#allocation7 + $0x30c] ss:$16 sps:$4 sm:$0xff]  }
 0x30e   :  { %6121 = vmatpush1.bf16.msra.mxu0 %v8187_v7  ;;  %6245 = vmatprep.subr.bf16.mxu1 %v8198_v47  ;;  %v8250_v47 = vld [vmem:[#allocation7 + $0x308] ss:$16 sps:$4 sm:$0xff]  }
 0x30f   :  { %6122 = vmatprep.subr.bf16.mxu0 %v8195_v8  ;;  %v8247_v8 = vld [vmem:[#allocation7 + $0x500] ss:$16 sps:$4 sm:$0xff]  }
 0x311   :  { %6246 = vmatpush1.bf16.msra.mxu1 %v8196_v16  ;;  %v8255_v16 = vld [vmem:[#allocation7 + $0x524] ss:$16 sps:$4 sm:$0xff]  }
 0x312   :  { %6123 = vmatpush1.bf16.msra.mxu0 %v8193_v13  ;;  %6256 = vmatprep.subr.bf16.mxu1 %v8204_v25  ;;  %v8256_v13 = vld [vmem:[#allocation7 + $0x328] ss:$16 sps:$4 sm:$0xff]   ;;  %v8253_v25 = vld [vmem:[#allocation7 + $0x520] ss:$16 sps:$4 sm:$0xff]  }
 0x313   :  { %6133 = vmatprep.subr.bf16.mxu0 %v8201_v23  ;;  %v8264_v23 = vld [vmem:[#allocation7 + $0x34c] ss:$16 sps:$4 sm:$0xff]  }
 0x314   :  { %6248 = vmatmul.mubr.bf16.vlgmr.msra.gmra.mrb[44].mxu1 %v9202_v46  ;;  %v8219_v46 = vld [vmem:[#allocation7 + $0x464] ss:$16 sps:$4 sm:$0xff]  }
 0x315   :  { %6125 = vmatmul.mubr.bf16.vlgmr.msra.gmra.mrb[36].mxu0 %v9221_v20  ;;  %6257 = vmatpush1.bf16.msra.mxu1 %v8202_v22  ;;  %v8262_v22 = vld [vmem:[#allocation7 + $0x348] ss:$16 sps:$4 sm:$0xff]  }
 0x316   :  { %6134 = vmatpush1.bf16.msra.mxu0 %v8199_v18  ;;  %6288 = vmatprep.mubr.bf16.mxu1 %v9205_v50  ;;  %v8225_v50 = vld [vmem:[#allocation7 + $0x484] ss:$16 sps:$4 sm:$0xff]   ;;  %v8259_v18 = vld [vmem:[#allocation7 + $0x540] ss:$16 sps:$4 sm:$0xff]  }
 0x317   :  { %6135 = vmatprep.subr.bf16.mxu0 %v8207_v21  ;;  %6258 = vmatprep.subr.bf16.mxu1 %v8210_v63  ;;  %v8270_v21 = vld [vmem:[#allocation7 + $0x36c] ss:$16 sps:$4 sm:$0xff]   ;;  %v8267_v63 = vld [vmem:[#allocation7 + $0x564] ss:$16 sps:$4 sm:$0xff]  }
 0x319   :  { %6259 = vmatpush1.bf16.msra.mxu1 %v8208_v27  ;;  %v8268_v27 = vld [vmem:[#allocation7 + $0x368] ss:$16 sps:$4 sm:$0xff]  }
 0x31a   :  { %6136 = vmatpush1.bf16.msra.mxu0 %v8205_v28  ;;  %6260 = vmatprep.subr.bf16.mxu1 %v8216_v30  ;;  %v8265_v28 = vld [vmem:[#allocation7 + $0x560] ss:$16 sps:$4 sm:$0xff]   ;;  %v8276_v30 = vld [vmem:[#allocation7 + $0x38c] ss:$16 sps:$4 sm:$0xff]  }
 0x31b   :  { %6137 = vmatprep.subr.bf16.mxu0 %v8213_v31  ;;  %v8273_v31 = vld [vmem:[#allocation7 + $0x584] ss:$16 sps:$4 sm:$0xff]  }
 0x31d   :  { %6261 = vmatpush1.bf16.msra.mxu1 %v8214_v29  ;;  %v4431_v29 = vsub.s32 4, %v9163_v45 }
 0x31e   :  { %6138 = vmatpush1.bf16.msra.mxu0 %v8211_v32  ;;  %6262 = vmatprep.subr.bf16.mxu1 %v8222_v36  ;;  %v8274_v32 = vld [vmem:[#allocation7 + $0x388] ss:$16 sps:$4 sm:$0xff]   ;;  %v8271_v36 = vld [vmem:[#allocation7 + $0x580] ss:$16 sps:$4 sm:$0xff]  }
 0x31f   :  { %6139 = vmatprep.subr.bf16.mxu0 %v8219_v46  ;;  %v8282_v46 = vld [vmem:[#allocation7 + $0x3ac] ss:$16 sps:$4 sm:$0xff]  }
 0x321   :  { %6263 = vmatpush1.bf16.msra.mxu1 %v8220_v11  ;;  %v8279_v11 = vld [vmem:[#allocation7 + $0x5a4] ss:$16 sps:$4 sm:$0xff]  }
 0x322   :  { %6140 = vmatpush1.bf16.msra.mxu0 %v8217_v4  ;;  %6264 = vmatprep.subr.bf16.mxu1 %v8228_v1  ;;  %v9242_v4 = vld [vmem:[#allocation5] sm:$0xff] }
 0x323   :  { %6141 = vmatprep.subr.bf16.mxu0 %v8225_v50  ;;  %v4432_v1 = vrot.slane %v9242_v4, %v4431_v29  ;;  %v8280_v50 = vld [vmem:[#allocation7 + $0x3a8] ss:$16 sps:$4 sm:$0xff]   ;;  %v8318_v29 = vld [vmem:[#allocation7 + $0x4ec] ss:$16 sps:$4 sm:$0xff]  }
 0x325   :  { %6265 = vmatpush1.bf16.msra.mxu1 %v8226_v49  ;;  %v8277_v49 = vld [vmem:[#allocation7 + $0x5a0] ss:$16 sps:$4 sm:$0xff]  }
 0x326   :  { %6142 = vmatpush1.bf16.msra.mxu0 %v8223_v37  ;;  %6266 = vmatprep.subr.bf16.mxu1 %v8234_v33  ;;  %v8288_v37 = vld [vmem:[#allocation7 + $0x3cc] ss:$16 sps:$4 sm:$0xff]   ;;  %v8285_v33 = vld [vmem:[#allocation7 + $0x5c4] ss:$16 sps:$4 sm:$0xff]  }
 0x327   :  { %v4240_v5 = vpop.f32.mrb[32].mxu1  ;;  %6143 = vmatprep.subr.bf16.mxu0 %v8231_v39  ;;  %v8286_v39 = vld [vmem:[#allocation7 + $0x3c8] ss:$16 sps:$4 sm:$0xff]  }
 0x328   :  { %v9229_v24 = vadd.f32 %v4240_v5, %v9212_v34  ;;  %v4281_v44 = vpop.f32.mrb[28].mxu0  ;;  %v4242_v48 = vpop.f32.mrb[33].mxu1  ;;  %v8246_v34 = vld [vmem:[#allocation7 + $0x2ec] ss:$16 sps:$4 sm:$0xff]  }
 0x329   :  { %v9232_v51 = vadd.f32 %v4281_v44, %v9117_v19  ;;  %v4243_v53 = vadd.f32 %v4242_v48, %v9214_v61  ;;  %v4283_v54 = vpop.f32.mrb[29].mxu0  ;;  %v4244_v56 = vpop.f32.mrb[34].mxu1  ;;  %6267 = vmatpush1.bf16.msra.mxu1 %v8232_v41  ;;  %v8244_v61 = vld [vmem:[#allocation7 + $0x2e8] ss:$16 sps:$4 sm:$0xff]   ;;  %v8283_v41 = vld [vmem:[#allocation7 + $0x5c0] ss:$16 sps:$4 sm:$0xff]  }
 0x32a   :  { %v9236_v55 = vadd.f32 %v4283_v54, %v9119_v26  ;;  %6144 = vmatpush1.bf16.msra.mxu0 %v8229_v52  ;;  %v4245_v2 = vpop.f32.mrb[35].mxu1  ;;  %6268 = vmatprep.subr.bf16.mxu1 %v8240_v12  ;;  %v4285_v58 = vpop.f32.mrb[30].mxu0  ;;  %v4457_v6 = vadd.f32 %v4432_v1, %v9229_v24  ;;  %v8294_v52 = vld [vmem:[#allocation7 + $0x3ec] ss:$16 sps:$4 sm:$0xff]   ;;  %v8291_v12 = vld [vmem:[#allocation7 + $0x5e4] ss:$16 sps:$4 sm:$0xff]  }
 0x32b   :  { %v4458_v59 = vadd.f32 %v4436_v35, %v4243_v53  ;;  %6145 = vmatprep.subr.bf16.mxu0 %v8237_v43  ;;  %v4286_v19 = vpop.f32.mrb[31].mxu0  ;;  %v8292_v35 = vld [vmem:[#allocation7 + $0x3e8] ss:$16 sps:$4 sm:$0xff]   ;;  %v8289_v43 = vld [vmem:[#allocation7 + $0x5e0] ss:$16 sps:$4 sm:$0xff]  }
 0x32c   :  { %v4473_v5 = vmul.f32 0.2, %v4457_v6  ;;  %vm4465_vm5 = vcmp.ge.f32.partialorder %v4457_v6, 0.0  ;;  %v8297_v44 = vld [vmem:[#allocation7 + $0x40c] ss:$16 sps:$4 sm:$0xff]  }
 0x32d   :  { %v4474_v0 = vmul.f32 0.2, %v4458_v59  ;;  %6269 = vmatpush1.bf16.msra.mxu1 %v8238_v40  ;;  %vm4466_vm4 = vcmp.ge.f32.partialorder %v4458_v59, 0.0  ;;  %v8321_v48 = vld [vmem:[#allocation7 + $0x604] ss:$16 sps:$4 sm:$0xff]  }
 0x32e   :  { %6146 = vmatpush1.bf16.msra.mxu0 %v8235_v57  ;;  %6270 = vmatprep.subr.bf16.mxu1 %v8246_v34  ;;  %v4481_v53 = vsel %vm4465_vm5, %v4457_v6, %v4473_v5  ;;  %v8295_v24 = vld [vmem:[#allocation7 + $0x408] ss:$16 sps:$4 sm:$0xff]   ;;  %v8300_v54 = vld [vmem:[#allocation7 + $0x42c] ss:$16 sps:$4 sm:$0xff]   ;;  %v8319_v40 = vld [vmem:[#allocation7 + $0x600] ss:$16 sps:$4 sm:$0xff]  }
 0x32f   :  { %6147 = vmatprep.subr.bf16.mxu0 %v8243_v60  ;;  %v4482_v26 = vsel %vm4466_vm4, %v4458_v59, %v4474_v0  ;;  %v9246_v56 = vpack.c.bf16 %v4481_v53, %v4481_v53  ;;  %v8327_v2 = vld [vmem:[#allocation7 + $0x624] ss:$16 sps:$4 sm:$0xff]   ;;  %v8298_v57 = vld [vmem:[#allocation7 + $0x428] ss:$16 sps:$4 sm:$0xff]   ;;  %v8303_v34 = vld [vmem:[#allocation7 + $0x44c] ss:$16 sps:$4 sm:$0xff]  }
 0x330   :  { %v9238_v7 = vpack.c.bf16 %v4482_v26, %v4482_v26  ;;  %v8325_v58 = vld [vmem:[#allocation7 + $0x620] ss:$16 sps:$4 sm:$0xff]   ;;  %v8333_v59 = vld [vmem:[#allocation7 + $0x644] ss:$16 sps:$4 sm:$0xff]   ;;  %v8301_v60 = vld [vmem:[#allocation7 + $0x448] ss:$16 sps:$4 sm:$0xff]  }
 0x331   :  { %6271 = vmatpush1.bf16.msra.mxu1 %v8244_v61  ;;  %v8306_v19 = vld [vmem:[#allocation7 + $0x46c] ss:$16 sps:$4 sm:$0xff]   ;;  %v8331_v0 = vld [vmem:[#allocation7 + $0x640] ss:$16 sps:$4 sm:$0xff]   ;;  %v8304_v61 = vld [vmem:[#allocation7 + $0x468] ss:$16 sps:$4 sm:$0xff]  }
 0x332   :  { %6148 = vmatpush1.bf16.msra.mxu0 %v8241_v3  ;;  %6165 = vmatprep.mubr.bf16.mxu0 %v9238_v7  ;;  %v8309_v3 = vld [vmem:[#allocation7 + $0x48c] ss:$16 sps:$4 sm:$0xff]   ;;  %v8337_v26 = vld [vmem:[#allocation7 + $0x660] ss:$16 sps:$4 sm:$0xff]   ;;  %v8316_v1 = vld [vmem:[#allocation7 + $0x4e8] ss:$16 sps:$4 sm:$0xff]  }
 0x333   :  { %6149 = vmatprep.subr.bf16.mxu0 %v8249_v42  ;;  %6272 = vmatprep.subr.bf16.mxu1 %v8252_v10  ;;  %v8345_v42 = vld [vmem:[#allocation7 + $0x684] ss:$16 sps:$4 sm:$0xff]   ;;  %v8307_v10 = vld [vmem:[#allocation7 + $0x488] ss:$16 sps:$4 sm:$0xff]   ;;  %v8367_v6 = vld [vmem:[#allocation7 + $0x700] ss:$16 sps:$4 sm:$0xff]  }
 0x334   :  { %v8381_v5 = vld [vmem:[#allocation7 + $0x744] ss:$16 sps:$4 sm:$0xff]   ;;  %v8340_v53 = vld [vmem:[#allocation7 + $0x568] ss:$16 sps:$4 sm:$0xff]  }
 0x335   :  { %6273 = vmatpush1.bf16.msra.mxu1 %v8250_v47  ;;  %v8343_v47 = vld [vmem:[#allocation7 + $0x680] ss:$16 sps:$4 sm:$0xff]  }
 0x336   :  { %6150 = vmatpush1.bf16.msra.mxu0 %v8247_v8  ;;  %6274 = vmatprep.subr.bf16.mxu1 %v8258_v9  ;;  %v8351_v8 = vld [vmem:[#allocation7 + $0x6a4] ss:$16 sps:$4 sm:$0xff]   ;;  %v8310_v9 = vld [vmem:[#allocation7 + $0x4a8] ss:$16 sps:$4 sm:$0xff]  }
 0x337   :  { %6151 = vmatprep.subr.bf16.mxu0 %v8255_v16  ;;  %v8315_v16 = vld [vmem:[#allocation7 + $0x4cc] ss:$16 sps:$4 sm:$0xff]  }
 0x339   :  { %6275 = vmatpush1.bf16.msra.mxu1 %v8256_v13 }
 0x33a   :  { %6152 = vmatpush1.bf16.msra.mxu0 %v8253_v25  ;;  %6276 = vmatprep.subr.bf16.mxu1 %v8264_v23  ;;  %v8349_v25 = vld [vmem:[#allocation7 + $0x6a0] ss:$16 sps:$4 sm:$0xff]  }
 0x33b   :  { %6153 = vmatprep.subr.bf16.mxu0 %v8261_v17 }
 0x33d   :  { %6277 = vmatpush1.bf16.msra.mxu1 %v8262_v22 }
 0x33e   :  { %6154 = vmatpush1.bf16.msra.mxu0 %v8259_v18  ;;  %6278 = vmatprep.subr.bf16.mxu1 %v8270_v21  ;;  %v8357_v18 = vld [vmem:[#allocation7 + $0x6c4] ss:$16 sps:$4 sm:$0xff]  }
 0x33f   :  { %6155 = vmatprep.subr.bf16.mxu0 %v8267_v63 }
 0x341   :  { %6279 = vmatpush1.bf16.msra.mxu1 %v8268_v27 }
 0x342   :  { %6156 = vmatpush1.bf16.msra.mxu0 %v8265_v28  ;;  %6280 = vmatprep.subr.bf16.mxu1 %v8276_v30  ;;  %v8313_v28 = vld [vmem:[#allocation7 + $0x4c8] ss:$16 sps:$4 sm:$0xff]  }
 0x343   :  { %6157 = vmatprep.subr.bf16.mxu0 %v8273_v31 }
 0x345   :  { %6281 = vmatpush1.bf16.msra.mxu1 %v8274_v32 }
 0x346   :  { %6158 = vmatpush1.bf16.msra.mxu0 %v8271_v36  ;;  %6282 = vmatprep.subr.bf16.mxu1 %v8282_v46 }
 0x347   :  { %6159 = vmatprep.subr.bf16.mxu0 %v8279_v11  ;;  %v8363_v11 = vld [vmem:[#allocation7 + $0x6e4] ss:$16 sps:$4 sm:$0xff]  }
 0x349   :  { %6283 = vmatpush1.bf16.msra.mxu1 %v8280_v50  ;;  %v8361_v50 = vld [vmem:[#allocation7 + $0x6e0] ss:$16 sps:$4 sm:$0xff]  }
 0x34a   :  { %6160 = vmatpush1.bf16.msra.mxu0 %v8277_v49  ;;  %6284 = vmatprep.subr.bf16.mxu1 %v8288_v37  ;;  %v8369_v49 = vld [vmem:[#allocation7 + $0x704] ss:$16 sps:$4 sm:$0xff]   ;;  %v8322_v37 = vld [vmem:[#allocation7 + $0x508] ss:$16 sps:$4 sm:$0xff]  }
 0x34b   :  { %6161 = vmatprep.subr.bf16.mxu0 %v8285_v33  ;;  %v8330_v33 = vld [vmem:[#allocation7 + $0x52c] ss:$16 sps:$4 sm:$0xff]  }
 0x34d   :  { %6285 = vmatpush1.bf16.msra.mxu1 %v8286_v39  ;;  %v8375_v39 = vld [vmem:[#allocation7 + $0x724] ss:$16 sps:$4 sm:$0xff]  }
 0x34e   :  { %6162 = vmatpush1.bf16.msra.mxu0 %v8283_v41  ;;  %6286 = vmatprep.subr.bf16.mxu1 %v8294_v52  ;;  %v8328_v41 = vld [vmem:[#allocation7 + $0x528] ss:$16 sps:$4 sm:$0xff]   ;;  %v8336_v52 = vld [vmem:[#allocation7 + $0x54c] ss:$16 sps:$4 sm:$0xff]  }
 0x34f   :  { %6163 = vmatprep.subr.bf16.mxu0 %v8291_v12  ;;  %v8373_v12 = vld [vmem:[#allocation7 + $0x720] ss:$16 sps:$4 sm:$0xff]  }
 0x351   :  { %6287 = vmatpush1.bf16.msra.mxu1 %v8292_v35  ;;  %v8334_v35 = vld [vmem:[#allocation7 + $0x548] ss:$16 sps:$4 sm:$0xff]  }
 0x352   :  { %6164 = vmatpush1.bf16.msra.mxu0 %v8289_v43  ;;  %6297 = vmatprep.subr.bf16.mxu1 %v8297_v44  ;;  %v8342_v43 = vld [vmem:[#allocation7 + $0x56c] ss:$16 sps:$4 sm:$0xff]   ;;  %v8379_v44 = vld [vmem:[#allocation7 + $0x740] ss:$16 sps:$4 sm:$0xff]  }
 0x353   :  { %6174 = vmatprep.subr.bf16.mxu0 %v8321_v48  ;;  %v8387_v48 = vld [vmem:[#allocation7 + $0x764] ss:$16 sps:$4 sm:$0xff]  }
 0x354   :  { %6289 = vmatmul.mubr.bf16.vlgmr.msra.gmra.mrb[44].mxu1 %v9221_v20  ;;  %v8339_v20 = vld [vmem:[#allocation7 + $0x664] ss:$16 sps:$4 sm:$0xff]  }
 0x355   :  { %6166 = vmatmul.mubr.bf16.vlgmr.msra.gmra.mrb[36].mxu0 %v9246_v56  ;;  %6298 = vmatpush1.bf16.msra.mxu1 %v8295_v24  ;;  %v8348_v24 = vld [vmem:[#allocation7 + $0x58c] ss:$16 sps:$4 sm:$0xff]  }
 0x356   :  { %6329 = vmatprep.mubr.bf16.mxu1 %v9238_v7  ;;  %6299 = vmatprep.subr.bf16.mxu1 %v8300_v54  ;;  %v8312_v7 = vld [vmem:[#allocation7 + $0x4ac] ss:$16 sps:$4 sm:$0xff]   ;;  %v8385_v54 = vld [vmem:[#allocation7 + $0x760] ss:$16 sps:$4 sm:$0xff]  }
 0x357   :  { %6175 = vmatpush1.bf16.msra.mxu0 %v8319_v40  ;;  %v8393_v40 = vld [vmem:[#allocation7 + $0x784] ss:$16 sps:$4 sm:$0xff]  }
 0x358   :  { %6176 = vmatprep.subr.bf16.mxu0 %v8327_v2  ;;  %v8346_v2 = vld [vmem:[#allocation7 + $0x588] ss:$16 sps:$4 sm:$0xff]  }
 0x359   :  { %6300 = vmatpush1.bf16.msra.mxu1 %v8298_v57  ;;  %v8354_v57 = vld [vmem:[#allocation7 + $0x5ac] ss:$16 sps:$4 sm:$0xff]  }
 0x35a   :  { %6301 = vmatprep.subr.bf16.mxu1 %v8303_v34  ;;  %v8391_v34 = vld [vmem:[#allocation7 + $0x780] ss:$16 sps:$4 sm:$0xff]  }
 0x35b   :  { %6177 = vmatpush1.bf16.msra.mxu0 %v8325_v58  ;;  %v8399_v58 = vld [vmem:[#allocation7 + $0x7a4] ss:$16 sps:$4 sm:$0xff]  }
 0x35c   :  { %6178 = vmatprep.subr.bf16.mxu0 %v8333_v59  ;;  %v8352_v59 = vld [vmem:[#allocation7 + $0x5a8] ss:$16 sps:$4 sm:$0xff]  }
 0x35d   :  { %6302 = vmatpush1.bf16.msra.mxu1 %v8301_v60  ;;  %v8360_v60 = vld [vmem:[#allocation7 + $0x5cc] ss:$16 sps:$4 sm:$0xff]  }
 0x35e   :  { %6303 = vmatprep.subr.bf16.mxu1 %v8306_v19  ;;  %v8397_v19 = vld [vmem:[#allocation7 + $0x7a0] ss:$16 sps:$4 sm:$0xff]  }
 0x35f   :  { %6179 = vmatpush1.bf16.msra.mxu0 %v8331_v0  ;;  %v8405_v0 = vld [vmem:[#allocation7 + $0x7c4] ss:$16 sps:$4 sm:$0xff]  }
 0x360   :  { %6180 = vmatprep.subr.bf16.mxu0 %v8339_v20  ;;  %v8358_v20 = vld [vmem:[#allocation7 + $0x5c8] ss:$16 sps:$4 sm:$0xff]  }
 0x361   :  { %6304 = vmatpush1.bf16.msra.mxu1 %v8304_v61  ;;  %v8366_v61 = vld [vmem:[#allocation7 + $0x5ec] ss:$16 sps:$4 sm:$0xff]  }
 0x362   :  { %6305 = vmatprep.subr.bf16.mxu1 %v8309_v3  ;;  %v8403_v3 = vld [vmem:[#allocation7 + $0x7c0] ss:$16 sps:$4 sm:$0xff]  }
 0x363   :  { %6181 = vmatpush1.bf16.msra.mxu0 %v8337_v26  ;;  %v8411_v26 = vld [vmem:[#allocation7 + $0x7e4] ss:$16 sps:$4 sm:$0xff]  }
 0x364   :  { %6182 = vmatprep.subr.bf16.mxu0 %v8345_v42  ;;  %v8364_v42 = vld [vmem:[#allocation7 + $0x5e8] ss:$16 sps:$4 sm:$0xff]  }
 0x365   :  { %6306 = vmatpush1.bf16.msra.mxu1 %v8307_v10  ;;  %v8372_v10 = vld [vmem:[#allocation7 + $0x60c] ss:$16 sps:$4 sm:$0xff]  }
 0x366   :  { %6307 = vmatprep.subr.bf16.mxu1 %v8312_v7  ;;  %v8409_v7 = vld [vmem:[#allocation7 + $0x7e0] ss:$16 sps:$4 sm:$0xff]  }
 0x367   :  { %v4322_v13 = vpop.f32.mrb[36].mxu1  ;;  %6183 = vmatpush1.bf16.msra.mxu0 %v8343_v47  ;;  %v8441_v47 = vld [vmem:[#allocation10 + $0x4] ss:$8 sps:$4 sm:$0xff]  }
 0x368   :  { %v4323_v23 = vadd.f32 %v4322_v13, %v9232_v51  ;;  %v4324_v17 = vpop.f32.mrb[37].mxu1  ;;  %v4363_v22 = vpop.f32.mrb[32].mxu0  ;;  %6184 = vmatprep.subr.bf16.mxu0 %v8351_v8  ;;  %v8355_v51 = vld [vmem:[#allocation7 + $0x6c0] ss:$16 sps:$4 sm:$0xff]   ;;  %v8370_v8 = vld [vmem:[#allocation7 + $0x608] ss:$16 sps:$4 sm:$0xff]  }
 0x369   :  { %v4325_v21 = vadd.f32 %v4324_v17, %v9236_v55  ;;  %v4326_v63 = vpop.f32.mrb[38].mxu1  ;;  %6308 = vmatpush1.bf16.msra.mxu1 %v8310_v9  ;;  %v4365_v27 = vpop.f32.mrb[33].mxu0  ;;  %v8324_v55 = vld [vmem:[#allocation7 + $0x50c] ss:$16 sps:$4 sm:$0xff]   ;;  %v8388_v17 = vld [vmem:[#allocation7 + $0x668] ss:$16 sps:$4 sm:$0xff]  }
 0x36a   :  { %v9253_v30 = vadd.f32 %v4363_v22, %v4323_v23  ;;  %v4327_v31 = vpop.f32.mrb[39].mxu1  ;;  %6309 = vmatprep.subr.bf16.mxu1 %v8315_v16  ;;  %v4367_v32 = vpop.f32.mrb[34].mxu0  ;;  %v8378_v9 = vld [vmem:[#allocation7 + $0x62c] ss:$16 sps:$4 sm:$0xff]   ;;  %v8376_v16 = vld [vmem:[#allocation7 + $0x628] ss:$16 sps:$4 sm:$0xff]  }
 0x36b   :  { %v9255_v36 = vadd.f32 %v4365_v27, %v4325_v21  ;;  %v4368_v46 = vpop.f32.mrb[35].mxu0  ;;  %6185 = vmatpush1.bf16.msra.mxu0 %v8349_v25  ;;  %v8384_v13 = vld [vmem:[#allocation7 + $0x64c] ss:$16 sps:$4 sm:$0xff]   ;;  %v8382_v25 = vld [vmem:[#allocation7 + $0x648] ss:$16 sps:$4 sm:$0xff]   ;;  %v4439_v21 = vsub.s32 6, %v9163_v45 }
 0x36c   :  { %6186 = vmatprep.subr.bf16.mxu0 %v8357_v18  ;;  %v8390_v23 = vld [vmem:[#allocation7 + $0x66c] ss:$16 sps:$4 sm:$0xff]   ;;  %v8394_v18 = vld [vmem:[#allocation7 + $0x688] ss:$16 sps:$4 sm:$0xff]  }
 0x36d   :  { %6310 = vmatpush1.bf16.msra.mxu1 %v8313_v28  ;;  %v8396_v22 = vld [vmem:[#allocation7 + $0x68c] ss:$16 sps:$4 sm:$0xff]   ;;  %v8400_v27 = vld [vmem:[#allocation7 + $0x6a8] ss:$16 sps:$4 sm:$0xff]   ;;  %v4440_v28 = vrot.slane %v9242_v4, %v4439_v21 }
 0x36e   :  { %6311 = vmatprep.subr.bf16.mxu1 %v8318_v29  ;;  %v8402_v63 = vld [vmem:[#allocation7 + $0x6ac] ss:$16 sps:$4 sm:$0xff]   ;;  %v8471_v21 = vld [vmem:[#allocation10 + $0xa4] ss:$8 sps:$4 sm:$0xff]  }
 0x36f   :  { %6187 = vmatpush1.bf16.msra.mxu0 %v8355_v51  ;;  %v8408_v31 = vld [vmem:[#allocation7 + $0x6cc] ss:$16 sps:$4 sm:$0xff]  }
 0x370   :  { %6188 = vmatprep.subr.bf16.mxu0 %v8363_v11 }
 0x371   :  { %6312 = vmatpush1.bf16.msra.mxu1 %v8316_v1 }
 0x372   :  { %6313 = vmatprep.subr.bf16.mxu1 %v8324_v55  ;;  %v8406_v55 = vld [vmem:[#allocation7 + $0x6c8] ss:$16 sps:$4 sm:$0xff]  }
 0x373   :  { %6189 = vmatpush1.bf16.msra.mxu0 %v8361_v50 }
 0x374   :  { %6190 = vmatprep.subr.bf16.mxu0 %v8369_v49 }
 0x375   :  { %6314 = vmatpush1.bf16.msra.mxu1 %v8322_v37  ;;  %v8414_v37 = vld [vmem:[#allocation7 + $0x6ec] ss:$16 sps:$4 sm:$0xff]  }
 0x376   :  { %6315 = vmatprep.subr.bf16.mxu1 %v8330_v33 }
 0x377   :  { %6191 = vmatpush1.bf16.msra.mxu0 %v8367_v6 }
 0x378   :  { %6192 = vmatprep.subr.bf16.mxu0 %v8375_v39 }
 0x379   :  { %6316 = vmatpush1.bf16.msra.mxu1 %v8328_v41  ;;  %v8412_v41 = vld [vmem:[#allocation7 + $0x6e8] ss:$16 sps:$4 sm:$0xff]  }
 0x37a   :  { %6317 = vmatprep.subr.bf16.mxu1 %v8336_v52  ;;  %v8417_v52 = vld [vmem:[#allocation7 + $0x70c] ss:$16 sps:$4 sm:$0xff]  }
 0x37b   :  { %6193 = vmatpush1.bf16.msra.mxu0 %v8373_v12 }
 0x37c   :  { %6194 = vmatprep.subr.bf16.mxu0 %v8381_v5 }
 0x37d   :  { %6318 = vmatpush1.bf16.msra.mxu1 %v8334_v35  ;;  %v8415_v35 = vld [vmem:[#allocation7 + $0x708] ss:$16 sps:$4 sm:$0xff]  }
 0x37e   :  { %6319 = vmatprep.subr.bf16.mxu1 %v8342_v43  ;;  %v8444_v43 = vld [vmem:[#allocation10 + $0x14] ss:$8 sps:$4 sm:$0xff]  }
 0x37f   :  { %6195 = vmatpush1.bf16.msra.mxu0 %v8379_v44  ;;  %v8420_v44 = vld [vmem:[#allocation7 + $0x72c] ss:$16 sps:$4 sm:$0xff]  }
 0x380   :  { %6196 = vmatprep.subr.bf16.mxu0 %v8387_v48  ;;  %v8442_v48 = vld [vmem:[#allocation10 + $0x10] ss:$8 sps:$4 sm:$0xff]  }
 0x381   :  { %6320 = vmatpush1.bf16.msra.mxu1 %v8340_v53  ;;  %v8418_v53 = vld [vmem:[#allocation7 + $0x728] ss:$16 sps:$4 sm:$0xff]  }
 0x382   :  { %6321 = vmatprep.subr.bf16.mxu1 %v8348_v24  ;;  %v8447_v24 = vld [vmem:[#allocation10 + $0x24] ss:$8 sps:$4 sm:$0xff]  }
 0x383   :  { %6197 = vmatpush1.bf16.msra.mxu0 %v8385_v54  ;;  %v8423_v54 = vld [vmem:[#allocation7 + $0x74c] ss:$16 sps:$4 sm:$0xff]  }
 0x384   :  { %6198 = vmatprep.subr.bf16.mxu0 %v8393_v40  ;;  %v8445_v40 = vld [vmem:[#allocation10 + $0x20] ss:$8 sps:$4 sm:$0xff]  }
 0x385   :  { %6322 = vmatpush1.bf16.msra.mxu1 %v8346_v2  ;;  %v8421_v2 = vld [vmem:[#allocation7 + $0x748] ss:$16 sps:$4 sm:$0xff]  }
 0x386   :  { %6323 = vmatprep.subr.bf16.mxu1 %v8354_v57  ;;  %v8450_v57 = vld [vmem:[#allocation10 + $0x34] ss:$8 sps:$4 sm:$0xff]  }
 0x387   :  { %6199 = vmatpush1.bf16.msra.mxu0 %v8391_v34  ;;  %v8426_v34 = vld [vmem:[#allocation7 + $0x76c] ss:$16 sps:$4 sm:$0xff]  }
 0x388   :  { %6200 = vmatprep.subr.bf16.mxu0 %v8399_v58  ;;  %v8448_v58 = vld [vmem:[#allocation10 + $0x30] ss:$8 sps:$4 sm:$0xff]  }
 0x389   :  { %6324 = vmatpush1.bf16.msra.mxu1 %v8352_v59  ;;  %v8424_v59 = vld [vmem:[#allocation7 + $0x768] ss:$16 sps:$4 sm:$0xff]  }
 0x38a   :  { %6325 = vmatprep.subr.bf16.mxu1 %v8360_v60  ;;  %v8453_v60 = vld [vmem:[#allocation10 + $0x44] ss:$8 sps:$4 sm:$0xff]  }
 0x38b   :  { %6201 = vmatpush1.bf16.msra.mxu0 %v8397_v19  ;;  %v8429_v19 = vld [vmem:[#allocation7 + $0x78c] ss:$16 sps:$4 sm:$0xff]  }
 0x38c   :  { %6202 = vmatprep.subr.bf16.mxu0 %v8405_v0  ;;  %v8451_v0 = vld [vmem:[#allocation10 + $0x40] ss:$8 sps:$4 sm:$0xff]  }
 0x38d   :  { %6326 = vmatpush1.bf16.msra.mxu1 %v8358_v20  ;;  %v8427_v20 = vld [vmem:[#allocation7 + $0x788] ss:$16 sps:$4 sm:$0xff]  }
 0x38e   :  { %6327 = vmatprep.subr.bf16.mxu1 %v8366_v61  ;;  %v8456_v61 = vld [vmem:[#allocation10 + $0x54] ss:$8 sps:$4 sm:$0xff]  }
 0x38f   :  { %6203 = vmatpush1.bf16.msra.mxu0 %v8403_v3  ;;  %v8432_v3 = vld [vmem:[#allocation7 + $0x7ac] ss:$16 sps:$4 sm:$0xff]  }
 0x390   :  { %6204 = vmatprep.subr.bf16.mxu0 %v8411_v26  ;;  %v8454_v26 = vld [vmem:[#allocation10 + $0x50] ss:$8 sps:$4 sm:$0xff]  }
 0x391   :  { %6328 = vmatpush1.bf16.msra.mxu1 %v8364_v42  ;;  %v8430_v42 = vld [vmem:[#allocation7 + $0x7a8] ss:$16 sps:$4 sm:$0xff]  }
 0x392   :  { %6338 = vmatprep.subr.bf16.mxu1 %v8372_v10  ;;  %v8459_v10 = vld [vmem:[#allocation10 + $0x64] ss:$8 sps:$4 sm:$0xff]  }
 0x393   :  { %6205 = vmatpush1.bf16.msra.mxu0 %v8409_v7  ;;  %v8435_v7 = vld [vmem:[#allocation7 + $0x7cc] ss:$16 sps:$4 sm:$0xff]  }
 0x394   :  { %6330 = vmatmul.mubr.bf16.vlgmr.msra.gmra.mrb[44].mxu1 %v9246_v56  ;;  %6791 = vmatprep.subr.bf16.mxu0 %v8441_v47  ;;  %v4443_v56 = vsub.s32 7, %v9163_v45  ;;  %v8457_v47 = vld [vmem:[#allocation10 + $0x60] ss:$8 sps:$4 sm:$0xff]  }
 0x395   :  { %6339 = vmatpush1.bf16.msra.mxu1 %v8370_v8  ;;  %v8433_v8 = vld [vmem:[#allocation7 + $0x7c8] ss:$16 sps:$4 sm:$0xff]  }
 0x396   :  { %6340 = vmatprep.subr.bf16.mxu1 %v8378_v9  ;;  %v4444_v32 = vrot.slane %v9242_v4, %v4443_v56  ;;  %v8462_v9 = vld [vmem:[#allocation10 + $0x74] ss:$8 sps:$4 sm:$0xff]   ;;  %v8547_v45 = vld [vmem:[%s9342_s9 + $0x70] sm:$0xff]  }
 0x397   :  { %v8474_v56 = vld [vmem:[#allocation10 + $0xb4] ss:$8 sps:$4 sm:$0xff]  }
 0x399   :  { %6341 = vmatpush1.bf16.msra.mxu1 %v8376_v16  ;;  %v8438_v16 = vld [vmem:[#allocation7 + $0x7ec] ss:$16 sps:$4 sm:$0xff]  }
 0x39a   :  { %6342 = vmatprep.subr.bf16.mxu1 %v8384_v13  ;;  %v8460_v13 = vld [vmem:[#allocation10 + $0x70] ss:$8 sps:$4 sm:$0xff]  }
 0x39d   :  { %6343 = vmatpush1.bf16.msra.mxu1 %v8382_v25  ;;  %v8436_v25 = vld [vmem:[#allocation7 + $0x7e8] ss:$16 sps:$4 sm:$0xff]  }
 0x39e   :  { %6344 = vmatprep.subr.bf16.mxu1 %v8390_v23  ;;  %v8465_v23 = vld [vmem:[#allocation10 + $0x84] ss:$8 sps:$4 sm:$0xff]  }
 0x3a1   :  { %6345 = vmatpush1.bf16.msra.mxu1 %v8388_v17  ;;  %v8463_v17 = vld [vmem:[#allocation10 + $0x80] ss:$8 sps:$4 sm:$0xff]  }
 0x3a2   :  { %6346 = vmatprep.subr.bf16.mxu1 %v8396_v22  ;;  %v8468_v22 = vld [vmem:[#allocation10 + $0x94] ss:$8 sps:$4 sm:$0xff]  }
 0x3a5   :  { %6347 = vmatpush1.bf16.msra.mxu1 %v8394_v18  ;;  %v8466_v18 = vld [vmem:[#allocation10 + $0x90] ss:$8 sps:$4 sm:$0xff]  }
 0x3a6   :  { %6348 = vmatprep.subr.bf16.mxu1 %v8402_v63  ;;  %v8469_v63 = vld [vmem:[#allocation10 + $0xa0] ss:$8 sps:$4 sm:$0xff]  }
 0x3a7   :  { %v4404_v29 = vpop.f32.mrb[40].mxu1 }
 0x3a8   :  { %v4405_v46 = vadd.f32 %v4404_v29, %v9253_v30  ;;  %v4406_v51 = vpop.f32.mrb[41].mxu1  ;;  %v8480_v29 = vld [vmem:[#allocation10 + $0xd4] ss:$8 sps:$4 sm:$0xff]  }
 0x3a9   :  { %v4407_v11 = vadd.f32 %v4406_v51, %v9255_v36  ;;  %v4408_v1 = vpop.f32.mrb[42].mxu1  ;;  %6349 = vmatpush1.bf16.msra.mxu1 %v8400_v27  ;;  %v8439_v36 = vld [vmem:[#allocation10] ss:$8 sps:$4 sm:$0xff]   ;;  %v8472_v27 = vld [vmem:[#allocation10 + $0xb0] ss:$8 sps:$4 sm:$0xff]  }
 0x3aa   :  { %v4459_v50 = vadd.f32 %v4440_v28, %v4405_v46  ;;  %v4409_v49 = vpop.f32.mrb[43].mxu1  ;;  %6350 = vmatprep.subr.bf16.mxu1 %v8408_v31  ;;  %v8477_v28 = vld [vmem:[#allocation10 + $0xc4] ss:$8 sps:$4 sm:$0xff]   ;;  %v8475_v31 = vld [vmem:[#allocation10 + $0xc0] ss:$8 sps:$4 sm:$0xff]  }
 0x3ab   :  { %v4460_v33 = vadd.f32 %v4444_v32, %v4407_v11  ;;  %v8478_v32 = vld [vmem:[#allocation10 + $0xd0] ss:$8 sps:$4 sm:$0xff]   ;;  %v8483_v46 = vld [vmem:[#allocation10 + $0xe4] ss:$8 sps:$4 sm:$0xff]   ;;  %v8481_v51 = vld [vmem:[#allocation10 + $0xe0] ss:$8 sps:$4 sm:$0xff]  }
 0x3ac   :  { %vm4467_vm6 = vcmp.ge.f32.partialorder %v4459_v50, 0.0  ;;  %v4475_v6 = vmul.f32 0.2, %v4459_v50  ;;  %v8486_v11 = vld [vmem:[#allocation10 + $0xf4] ss:$8 sps:$4 sm:$0xff]  }
 0x3ad   :  { %v4476_v39 = vmul.f32 0.2, %v4460_v33  ;;  %6351 = vmatpush1.bf16.msra.mxu1 %v8406_v55  ;;  %vm4468_vm7 = vcmp.ge.f32.partialorder %v4460_v33, 0.0  ;;  %v8484_v1 = vld [vmem:[#allocation10 + $0xf0] ss:$8 sps:$4 sm:$0xff]  }
 0x3ae   :  { %v4483_v4 = vsel %vm4467_vm6, %v4459_v50, %v4475_v6  ;;  %6352 = vmatprep.subr.bf16.mxu1 %v8414_v37  ;;  %v8489_v55 = vld [vmem:[#allocation10 + $0x104] ss:$8 sps:$4 sm:$0xff]   ;;  %v8535_v50 = vld [vmem:[%s9342_s9 + $0x40] sm:$0xff]   ;;  %v8537_v37 = vld [vmem:[%s9342_s9 + $0x48] sm:$0xff]  }
 0x3af   :  { %v4484_v30 = vsel %vm4468_vm7, %v4460_v33, %v4476_v39  ;;  %v9264_v5 = vpack.c.bf16 %v4483_v4, %v4483_v4  ;;  %v8536_v49 = vld [vmem:[%s9342_s9] sm:$0xff]   ;;  %v8538_v33 = vld [vmem:[%s9342_s9 + $0x8] sm:$0xff]   ;;  %v8539_v6 = vld [vmem:[%s9342_s9 + $0x50] sm:$0xff]  }
 0x3b0   :  { %v4492_v12 = vpack.c.bf16 %v4484_v30, %v4484_v30  ;;  %v8540_v39 = vld [vmem:[%s9342_s9 + $0x10] sm:$0xff]   ;;  %v8542_v4 = vld [vmem:[%s9342_s9 + $0x18] sm:$0xff]   ;;  %v8543_v30 = vld [vmem:[%s9342_s9 + $0x60] sm:$0xff]  }
 0x3b1   :  { %6353 = vmatpush1.bf16.msra.mxu1 %v8412_v41  ;;  %v8541_v41 = vld [vmem:[%s9342_s9 + $0x58] sm:$0xff]  }
 0x3b2   :  { %6206 = vmatprep.mubr.bf16.mxu0 %v4492_v12  ;;  %6370 = vmatprep.mubr.bf16.mxu1 %v4492_v12  ;;  %v8545_v12 = vld [vmem:[%s9342_s9 + $0x68] sm:$0xff]  }
 0x3b3   :  { %6207 = vmatmul.mubr.bf16.vlgmr.msra.gmra.mrb[36].mxu0 %v9264_v5  ;;  %6354 = vmatprep.subr.bf16.mxu1 %v8417_v52  ;;  %v8544_v52 = vld [vmem:[%s9342_s9 + $0x20] sm:$0xff]  }
 0x3b4   :  { %6792 = vmatpush1.bf16.msra.mxu0 %v8439_v36  ;;  %v8546_v36 = vld [vmem:[%s9342_s9 + $0x28] sm:$0xff]  }
 0x3b5   :  { %6355 = vmatpush1.bf16.msra.mxu1 %v8415_v35  ;;  %6793 = vmatprep.subr.bf16.mxu0 %v8444_v43 }
 0x3b6   :  { %6356 = vmatprep.subr.bf16.mxu1 %v8420_v44 }
 0x3b8   :  { %6794 = vmatpush1.bf16.msra.mxu0 %v8442_v48 }
 0x3b9   :  { %6357 = vmatpush1.bf16.msra.mxu1 %v8418_v53  ;;  %6795 = vmatprep.subr.bf16.mxu0 %v8447_v24 }
 0x3ba   :  { %6358 = vmatprep.subr.bf16.mxu1 %v8423_v54 }
 0x3bc   :  { %6796 = vmatpush1.bf16.msra.mxu0 %v8445_v40 }
 0x3bd   :  { %6359 = vmatpush1.bf16.msra.mxu1 %v8421_v2  ;;  %6797 = vmatprep.subr.bf16.mxu0 %v8450_v57 }
 0x3be   :  { %6360 = vmatprep.subr.bf16.mxu1 %v8426_v34 }
 0x3c0   :  { %6798 = vmatpush1.bf16.msra.mxu0 %v8448_v58 }
 0x3c1   :  { %6361 = vmatpush1.bf16.msra.mxu1 %v8424_v59  ;;  %6799 = vmatprep.subr.bf16.mxu0 %v8453_v60  ;;  %v8487_v60 = vld [vmem:[#allocation10 + $0x100] ss:$8 sps:$4 sm:$0xff]  }
 0x3c2   :  { %6362 = vmatprep.subr.bf16.mxu1 %v8429_v19 }
 0x3c4   :  { %6800 = vmatpush1.bf16.msra.mxu0 %v8451_v0  ;;  %v8492_v0 = vld [vmem:[#allocation10 + $0x114] ss:$8 sps:$4 sm:$0xff]  }
 0x3c5   :  { %6363 = vmatpush1.bf16.msra.mxu1 %v8427_v20  ;;  %6801 = vmatprep.subr.bf16.mxu0 %v8456_v61  ;;  %v8490_v20 = vld [vmem:[#allocation10 + $0x110] ss:$8 sps:$4 sm:$0xff]   ;;  %v8495_v61 = vld [vmem:[#allocation10 + $0x124] ss:$8 sps:$4 sm:$0xff]  }
 0x3c6   :  { %6364 = vmatprep.subr.bf16.mxu1 %v8432_v3  ;;  %v8493_v3 = vld [vmem:[#allocation10 + $0x120] ss:$8 sps:$4 sm:$0xff]  }
 0x3c8   :  { %6802 = vmatpush1.bf16.msra.mxu0 %v8454_v26  ;;  %v8498_v26 = vld [vmem:[#allocation10 + $0x134] ss:$8 sps:$4 sm:$0xff]  }
 0x3c9   :  { %6365 = vmatpush1.bf16.msra.mxu1 %v8430_v42  ;;  %6803 = vmatprep.subr.bf16.mxu0 %v8459_v10  ;;  %v8496_v42 = vld [vmem:[#allocation10 + $0x130] ss:$8 sps:$4 sm:$0xff]   ;;  %v8501_v10 = vld [vmem:[#allocation10 + $0x144] ss:$8 sps:$4 sm:$0xff]  }
 0x3ca   :  { %6366 = vmatprep.subr.bf16.mxu1 %v8435_v7  ;;  %v8499_v7 = vld [vmem:[#allocation10 + $0x140] ss:$8 sps:$4 sm:$0xff]  }
 0x3cc   :  { %6804 = vmatpush1.bf16.msra.mxu0 %v8457_v47  ;;  %v8504_v47 = vld [vmem:[#allocation10 + $0x154] ss:$8 sps:$4 sm:$0xff]  }
 0x3cd   :  { %6367 = vmatpush1.bf16.msra.mxu1 %v8433_v8  ;;  %6805 = vmatprep.subr.bf16.mxu0 %v8462_v9  ;;  %v8502_v8 = vld [vmem:[#allocation10 + $0x150] ss:$8 sps:$4 sm:$0xff]   ;;  %v8507_v9 = vld [vmem:[#allocation10 + $0x164] ss:$8 sps:$4 sm:$0xff]  }
 0x3ce   :  { %6368 = vmatprep.subr.bf16.mxu1 %v8438_v16  ;;  %v8505_v16 = vld [vmem:[#allocation10 + $0x160] ss:$8 sps:$4 sm:$0xff]  }
 0x3d0   :  { %6806 = vmatpush1.bf16.msra.mxu0 %v8460_v13 }
 0x3d1   :  { %6369 = vmatpush1.bf16.msra.mxu1 %v8436_v25  ;;  %6807 = vmatprep.subr.bf16.mxu0 %v8465_v23  ;;  %v8510_v25 = vld [vmem:[#allocation10 + $0x174] ss:$8 sps:$4 sm:$0xff]  }
 0x3d2   :  { %7986 = vmatprep.subr.bf16.mxu1 %v8535_v50  ;;  %v8523_v50 = vld [vmem:[#allocation10 + $0x1c0] ss:$8 sps:$4 sm:$0xff]  }
 0x3d4   :  { %6371 = vmatmul.mubr.bf16.vlgmr.msra.gmra.mrb[44].mxu1 %v9264_v5  ;;  %6808 = vmatpush1.bf16.msra.mxu0 %v8463_v17  ;;  %v9304_v5 = vld [vmem:[#allocation8] sm:$0xf] }
 0x3d5   :  { %6809 = vmatprep.subr.bf16.mxu0 %v8468_v22  ;;  %7987 = vmatpush3.bf16.msra.mxu1 %v8536_v49  ;;  %v4754_v35 = vrot.slane %v9304_v5, %v9192_v14  ;;  %v4758_v43 = vrot.slane %v9304_v5, %v9166_v62  ;;  %v4766_v13 = vrot.slane %v9304_v5, %v4427_v15  ;;  %v8514_v15 = vld [vmem:[#allocation10 + $0x190] ss:$8 sps:$4 sm:$0xff]   ;;  %v8528_v49 = vld [vmem:[#allocation10 + $0x1d4] ss:$8 sps:$4 sm:$0xff]  }
 0x3d6   :  { %7988 = vmatprep.subr.bf16.mxu1 %v8537_v37  ;;  %v4762_v37 = vrot.slane %v9304_v5, %v4423_v38  ;;  %v8548_v38 = vld [vmem:[%s9342_s9 + $0x30] sm:$0xff]   ;;  %v8549_v5 = vld [vmem:[%s9342_s9 + $0x78] sm:$0xff]  }
 0x3d8   :  { %6810 = vmatpush1.bf16.msra.mxu0 %v8466_v18 }
 0x3d9   :  { %6811 = vmatprep.subr.bf16.mxu0 %v8471_v21  ;;  %7989 = vmatpush3.bf16.msra.mxu1 %v8538_v33  ;;  %v8508_v21 = vld [vmem:[#allocation10 + $0x170] ss:$8 sps:$4 sm:$0xff]  }
 0x3da   :  { %7990 = vmatprep.subr.bf16.mxu1 %v8539_v6  ;;  %v8526_v33 = vld [vmem:[#allocation10 + $0x1d0] ss:$8 sps:$4 sm:$0xff]   ;;  %v8531_v6 = vld [vmem:[#allocation10 + $0x1e4] ss:$8 sps:$4 sm:$0xff]  }
 0x3dc   :  { %6812 = vmatpush1.bf16.msra.mxu0 %v8469_v63 }
 0x3dd   :  { %6813 = vmatprep.subr.bf16.mxu0 %v8474_v56  ;;  %7991 = vmatpush3.bf16.msra.mxu1 %v8540_v39  ;;  %v8513_v56 = vld [vmem:[#allocation10 + $0x184] ss:$8 sps:$4 sm:$0xff]  }
 0x3de   :  { %7992 = vmatprep.subr.bf16.mxu1 %v8541_v41  ;;  %v8529_v41 = vld [vmem:[#allocation10 + $0x1e0] ss:$8 sps:$4 sm:$0xff]  }
 0x3e0   :  { %6814 = vmatpush1.bf16.msra.mxu0 %v8472_v27 }
 0x3e1   :  { %6815 = vmatprep.subr.bf16.mxu0 %v8477_v28  ;;  %7993 = vmatpush3.bf16.msra.mxu1 %v8542_v4  ;;  %v8511_v28 = vld [vmem:[#allocation10 + $0x180] ss:$8 sps:$4 sm:$0xff]   ;;  %v8534_v4 = vld [vmem:[#allocation10 + $0x1f4] ss:$8 sps:$4 sm:$0xff]  }
 0x3e2   :  { %7994 = vmatprep.subr.bf16.mxu1 %v8543_v30 }
 0x3e4   :  { %6816 = vmatpush1.bf16.msra.mxu0 %v8475_v31 }
 0x3e5   :  { %6817 = vmatprep.subr.bf16.mxu0 %v8480_v29  ;;  %7995 = vmatpush3.bf16.msra.mxu1 %v8544_v52  ;;  %v8532_v52 = vld [vmem:[#allocation10 + $0x1f0] ss:$8 sps:$4 sm:$0xff]  }
 0x3e6   :  { %7996 = vmatprep.subr.bf16.mxu1 %v8545_v12 }
 0x3e8   :  { %6818 = vmatpush1.bf16.msra.mxu0 %v8478_v32  ;;  %v8516_v32 = vld [vmem:[#allocation10 + $0x194] ss:$8 sps:$4 sm:$0xff]  }
 0x3e9   :  { %6819 = vmatprep.subr.bf16.mxu0 %v8483_v46  ;;  %7997 = vmatpush3.bf16.msra.mxu1 %v8546_v36  ;;  %v8519_v46 = vld [vmem:[#allocation10 + $0x1a4] ss:$8 sps:$4 sm:$0xff]  }
 0x3ea   :  { %7998 = vmatprep.subr.bf16.mxu1 %v8547_v45 }
 0x3ec   :  { %6820 = vmatpush1.bf16.msra.mxu0 %v8481_v51  ;;  %v8517_v51 = vld [vmem:[#allocation10 + $0x1a0] ss:$8 sps:$4 sm:$0xff]  }
 0x3ed   :  { %6821 = vmatprep.subr.bf16.mxu0 %v8486_v11  ;;  %v8522_v11 = vld [vmem:[#allocation10 + $0x1b4] ss:$8 sps:$4 sm:$0xff]   ;;  %7999 = vmatpush3.bf16.msra.mxu1 %v8548_v38 }
 0x3ee   :  { %8000 = vmatprep.subr.bf16.mxu1 %v8549_v5 }
 0x3f0   :  { %6822 = vmatpush1.bf16.msra.mxu0 %v8484_v1  ;;  %v8520_v1 = vld [vmem:[#allocation10 + $0x1b0] ss:$8 sps:$4 sm:$0xff]  }
 0x3f1   :  { %6832 = vmatprep.subr.bf16.mxu0 %v8489_v55  ;;  %v8525_v55 = vld [vmem:[#allocation10 + $0x1c4] ss:$8 sps:$4 sm:$0xff]  }
 0x486   :  { %v6208_v44 = vpop.f32.mrb[36].mxu0 }
 0x487   :  { %v8008_v48 = vadd.f32 %v6208_v44, %v4754_v35  ;;  %v6210_v53 = vpop.f32.mrb[37].mxu0  ;;  %v8550_v35 = vld [vmem:[%s9342_s9 + $0x38] sm:$0xff]  }
 0x488   :  { %v8009_v24 = vadd.f32 %v6210_v53, %v4758_v43  ;;  %v6212_v54 = vpop.f32.mrb[38].mxu0  ;;  %8001 = vmatpush3.bf16.msra.mxu1 %v8550_v35  ;;  %v6459_v43 = vld [vmem:[#allocation11] sm:$0x3] }
 0x489   :  { %vm6379_vm8 = vcmp.ge.f32.partialorder %v8008_v48, 0.0  ;;  %v6383_v40 = vmul.f32 0.2, %v8008_v48  ;;  %v6213_v2 = vpop.f32.mrb[39].mxu0  ;;  %v6464_v44 = vrot.slane %v6459_v43, %v9192_v14  ;;  %v7968_v14 = vld [vmem:[#allocation2] ss:$0 sm:$0xff] }
 0x48a   :  { %vm6380_vm9 = vcmp.ge.f32.partialorder %v8009_v24, 0.0  ;;  %v6384_v57 = vmul.f32 0.2, %v8009_v24 }
 0x48b   :  { %v6387_v34 = vsel %vm6379_vm8, %v8008_v48, %v6383_v40  ;;  %v6468_v48 = vrot.slane %v6459_v43, %v9166_v62 }
 0x48c   :  { %v6388_v58 = vsel %vm6380_vm9, %v8009_v24, %v6384_v57  ;;  %v6391_v19 = vpack.c.bf16 %v6387_v34, %v6387_v34 }
 0x48d   :  { %v6392_v59 = vpack.c.bf16 %v6388_v58, %v6388_v58 }
 0x48f   :  { %6823 = vmatprep.mubr.bf16.mxu0 %v6392_v59 }
 0x490   :  { %6824 = vmatmul.mubr.bf16.vlgmr.msra.gmra.mrb[40].mxu0 %v6391_v19 }
 0x491   :  { %6833 = vmatpush1.bf16.msra.mxu0 %v8487_v60 }
 0x492   :  { %6834 = vmatprep.subr.bf16.mxu0 %v8492_v0 }
 0x495   :  { %6835 = vmatpush1.bf16.msra.mxu0 %v8490_v20 }
 0x496   :  { %6836 = vmatprep.subr.bf16.mxu0 %v8495_v61 }
 0x499   :  { %6837 = vmatpush1.bf16.msra.mxu0 %v8493_v3 }
 0x49a   :  { %6838 = vmatprep.subr.bf16.mxu0 %v8498_v26 }
 0x49d   :  { %6839 = vmatpush1.bf16.msra.mxu0 %v8496_v42 }
 0x49e   :  { %6840 = vmatprep.subr.bf16.mxu0 %v8501_v10 }
 0x4a1   :  { %6841 = vmatpush1.bf16.msra.mxu0 %v8499_v7 }
 0x4a2   :  { %6842 = vmatprep.subr.bf16.mxu0 %v8504_v47 }
 0x4a5   :  { %6843 = vmatpush1.bf16.msra.mxu0 %v8502_v8 }
 0x4a6   :  { %6844 = vmatprep.subr.bf16.mxu0 %v8507_v9 }
 0x4a7   :  { %v6372_v23 = vpop.f32.mrb[44].mxu1 }
 0x4a8   :  { %v6374_v17 = vpop.f32.mrb[45].mxu1  ;;  %v8010_v39 = vadd.f32 %v6372_v23, %v4762_v37 }
 0x4a9   :  { %v8011_v22 = vadd.f32 %v6374_v17, %v4766_v13  ;;  %6845 = vmatpush1.bf16.msra.mxu0 %v8505_v16  ;;  %v6376_v18 = vpop.f32.mrb[46].mxu1 }
 0x4aa   :  { %v6377_v63 = vpop.f32.mrb[47].mxu1  ;;  %6846 = vmatprep.subr.bf16.mxu0 %v8510_v25  ;;  %v6385_v30 = vmul.f32 0.2, %v8010_v39  ;;  %vm6381_vm11 = vcmp.ge.f32.partialorder %v8010_v39, 0.0 }
 0x4ab   :  { %vm6382_vm10 = vcmp.ge.f32.partialorder %v8011_v22, 0.0  ;;  %v6386_v27 = vmul.f32 0.2, %v8011_v22 }
 0x4ac   :  { %v6389_v12 = vsel %vm6381_vm11, %v8010_v39, %v6385_v30 }
 0x4ad   :  { %6847 = vmatpush1.bf16.msra.mxu0 %v8508_v21  ;;  %v6390_v31 = vsel %vm6382_vm10, %v8011_v22, %v6386_v27  ;;  %v6393_v36 = vpack.c.bf16 %v6389_v12, %v6389_v12 }
 0x4ae   :  { %6848 = vmatprep.subr.bf16.mxu0 %v8513_v56  ;;  %v6394_v29 = vpack.c.bf16 %v6390_v31, %v6390_v31 }
 0x4b0   :  { %6864 = vmatprep.mubr.bf16.mxu0 %v6394_v29 }
 0x4b1   :  { %6849 = vmatpush1.bf16.msra.mxu0 %v8511_v28 }
 0x4b2   :  { %6850 = vmatprep.subr.bf16.mxu0 %v8516_v32 }
 0x4b5   :  { %6851 = vmatpush1.bf16.msra.mxu0 %v8514_v15 }
 0x4b6   :  { %6852 = vmatprep.subr.bf16.mxu0 %v8519_v46 }
 0x4b9   :  { %6853 = vmatpush1.bf16.msra.mxu0 %v8517_v51 }
 0x4ba   :  { %6854 = vmatprep.subr.bf16.mxu0 %v8522_v11 }
 0x4bd   :  { %6855 = vmatpush1.bf16.msra.mxu0 %v8520_v1 }
 0x4be   :  { %6856 = vmatprep.subr.bf16.mxu0 %v8525_v55 }
 0x4c1   :  { %6857 = vmatpush1.bf16.msra.mxu0 %v8523_v50 }
 0x4c2   :  { %6858 = vmatprep.subr.bf16.mxu0 %v8528_v49 }
 0x4c5   :  { %6859 = vmatpush1.bf16.msra.mxu0 %v8526_v33 }
 0x4c6   :  { %6860 = vmatprep.subr.bf16.mxu0 %v8531_v6 }
 0x4c9   :  { %6861 = vmatpush1.bf16.msra.mxu0 %v8529_v41 }
 0x4ca   :  { %6862 = vmatprep.subr.bf16.mxu0 %v8534_v4 }
 0x4cd   :  { %6863 = vmatpush1.bf16.msra.mxu0 %v8532_v52 }
 0x4d0   :  { %6865 = vmatmul.mubr.bf16.vlgmr.msra.gmra.mrb[40].mxu0 %v6393_v36 }
 0x5a3   :  { %v6866_v53 = vpop.f32.mrb[40].mxu0 }
 0x5a4   :  { %v8012_v24 = vadd.f32 %v6866_v53, %v6464_v44  ;;  %v6868_v54 = vpop.f32.mrb[41].mxu0 }
 0x5a5   :  { %v8013_v40 = vadd.f32 %v6868_v54, %v6468_v48  ;;  %v6870_v2 = vpop.f32.mrb[42].mxu0 }
 0x5a6   :  { %vm6873_vm12 = vcmp.ge.f32.partialorder %v8012_v24, 0.0  ;;  %v6875_v57 = vmul.f32 0.2, %v8012_v24  ;;  %v6871_v34 = vpop.f32.mrb[43].mxu0 }
 0x5a7   :  { %vm6874_vm13 = vcmp.ge.f32.partialorder %v8013_v40, 0.0  ;;  %v6876_v58 = vmul.f32 0.2, %v8013_v40 }
 0x5a8   :  { %v6877_v59 = vsel %vm6873_vm12, %v8012_v24, %v6875_v57 }
 0x5a9   :  { %v6878_v60 = vsel %vm6874_vm13, %v8013_v40, %v6876_v58  ;;  %v6879_v0 = vpack.c.bf16 %v6877_v59, %v6877_v59 }
 0x5aa   :  { %v6880_v19 = vpack.c.bf16 %v6878_v60, %v6878_v60 }
 0x5ac   :  { %7048 = vmatprep.mubr.bf16.mxu1 %v6880_v19 }
 0x5ad   :  { %7049 = vmatmul.mubr.bf16.vlgmr.msra.gmra.mrb[48].mxu1 %v6879_v0 }
 0x680   :  { %v8002_v20 = vpop.f32.mrb[48].mxu1 }
 0x681   :  { %v8003_v61 = vpop.f32.mrb[49].mxu1 }
 0x682   :  { %v8004_v62 = vadd.f32 %v8003_v61, %v8002_v20  ;;  %v8005_v3 = vpop.f32.mrb[50].mxu1 }
 0x683   :  { %v8006_v26 = vpop.f32.mrb[51].mxu1 }
 0x684   :  { %v7051_v42 = vadd.f32 %v8004_v62, %v7968_v14 }
 0x686   :  { %v7985_v10 = vmul.f32 -1.442695, %v7051_v42 }
 0x688   :  { %8551 = vpow2.f32 %v7985_v10 }
 0x692   :  { %v8552_v7 = vpop.eup %8551 }
 0x693   :  { %v7059_v47 = vadd.f32 1.0, %v8552_v7 }
 0x695   :  { %8553 = vrcp.f32 %v7059_v47 }
 0x69f   :  { %v8554_v8 = vpop.eup %8553 }
 0x6a0   :  { %7063 = vst.msk [vmem:[%s9344_s11] sm:$0xff] %vm7062_vm14, %v8554_v8 }
 0x6a1   :  { %7068 = vsyncpa [#allocation4], 1 }
 0x6a2   :  { %7069 = vsyncpa [#allocation6], 1 }
 0x6a3   :  { %7070 = vsyncpa [#allocation9], 1 }
 0x6a4   :  { %7071 = vsyncpa [#allocation12], 1 }

</bundles_post_ra>
